<compile_context>
chip_gen: v5e
topology: v5e:2x2
jax: 0.10.0
libtpu: 0.0.40
codegen_flags: <defaults>
</compile_context>

<pallas_src>
import math
import functools

import jax
import jax.numpy as jnp
from jax.experimental import pallas as pl
from jax.experimental.pallas import tpu as pltpu


# ----------------------------------------------------------------------------
# Parameter initialization (matches SineLayer / Siren __init__ semantics).
# Weights are stored in PyTorch layout (out_dim, in_dim); biases as (out_dim, 1).
# ----------------------------------------------------------------------------
def init_siren_params(key, in_features, hidden_features, hidden_layers,
                      out_features, outermost_linear=False,
                      first_omega_0=30.0, hidden_omega_0=30.0):
    """Returns (params, omegas).  params = [W0, b0, W1, b1, ...] with
    W_i : (out_dim, in_dim), b_i : (out_dim, 1).  omegas[i] is the omega
    multiplier inside sin() for layer i, or None for a plain Linear output."""
    params = []
    omegas = []

    def linear_init(key, in_dim, out_dim, w_lim):
        kw, kb = jax.random.split(key)
        w = jax.random.uniform(kw, (out_dim, in_dim), jnp.float32,
                               minval=-w_lim, maxval=w_lim)
        # bias: PyTorch nn.Linear default uniform(-1/sqrt(in), 1/sqrt(in))
        bb = 1.0 / math.sqrt(in_dim)
        b = jax.random.uniform(kb, (out_dim, 1), jnp.float32,
                               minval=-bb, maxval=bb)
        return w, b

    keys = jax.random.split(key, hidden_layers + 2)

    # first layer
    w, b = linear_init(keys[0], in_features, hidden_features,
                       1.0 / in_features)
    params += [w, b]
    omegas.append(float(first_omega_0))

    # hidden layers
    for i in range(hidden_layers):
        lim = math.sqrt(6.0 / hidden_features) / hidden_omega_0
        w, b = linear_init(keys[1 + i], hidden_features, hidden_features, lim)
        params += [w, b]
        omegas.append(float(hidden_omega_0))

    # final layer
    lim = math.sqrt(6.0 / hidden_features) / hidden_omega_0
    w, b = linear_init(keys[-1], hidden_features, out_features, lim)
    params += [w, b]
    omegas.append(None if outermost_linear else float(hidden_omega_0))

    return params, omegas


# ----------------------------------------------------------------------------
# Pallas kernel: fused MLP forward for one tile of points (lane axis = points).
# ----------------------------------------------------------------------------
def _siren_kernel(x_ref, *refs, omegas, softplus_output, first_layer_vpu,
                  matmul_dtype):
    o_ref = refs[-1]
    param_refs = refs[:-1]

    h = x_ref[...].astype(jnp.float32)              # (in_f, tile_n)
    for li, omega in enumerate(omegas):
        w = param_refs[2 * li][...]                 # (out_dim, in_dim), f32
        b = param_refs[2 * li + 1][...]             # (out_dim, 1), f32
        if li == 0 and first_layer_vpu:
            # K is tiny (e.g. 3): three broadcast FMAs on the VPU instead of
            # an MXU pass with <3% K utilization.
            in_dim = w.shape[1]
            acc = jnp.zeros((w.shape[0], h.shape[1]), jnp.float32)
            for k in range(in_dim):
                acc = acc + w[:, k:k + 1] * h[k:k + 1, :]
            z = acc + b
        else:
            z = jnp.dot(w.astype(matmul_dtype), h.astype(matmul_dtype),
                        preferred_element_type=jnp.float32) + b
        if omega is not None:
            h = jnp.sin(omega * z)                  # sin(omega_0 * linear(x))
        else:
            h = z                                   # outermost plain Linear
    if softplus_output:
        # numerically stable log(1 + exp(h))  (same math as the PyTorch code)
        h = jnp.maximum(h, 0.0) + jnp.log1p(jnp.exp(-jnp.abs(h)))
    o_ref[...] = h.astype(o_ref.dtype)              # lane-dense unmasked store


def siren_forward(coords, params, omegas, softmax_output=False, tile_n=256,
                  matmul_dtype=jnp.float32):
    """coords: (N, in_features) float32.  Returns (output, coords) like the
    PyTorch module.  Internally works in a points-on-lanes layout
    (features, N) and pads N up to a multiple of tile_n.

    On v6e/v7x, pass matmul_dtype=jnp.bfloat16 for higher MXU throughput
    (accumulation, bias and sin stay f32)."""
    N, in_f = coords.shape
    out_f = params[-1].shape[0]

    n_pad = pl.cdiv(N, tile_n) * tile_n
    x = coords.T.astype(jnp.float32)                # (in_f, N)
    if n_pad != N:
        x = jnp.pad(x, ((0, 0), (0, n_pad - N)))    # pad cols are sliced off

    kernel = functools.partial(
        _siren_kernel,
        omegas=tuple(omegas),
        softplus_output=softmax_output,
        first_layer_vpu=(in_f <= 8),
        matmul_dtype=matmul_dtype)

    # coords tiled over the point (lane) axis; params passed as full blocks
    # with a constant index_map so they stay resident across grid steps.
    in_specs = [pl.BlockSpec((in_f, tile_n), lambda i: (0, i))]
    for p in params:
        in_specs.append(pl.BlockSpec(p.shape, lambda i: (0, 0)))

    out_t = pl.pallas_call(
        kernel,
        out_shape=jax.ShapeDtypeStruct((out_f, n_pad), jnp.float32),
        grid_spec=pltpu.PrefetchScalarGridSpec(
            num_scalar_prefetch=0,
            grid=(n_pad // tile_n,),
            in_specs=in_specs,
            out_specs=pl.BlockSpec((out_f, tile_n), lambda i: (0, i)),
        ),
        compiler_params=pltpu.CompilerParams(
            dimension_semantics=("parallel",)),
    )(x, *params)

    out = out_t[:, :N].T                            # (N, out_f)
    return out, coords


# ----------------------------------------------------------------------------
# Pure-JAX reference for correctness checking.
# ----------------------------------------------------------------------------
def siren_reference(coords, params, omegas, softmax_output=False):
    h = coords.astype(jnp.float32)                  # (N, in_f)
    for li, omega in enumerate(omegas):
        w = params[2 * li]                          # (out_dim, in_dim)
        b = params[2 * li + 1]                      # (out_dim, 1)
        z = h @ w.T + b.T
        h = jnp.sin(omega * z) if omega is not None else z
    if softmax_output:
        h = jnp.log(1.0 + jnp.exp(h))
    return h


if __name__ == "__main__":
    # Small Siren: in_features=3 (e.g. x,y,t coords), hidden=32, 2 hidden
    # layers, out_features=1, sine output layer (outermost_linear=False).
    in_features, hidden_features, hidden_layers, out_features = 3, 32, 2, 1
    outermost_linear = False

    key = jax.random.PRNGKey(0)
    kp, kx = jax.random.split(key)
    params, omegas = init_siren_params(
        kp, in_features, hidden_features, hidden_layers, out_features,
        outermost_linear=outermost_linear,
        first_omega_0=30.0, hidden_omega_0=30.0)

    N = 1000  # deliberately NOT a multiple of tile_n (exercises padding path)
    coords = jax.random.uniform(kx, (N, in_features), jnp.float32,
                                minval=-1.0, maxval=1.0)

    # Plain forward
    out, coords_out = siren_forward(coords, params, omegas,
                                    softmax_output=False, tile_n=256)
    out = jax.block_until_ready(out)
    ref = siren_reference(coords, params, omegas, softmax_output=False)
    assert out.shape == (N, out_features)
    assert jnp.allclose(out, ref, atol=1e-5, rtol=1e-5), "mismatch vs reference"
    assert jnp.array_equal(coords_out, coords)

    # softplus-output forward (the module's misnamed `softmax_output` flag)
    out_sp, _ = siren_forward(coords, params, omegas,
                              softmax_output=True, tile_n=256)
    out_sp = jax.block_until_ready(out_sp)
    ref_sp = siren_reference(coords, params, omegas, softmax_output=True)
    assert jnp.allclose(out_sp, ref_sp, atol=1e-5, rtol=1e-5), \
        "softplus mismatch vs reference"

    # TODO(synk): requires_grad_/clone-detach autograd bookkeeping has no
    # Pallas equivalent; coords is simply returned alongside the output.
    print("KERNEL_OK")
</pallas_src>

<mosaic_0001>
module attributes {stable_mosaic.version = 11 : i64} {
  func.func @_siren_kernel(%arg0: i32, %arg1: memref<3x256xf32, #tpu.memory_space<vmem>>, %arg2: memref<32x3xf32, #tpu.memory_space<vmem>>, %arg3: memref<32x1xf32, #tpu.memory_space<vmem>>, %arg4: memref<32x32xf32, #tpu.memory_space<vmem>>, %arg5: memref<32x1xf32, #tpu.memory_space<vmem>>, %arg6: memref<32x32xf32, #tpu.memory_space<vmem>>, %arg7: memref<32x1xf32, #tpu.memory_space<vmem>>, %arg8: memref<1x32xf32, #tpu.memory_space<vmem>>, %arg9: memref<1x1xf32, #tpu.memory_space<vmem>>, %arg10: memref<1x256xf32, #tpu.memory_space<vmem>>) attributes {dimension_semantics = [#tpu.dimension_semantics<parallel>], iteration_bounds = array<i64: 4>, scalar_prefetch = 0 : i64, scratch_operands = 0 : i64, tpu.core_type = #tpu.core_type<tc>, window_params = [{transform_indices = @transform_0, window_bounds = array<i64: 3, 256>}, {pipeline_mode = #tpu.pipeline_mode<synchronous>, transform_indices = @transform_1, window_bounds = array<i64: 32, 3>}, {pipeline_mode = #tpu.pipeline_mode<synchronous>, transform_indices = @transform_2, window_bounds = array<i64: 32, 1>}, {pipeline_mode = #tpu.pipeline_mode<synchronous>, transform_indices = @transform_3, window_bounds = array<i64: 32, 32>}, {pipeline_mode = #tpu.pipeline_mode<synchronous>, transform_indices = @transform_4, window_bounds = array<i64: 32, 1>}, {pipeline_mode = #tpu.pipeline_mode<synchronous>, transform_indices = @transform_5, window_bounds = array<i64: 32, 32>}, {pipeline_mode = #tpu.pipeline_mode<synchronous>, transform_indices = @transform_6, window_bounds = array<i64: 32, 1>}, {pipeline_mode = #tpu.pipeline_mode<synchronous>, transform_indices = @transform_7, window_bounds = array<i64: 1, 32>}, {pipeline_mode = #tpu.pipeline_mode<synchronous>, transform_indices = @transform_8, window_bounds = array<i64: 1, 1>}, {transform_indices = @transform_9, window_bounds = array<i64: 1, 256>}]} {
    %c0 = arith.constant 0 : index
    %c0_0 = arith.constant 0 : index
    %0 = vector.load %arg1[%c0, %c0_0] : memref<3x256xf32, #tpu.memory_space<vmem>>, vector<3x256xf32>
    %c0_1 = arith.constant 0 : index
    %c0_2 = arith.constant 0 : index
    %1 = vector.load %arg2[%c0_1, %c0_2] : memref<32x3xf32, #tpu.memory_space<vmem>>, vector<32x3xf32>
    %c0_3 = arith.constant 0 : index
    %c0_4 = arith.constant 0 : index
    %2 = vector.load %arg3[%c0_3, %c0_4] : memref<32x1xf32, #tpu.memory_space<vmem>>, vector<32x1xf32>
    %cst = arith.constant 0.000000e+00 : f32
    %3 = vector.broadcast %cst : f32 to vector<32x256xf32>
    %4 = vector.extract_strided_slice %1 {offsets = [0, 0], sizes = [32, 1], strides = [1, 1]} : vector<32x3xf32> to vector<32x1xf32>
    %5 = vector.extract_strided_slice %0 {offsets = [0, 0], sizes = [1, 256], strides = [1, 1]} : vector<3x256xf32> to vector<1x256xf32>
    %6 = vector.broadcast %4 : vector<32x1xf32> to vector<32x256xf32>
    %7 = vector.broadcast %5 : vector<1x256xf32> to vector<32x256xf32>
    %8 = arith.mulf %6, %7 : vector<32x256xf32>
    %9 = arith.addf %3, %8 : vector<32x256xf32>
    %10 = vector.extract_strided_slice %1 {offsets = [0, 1], sizes = [32, 1], strides = [1, 1]} : vector<32x3xf32> to vector<32x1xf32>
    %11 = vector.extract_strided_slice %0 {offsets = [1, 0], sizes = [1, 256], strides = [1, 1]} : vector<3x256xf32> to vector<1x256xf32>
    %12 = vector.broadcast %10 : vector<32x1xf32> to vector<32x256xf32>
    %13 = vector.broadcast %11 : vector<1x256xf32> to vector<32x256xf32>
    %14 = arith.mulf %12, %13 : vector<32x256xf32>
    %15 = arith.addf %9, %14 : vector<32x256xf32>
    %16 = vector.extract_strided_slice %1 {offsets = [0, 2], sizes = [32, 1], strides = [1, 1]} : vector<32x3xf32> to vector<32x1xf32>
    %17 = vector.extract_strided_slice %0 {offsets = [2, 0], sizes = [1, 256], strides = [1, 1]} : vector<3x256xf32> to vector<1x256xf32>
    %18 = vector.broadcast %16 : vector<32x1xf32> to vector<32x256xf32>
    %19 = vector.broadcast %17 : vector<1x256xf32> to vector<32x256xf32>
    %20 = arith.mulf %18, %19 : vector<32x256xf32>
    %21 = arith.addf %15, %20 : vector<32x256xf32>
    %22 = vector.broadcast %2 : vector<32x1xf32> to vector<32x256xf32>
    %23 = arith.addf %21, %22 : vector<32x256xf32>
    %cst_5 = arith.constant 3.000000e+01 : f32
    %24 = vector.broadcast %cst_5 : f32 to vector<32x256xf32>
    %25 = arith.mulf %24, %23 : vector<32x256xf32>
    %26 = math.sin %25 : vector<32x256xf32>
    %c0_6 = arith.constant 0 : index
    %c0_7 = arith.constant 0 : index
    %27 = vector.load %arg4[%c0_6, %c0_7] : memref<32x32xf32, #tpu.memory_space<vmem>>, vector<32x32xf32>
    %c0_8 = arith.constant 0 : index
    %c0_9 = arith.constant 0 : index
    %28 = vector.load %arg5[%c0_8, %c0_9] : memref<32x1xf32, #tpu.memory_space<vmem>>, vector<32x1xf32>
    %cst_10 = arith.constant dense<0.000000e+00> : vector<32x256xf32>
    %29 = tpu.matmul %27, %26, %cst_10 {dimension_numbers = #tpu.dot_dimension_numbers<[1], [0], [0], [1], [0, 0, 1, 1], [], []>} : vector<32x32xf32>, vector<32x256xf32>, vector<32x256xf32> -> vector<32x256xf32>
    %30 = vector.broadcast %28 : vector<32x1xf32> to vector<32x256xf32>
    %31 = arith.addf %29, %30 : vector<32x256xf32>
    %cst_11 = arith.constant 3.000000e+01 : f32
    %32 = vector.broadcast %cst_11 : f32 to vector<32x256xf32>
    %33 = arith.mulf %32, %31 : vector<32x256xf32>
    %34 = math.sin %33 : vector<32x256xf32>
    %c0_12 = arith.constant 0 : index
    %c0_13 = arith.constant 0 : index
    %35 = vector.load %arg6[%c0_12, %c0_13] : memref<32x32xf32, #tpu.memory_space<vmem>>, vector<32x32xf32>
    %c0_14 = arith.constant 0 : index
    %c0_15 = arith.constant 0 : index
    %36 = vector.load %arg7[%c0_14, %c0_15] : memref<32x1xf32, #tpu.memory_space<vmem>>, vector<32x1xf32>
    %cst_16 = arith.constant dense<0.000000e+00> : vector<32x256xf32>
    %37 = tpu.matmul %35, %34, %cst_16 {dimension_numbers = #tpu.dot_dimension_numbers<[1], [0], [0], [1], [0, 0, 1, 1], [], []>} : vector<32x32xf32>, vector<32x256xf32>, vector<32x256xf32> -> vector<32x256xf32>
    %38 = vector.broadcast %36 : vector<32x1xf32> to vector<32x256xf32>
    %39 = arith.addf %37, %38 : vector<32x256xf32>
    %cst_17 = arith.constant 3.000000e+01 : f32
    %40 = vector.broadcast %cst_17 : f32 to vector<32x256xf32>
    %41 = arith.mulf %40, %39 : vector<32x256xf32>
    %42 = math.sin %41 : vector<32x256xf32>
    %c0_18 = arith.constant 0 : index
    %c0_19 = arith.constant 0 : index
    %43 = vector.load %arg8[%c0_18, %c0_19] : memref<1x32xf32, #tpu.memory_space<vmem>>, vector<1x32xf32>
    %c0_20 = arith.constant 0 : index
    %c0_21 = arith.constant 0 : index
    %44 = vector.load %arg9[%c0_20, %c0_21] : memref<1x1xf32, #tpu.memory_space<vmem>>, vector<1x1xf32>
    %cst_22 = arith.constant dense<0.000000e+00> : vector<1x256xf32>
    %45 = tpu.matmul %43, %42, %cst_22 {dimension_numbers = #tpu.dot_dimension_numbers<[1], [0], [0], [1], [0, 0, 1, 1], [], []>} : vector<1x32xf32>, vector<32x256xf32>, vector<1x256xf32> -> vector<1x256xf32>
    %46 = vector.broadcast %44 : vector<1x1xf32> to vector<1x256xf32>
    %47 = arith.addf %45, %46 : vector<1x256xf32>
    %cst_23 = arith.constant 3.000000e+01 : f32
    %48 = vector.broadcast %cst_23 : f32 to vector<1x256xf32>
    %49 = arith.mulf %48, %47 : vector<1x256xf32>
    %50 = math.sin %49 : vector<1x256xf32>
    %c0_24 = arith.constant 0 : index
    %c0_25 = arith.constant 0 : index
    %51 = vector.load %arg10[%c0_24, %c0_25] : memref<1x256xf32, #tpu.memory_space<vmem>>, vector<1x256xf32>
    tpu.vector_store %arg10[%c0_24, %c0_25], %50 {strides = array<i32>} : memref<1x256xf32, #tpu.memory_space<vmem>>, vector<1x256xf32>,
    return
  }
  func.func @transform_0(%arg0: i32) -> (i32, i32) {
    %c0_i32 = arith.constant 0 : i32
    %c0_i32_0 = arith.constant 0 : i32
    return %c0_i32, %arg0 : i32, i32
  }
  func.func @transform_1(%arg0: i32) -> (i32, i32) {
    %c0_i32 = arith.constant 0 : i32
    %c0_i32_0 = arith.constant 0 : i32
    %c0_i32_1 = arith.constant 0 : i32
    return %c0_i32, %c0_i32_0 : i32, i32
  }
  func.func @transform_2(%arg0: i32) -> (i32, i32) {
    %c0_i32 = arith.constant 0 : i32
    %c0_i32_0 = arith.constant 0 : i32
    %c0_i32_1 = arith.constant 0 : i32
    return %c0_i32, %c0_i32_0 : i32, i32
  }
  func.func @transform_3(%arg0: i32) -> (i32, i32) {
    %c0_i32 = arith.constant 0 : i32
    %c0_i32_0 = arith.constant 0 : i32
    %c0_i32_1 = arith.constant 0 : i32
    return %c0_i32, %c0_i32_0 : i32, i32
  }
  func.func @transform_4(%arg0: i32) -> (i32, i32) {
    %c0_i32 = arith.constant 0 : i32
    %c0_i32_0 = arith.constant 0 : i32
    %c0_i32_1 = arith.constant 0 : i32
    return %c0_i32, %c0_i32_0 : i32, i32
  }
  func.func @transform_5(%arg0: i32) -> (i32, i32) {
    %c0_i32 = arith.constant 0 : i32
    %c0_i32_0 = arith.constant 0 : i32
    %c0_i32_1 = arith.constant 0 : i32
    return %c0_i32, %c0_i32_0 : i32, i32
  }
  func.func @transform_6(%arg0: i32) -> (i32, i32) {
    %c0_i32 = arith.constant 0 : i32
    %c0_i32_0 = arith.constant 0 : i32
    %c0_i32_1 = arith.constant 0 : i32
    return %c0_i32, %c0_i32_0 : i32, i32
  }
  func.func @transform_7(%arg0: i32) -> (i32, i32) {
    %c0_i32 = arith.constant 0 : i32
    %c0_i32_0 = arith.constant 0 : i32
    %c0_i32_1 = arith.constant 0 : i32
    return %c0_i32, %c0_i32_0 : i32, i32
  }
  func.func @transform_8(%arg0: i32) -> (i32, i32) {
    %c0_i32 = arith.constant 0 : i32
    %c0_i32_0 = arith.constant 0 : i32
    %c0_i32_1 = arith.constant 0 : i32
    return %c0_i32, %c0_i32_0 : i32, i32
  }
  func.func @transform_9(%arg0: i32) -> (i32, i32) {
    %c0_i32 = arith.constant 0 : i32
    %c0_i32_0 = arith.constant 0 : i32
    return %c0_i32, %arg0 : i32, i32
  }
}

</mosaic_0001>

<bundles_post_ra>
// kernel: tpu_custom_call.1
= control target key start
LH: loop header
LB: loop body
LE: loop exit
PB: predicated region body
PF: predicated region fallthrough
CT: control target
= control target key end

     0   :  { %s8825_s0 = inlined_call_operand.vmem [shape: f32[3,1024], index: 0, kind: input, shape index: {}]   ;;  %s8826_s1 = inlined_call_operand.vmem [shape: f32[32,3], index: 1, kind: input, shape index: {}]   ;;  %s8827_s2 = inlined_call_operand.vmem [shape: f32[32,1], index: 2, kind: input, shape index: {}]   ;;  %s8828_s3 = inlined_call_operand.vmem [shape: f32[32,32], index: 3, kind: input, shape index: {}]   ;;  %s8829_s4 = inlined_call_operand.vmem [shape: f32[32,1], index: 4, kind: input, shape index: {}]   ;;  %s8830_s5 = inlined_call_operand.vmem [shape: f32[32,32], index: 5, kind: input, shape index: {}]   ;;  %s8831_s6 = inlined_call_operand.vmem [shape: f32[32,1], index: 6, kind: input, shape index: {}]   ;;  %s8832_s7 = inlined_call_operand.vmem [shape: f32[1,32], index: 7, kind: input, shape index: {}]   ;;  %s8833_s8 = inlined_call_operand.<no memory space> [shape: f32[1,1], index: 8, kind: input, shape index: {}]   ;;  %s8834_s9 = inlined_call_operand.hbm [shape: f32[1,1024], index: 9, kind: output, shape index: {}]  }
   0x1   :  { %v14_v0 = vstv %s8833_s8 }
   0x2   :  { %15 = vst [vmem:[#allocation2] sm:$0x1] %v14_v0 }
   0x3   :  { %16 = vsyncpa [#allocation4], 0 }
   0x4   :  { %18 = vsyncpa [#allocation4 + $0x1], 0  ;;  %s5172_s11 = smov 0   ;;  %s5174_s12 = smov 0  }
   0x5   :  { %s5176_s13 = smov 0   ;;  %s5178_s14 = smov 0  }
   0x6 LB: > { %s4881_s8 = sadd.s32 4294967295, %s5108_s14   ;;  %s4882_s15 = sadd.s32 4294967294, %s5108_s14   ;;  %s5108_s14 = sphi %s5178_s14, %s9044_s14   ;;  %s5104_s13 = sphi %s5176_s13, %s9043_s13   ;;  %s5100_s12 = sphi %s5174_s12, %s9042_s12   ;;  %s5096_s11 = sphi %s5172_s11, %s9041_s11  }
   0x7   : > { %s5195_s16 = sadd.s32 1, %s5108_s14   ;;  %s225_s17 = sadd.s32 1, %s5104_s13 }
   0x8   : > { %s222_s18 = ssub.s32 %s5108_s14, %s5195_s16  ;;  %p235_p0 = scmp.ne.s32.totalorder %s5104_s13, %s5100_s12 }
   0x9   : > { %p223_p1 = scmp.eq.s32.totalorder %s222_s18, 0  ;;  %p236_p2 = scmp.eq.s32.totalorder %s4881_s8, 3 }
   0xa   : > { %p241_p3 = scmp.ne.s32.totalorder %s5100_s12, %s5096_s11  ;;  %p242_p4 = scmp.eq.s32.totalorder %s4882_s15, 3 }
   0xb   : > { %s5207_s19 = scalar_select %p223_p1, %s5104_s13, %s225_s17  }
   0xc   : > { %p5209_p5 = por %p236_p2, %p235_p0  ;;  %p5213_p6 = por %p242_p4, %p241_p3 }
   0xd   : > { %p4885_p7 = scmp.ge.s32.totalorder %s5108_s14, 1  ;;  %p293_p8 = scmp.lt.s32.totalorder %s5108_s14, 5 }
   0xf   : > { %p294_p9 = pnand %p4885_p7, %p293_p8 }
  0x11   : > { %297 = sbr.rel (%p294_p9) target bundleno = 1692 (0x69c), region = 56 }
  0x16   : > { %v340_v1 = vld [vmem:[%s8826_s1 + $0x18] sm:$0xff]  ;;  %v339_v2 = vld [vmem:[%s8826_s1 + $0x10] sm:$0xff]  ;;  %v5110_v3 = vmov 1   ;;  %v8847_v4 = vmov 0   ;;  %v5112_v5 = vmov 2   ;;  %v338_v6 = vld [vmem:[%s8826_s1 + $0x8] sm:$0xff] }
  0x17   : > { %5037 = vset.pattern.permute.xlu0 %v5110_v3  ;;  %5039 = vset.pattern.permute.xlu1 %v8847_v4  ;;  %v337_v7 = vld [vmem:[%s8826_s1] sm:$0xff]  ;;  %v343_v8 = vld [vmem:[%s8827_s2 + $0x10] sm:$0xff]  ;;  %v1747_v9 = vld [vmem:[%s8829_s4 + $0x18] sm:$0xff]  ;;  %s5274_s28 = sshll.u32 %s4881_s8, 1  ;;  %s326_s25 = sand.u32 1, %s5100_s12  }
  0x18   : > { %5041 = vset.pattern.permute.xlu2 %v5112_v5  ;;  %401 = vperm.xlu0 %5037, %v340_v1   ;;  %v344_v10 = vld [vmem:[%s8827_s2 + $0x18] sm:$0xff]  ;;  %v1744_v11 = vld [vmem:[%s8829_s4] sm:$0xff]  ;;  %v342_v12 = vld [vmem:[%s8827_s2 + $0x8] sm:$0xff]  ;;  %p330_p10 = scmp.lt.s32.totalorder %s5274_s28, 7  ;;  %s8787_s26 = sshll.u32 %s326_s25, 1 }
  0x19   : > { %357 = vperm.xlu1 %5039, %v339_v2   ;;  %439 = vperm.xlu2 %5041, %v340_v1   ;;  %v341_v13 = vld [vmem:[%s8827_s2] sm:$0xff]  ;;  %v3092_v14 = vld [vmem:[%s8831_s6 + $0x8] sm:$0xff]  ;;  %v1746_v15 = vld [vmem:[%s8829_s4 + $0x10] sm:$0xff]  ;;  %s328_s10 = scalar_lea.vmem [#allocation3], %s8787_s26  ;;  %s5066_s24 = scalar_lea.hbm %s8834_s9, 8 }
  0x1a   : > { %v1745_v16 = vld [vmem:[%s8829_s4 + $0x8] sm:$0xff]  ;;  %v3094_v17 = vld [vmem:[%s8831_s6 + $0x18] sm:$0xff]  ;;  %v3093_v18 = vld [vmem:[%s8831_s6 + $0x10] sm:$0xff]  ;;  %s331_s29 = scalar_select %p330_p10, %s5274_s28, 7 }
  0x1b   : > { %v3091_v19 = vld [vmem:[%s8831_s6] sm:$0xff]  ;;  %s4820_s15 = sshll.u32 %s328_s10, 4  ;;  %s4821_s15 = int_to_ptr.vmem [resolvable:$true] %s4820_s15 }
  0x1c   : > { %v4434_v20 = vld [vmem:[#allocation2] sm:$0x1]  ;;  %s4888_s30 = sshll.u32 %s331_s29, 2 }
  0x1d   : > { %s333_s17 = scalar_lea.vmem %s8825_s0, %s4888_s30  ;;  %s4818_s30 = scalar_lea.hbm %s8834_s9, %s5274_s28 }
  0x1e   : > { %v336_v22 = vld [vmem:[%s333_s17] sm:$0x77]  ;;  %s4822_s17 = sshll.u32 %s4818_s30, 4  ;;  %s4808_s28 = scalar_lea.sflag [#allocation4], %s326_s25  ;;  %s4823_s17 = int_to_ptr.hbm [resolvable:$true] %s4822_s17 }
  0x1f   : > { %v366_v23 = vperm.slane %v336_v22, 0  ;;  %v367_v24 = vperm.slane %v336_v22, 4  ;;  %v404_v34 = vperm.slane %v336_v22, 1  ;;  %v405_v35 = vperm.slane %v336_v22, 5  ;;  %s5060_s8 = sshra.s32 %s4823_s17, 4  ;;  %s5061_s8 = int_to_ptr.hbm [resolvable:$true] %s5060_s8 }
  0x20   : > { %5038 = vset.pattern.permute.xlu0 %v8847_v4  ;;  %v442_v36 = vperm.slane %v336_v22, 2  ;;  %v443_v37 = vperm.slane %v336_v22, 6  ;;  %s5062_s18 = scalar_lea.hbm %s5061_s8, 2  ;;  %p5067_p0 = scmp.lt.s32.totalorder %s5061_s8, %s8834_s9 }
  0x21   : > { %5040 = vset.pattern.permute.xlu1 %v5110_v3  ;;  %5042 = vset.pattern.permute.xlu2 %v8847_v4  ;;  %v370_v25 = vperm.slane %v366_v23, 0  ;;  %v371_v26 = vperm.slane %v367_v24, 0  ;;  %v408_v39 = vperm.slane %v404_v34, 1  ;;  %v409_v40 = vperm.slane %v405_v35, 1  ;;  %p5063_p11 = scmp.ne.s32.totalorder %s5061_s8, %s5062_s18  ;;  %p5068_p1 = scmp.lt.s32.totalorder %s5066_s24, %s5062_s18 }
  0x22   : > { %362 = vperm.xlu0 %5038, %v340_v1   ;;  %397 = vperm.xlu1 %5040, %v339_v2   ;;  %v446_v41 = vperm.slane %v442_v36, 2  ;;  %v447_v42 = vperm.slane %v443_v37, 2 }
  0x23   : > { %352 = vperm.xlu2 %5042, %v338_v6   ;;  %p5064_p12 = pnand %p5063_p11, %p5209_p5  ;;  %p5069_p2 = por %p5068_p1, %p5067_p0 }
  0x25   : > { %p5065_p13 = pneg %p5064_p12 }
  0x27   : > { %p5070_p3 = pnand %p5069_p2, %p5065_p13 }
  0x2a   : > { %393 = vperm.xlu1 %5040, %v338_v6   ;;  %347 = vperm.xlu0 %5038, %v337_v7  }
  0x2b   : > { %5043 = vset.pattern.permute.xlu2 %v5112_v5 }
  0x2c   : > { %435 = vperm.xlu2 %5043, %v339_v2  }
  0x32   : > { %389 = vperm.xlu1 %5040, %v337_v7   ;;  %476 = vperm.xlu0 %5038, %v343_v8  }
  0x34   : > { %431 = vperm.xlu2 %5043, %v338_v6  }
  0x3a   : > { %5044 = vset.pattern.permute.xlu1 %v8847_v4  ;;  %1765 = vperm.xlu0 %5038, %v1747_v9  }
  0x3b   : > { %481 = vperm.xlu1 %5044, %v344_v10  }
  0x3c   : > { %427 = vperm.xlu2 %5043, %v337_v7  }
  0x42   : > { %1750 = vperm.xlu0 %5038, %v1744_v11  }
  0x43   : > { %471 = vperm.xlu1 %5044, %v342_v12  }
  0x44   : > { %5045 = vset.pattern.permute.xlu2 %v8847_v4 }
  0x45   : > { %466 = vperm.xlu2 %5045, %v341_v13  }
  0x4a   : > { %3102 = vperm.xlu0 %5038, %v3092_v14  }
  0x4b   : > { %1760 = vperm.xlu1 %5044, %v1746_v15  }
  0x4d   : > { %1755 = vperm.xlu2 %5045, %v1745_v16  }
  0x53   : > { %3112 = vperm.xlu1 %5044, %v3094_v17  }
  0x55   : > { %3107 = vperm.xlu2 %5045, %v3093_v18  }
  0x5b   : > { %3097 = vperm.xlu1 %5044, %v3091_v19  }
  0x5d   : > { %4437 = vperm.xlu2 %5045, %v4434_v20  }
  0x73   : > { %v5281_v21 = vpop.permute.xlu2 %439 }
  0x7d   : > { %v353_v27 = vpop.permute.xlu2 %352 }
  0x7e   : > { %v374_v28 = vmul.f32 %v370_v25, %v353_v27  ;;  %v375_v29 = vmul.f32 %v371_v26, %v353_v27 }
  0x86   : > { %v436_v38 = vpop.permute.xlu2 %435 }
  0x87   : > { %v452_v45 = vmul.f32 %v446_v41, %v436_v38  ;;  %v453_v46 = vmul.f32 %v447_v42, %v436_v38 }
  0x8a   : > { %v402_v30 = vpop.permute.xlu0 %401 }
  0x8b   : > { %v358_v31 = vpop.permute.xlu1 %357  ;;  %v416_v2 = vmul.f32 %v408_v39, %v402_v30  ;;  %v417_v3 = vmul.f32 %v409_v40, %v402_v30 }
  0x8c   : > { %v376_v32 = vmul.f32 %v370_v25, %v358_v31  ;;  %v377_v33 = vmul.f32 %v371_v26, %v358_v31 }
  0x8e   : > { %v432_v53 = vpop.permute.xlu2 %431 }
  0x8f   : > { %v450_v54 = vmul.f32 %v446_v41, %v432_v53  ;;  %v451_v55 = vmul.f32 %v447_v42, %v432_v53 }
  0x94   : > { %v363_v43 = vpop.permute.xlu0 %362  ;;  %v398_v44 = vpop.permute.xlu1 %397 }
  0x95   : > { %v414_v47 = vmul.f32 %v408_v39, %v398_v44  ;;  %v415_v48 = vmul.f32 %v409_v40, %v398_v44  ;;  %v378_v5 = vmul.f32 %v370_v25, %v363_v43  ;;  %v379_v6 = vmul.f32 %v371_v26, %v363_v43 }
  0x96   : > { %v428_v13 = vpop.permute.xlu2 %427 }
  0x97   : > { %v422_v49 = vadd.f32 %v414_v47, %v376_v32  ;;  %v423_v50 = vadd.f32 %v415_v48, %v377_v33  ;;  %v448_v14 = vmul.f32 %v446_v41, %v428_v13  ;;  %v449_v15 = vmul.f32 %v447_v42, %v428_v13 }
  0x98   : > { %v424_v18 = vadd.f32 %v416_v2, %v378_v5  ;;  %v425_v19 = vadd.f32 %v417_v3, %v379_v6  ;;  %v8844_v2 = vmov 2475754826   ;;  %v8842_v5 = vmov 2131351028  }
  0x99   : > { %v460_v51 = vadd.f32 %v452_v45, %v422_v49  ;;  %v461_v52 = vadd.f32 %v453_v46, %v423_v50 }
  0x9c   : > { %v394_v56 = vpop.permute.xlu1 %393  ;;  %v348_v57 = vpop.permute.xlu0 %347 }
  0x9d   : > { %v412_v58 = vmul.f32 %v408_v39, %v394_v56  ;;  %v413_v59 = vmul.f32 %v409_v40, %v394_v56  ;;  %v372_v60 = vmul.f32 %v370_v25, %v348_v57  ;;  %v373_v61 = vmul.f32 %v371_v26, %v348_v57 }
  0x9e   : > { %v454_v25 = vmul.f32 %v446_v41, %v5281_v21  ;;  %v455_v26 = vmul.f32 %v447_v42, %v5281_v21 }
  0x9f   : > { %v420_v62 = vadd.f32 %v412_v58, %v374_v28  ;;  %v421_v63 = vadd.f32 %v413_v59, %v375_v29  ;;  %v467_v38 = vpop.permute.xlu2 %466 }
  0xa0   : > { %v462_v27 = vadd.f32 %v454_v25, %v424_v18  ;;  %v463_v28 = vadd.f32 %v455_v26, %v425_v19 }
  0xa1   : > { %v5283_v0 = vadd.f32 %v450_v54, %v420_v62  ;;  %v5285_v1 = vadd.f32 %v451_v55, %v421_v63 }
  0xa4   : > { %v390_v7 = vpop.permute.xlu1 %389  ;;  %v477_v8 = vpop.permute.xlu0 %476 }
  0xa5   : > { %v410_v9 = vmul.f32 %v408_v39, %v390_v7  ;;  %v411_v10 = vmul.f32 %v409_v40, %v390_v7  ;;  %v488_v11 = vadd.f32 %v477_v8, %v460_v51  ;;  %v489_v12 = vadd.f32 %v477_v8, %v461_v52 }
  0xa7   : > { %v418_v16 = vadd.f32 %v410_v9, %v372_v60  ;;  %v419_v17 = vadd.f32 %v411_v10, %v373_v61  ;;  %v5287_v23 = vmul.f32 30.0, %v488_v11  ;;  %v5289_v24 = vmul.f32 30.0, %v489_v12 }
  0xa8   : > { %v8840_v10 = vmov 2102212464   ;;  %v8849_v12 = vmov 683565275  }
  0xa9   : > { %v456_v20 = vadd.f32 %v448_v14, %v418_v16  ;;  %v457_v22 = vadd.f32 %v449_v15, %v419_v17  ;;  %v1123_v29 = vand.u32 2139095040, %v5287_v23  ;;  %v1278_v30 = vand.u32 2139095040, %v5289_v24 }
  0xaa   : > { %v8838_v16 = vmov 920167782  }
  0xab   : > { %v1124_v36 = vshrl.u32 %v1123_v29, 23  ;;  %v1279_v37 = vshrl.u32 %v1278_v30, 23  ;;  %v484_v40 = vadd.f32 %v467_v38, %v456_v20  ;;  %v485_v45 = vadd.f32 %v467_v38, %v457_v22 }
  0xad   : > { %v482_v31 = vpop.permute.xlu1 %481  ;;  %v4901_v42 = vadd.s32 4294967169, %v1124_v36  ;;  %v4904_v43 = vadd.s32 4294967169, %v1279_v37  ;;  %v5301_v46 = vmul.f32 30.0, %v484_v40  ;;  %v5303_v51 = vmul.f32 30.0, %v485_v45 }
  0xae   : > { %v490_v32 = vadd.f32 %v482_v31, %v462_v27  ;;  %v491_v33 = vadd.f32 %v482_v31, %v463_v28 }
  0xaf   : > { %v1130_v49 = vadd.s32 1, %v4901_v42  ;;  %v1285_v50 = vadd.s32 1, %v4904_v43  ;;  %v503_v52 = vand.u32 2139095040, %v5301_v46  ;;  %v658_v60 = vand.u32 2139095040, %v5303_v51 }
  0xb0   : > { %v5295_v34 = vmul.f32 30.0, %v490_v32  ;;  %v5297_v35 = vmul.f32 30.0, %v491_v33 }
  0xb1   : > { %vm1131_vm1 = vcmp.gt.s32.totalorder %v1130_v49, 0  ;;  %vm1286_vm2 = vcmp.gt.s32.totalorder %v1285_v50, 0  ;;  %v504_v59 = vshrl.u32 %v503_v52, 23  ;;  %v5328_v28 = vshrl.u32 %v658_v60, 23 }
  0xb2   : > { %v1433_v39 = vand.u32 2139095040, %v5295_v34  ;;  %v1588_v21 = vand.u32 2139095040, %v5297_v35  ;;  %v1430_v56 = vand.u32 2147483647, %v5295_v34  ;;  %v5308_v62 = vsel %vm1131_vm1, %v1130_v49, 0 }
  0xb3   : > { %v5310_v63 = vsel %vm1286_vm2, %v1285_v50, 0  ;;  %v5326_v27 = vadd.s32 4294967169, %v504_v59  ;;  %v5331_v29 = vand.u32 31, %v5308_v62  ;;  %vm1432_vm1 = vcmp.lt.s32.totalorder %v5295_v34, 0 }
  0xb4   : > { %v1434_v41 = vshrl.u32 %v1433_v39, 23  ;;  %v1589_v47 = vshrl.u32 %v1588_v21, 23  ;;  %v1437_v9 = vand.u32 8388607, %v1430_v56  ;;  %v5334_v31 = vand.u32 31, %v5310_v63 }
  0xb5   : > { %v472_v58 = vpop.permute.xlu1 %471 }
  0xb6   : > { %v4907_v44 = vadd.s32 4294967169, %v1434_v41  ;;  %v4910_v54 = vadd.s32 4294967169, %v1589_v47  ;;  %v486_v7 = vadd.f32 %v472_v58, %v5283_v0  ;;  %v487_v8 = vadd.f32 %v472_v58, %v5285_v1 }
  0xb7   : > { %v8836_v1 = vmov 1326507024   ;;  %v1438_v33 = vor.u32 8388608, %v1437_v9 }
  0xb8   : > { %v1440_v48 = vadd.s32 1, %v4907_v44  ;;  %v1595_v61 = vadd.s32 1, %v4910_v54  ;;  %v5336_v32 = vmul.f32 30.0, %v486_v7  ;;  %v5339_v38 = vmul.f32 30.0, %v487_v8 }
  0xba   : > { %vm1441_vm0 = vcmp.gt.s32.totalorder %v1440_v48, 0  ;;  %vm1596_vm3 = vcmp.gt.s32.totalorder %v1595_v61, 0  ;;  %v813_v60 = vand.u32 2139095040, %v5336_v32  ;;  %v968_v7 = vand.u32 2139095040, %v5339_v38 }
  0xbb   : > { %v1442_v53 = vsel %vm1441_vm0, %v1440_v48, 0  ;;  %v1597_v37 = vsel %vm1596_vm3, %v1595_v61, 0  ;;  %v5345_v48 = vshll.u32 %v1438_v33, 8 }
  0xbc   : > { %v1444_v55 = vand.u32 31, %v1442_v53  ;;  %v1443_v18 = vshrl.u32 %v1442_v53, 5  ;;  %v5342_v44 = vand.u32 31, %v1597_v37  ;;  %v5350_v59 = vshrl.u32 %v1597_v37, 5 }
  0xbd   : > { %v1480_v58 = vshrl.u32 %v5345_v48, 16 }
  0xbe   : > { %v1445_v57 = vsub.s32 32, %v1444_v55  ;;  %v1447_v13 = vshll.u32 %v8849_v12, %v1444_v55  ;;  %v1450_v14 = vshll.u32 %v8844_v2, %v1444_v55  ;;  %v1456_v15 = vshll.u32 %v8840_v10, %v1444_v55 }
  0xbf   : > { %v1453_v0 = vshll.u32 %v8842_v5, %v1444_v55  ;;  %v1459_v26 = vshll.u32 %v8838_v16, %v1444_v55  ;;  %vm1462_vm4 = vcmp.lt.s32.totalorder %v1443_v18, 1  ;;  %vm1465_vm5 = vcmp.lt.s32.totalorder %v1443_v18, 4 }
  0xc0   : > { %v1448_v3 = vshrl.u32 %v8844_v2, %v1445_v57  ;;  %v1451_v6 = vshrl.u32 %v8842_v5, %v1445_v57  ;;  %v1454_v11 = vshrl.u32 %v8840_v10, %v1445_v57  ;;  %v1457_v17 = vshrl.u32 %v8838_v16, %v1445_v57 }
  0xc1   : > { %v1460_v19 = vshrl.u32 %v8836_v1, %v1445_v57  ;;  %v1446_v39 = vshrl.u32 %v8849_v12, %v1445_v57  ;;  %vm1464_vm6 = vcmp.lt.s32.totalorder %v1443_v18, 3  ;;  %vm1463_vm7 = vcmp.lt.s32.totalorder %v1443_v18, 2 }
  0xc2   : > { %v1449_v20 = vor.u32 %v1448_v3, %v1447_v13  ;;  %v1452_v22 = vor.u32 %v1451_v6, %v1450_v14  ;;  %v1458_v25 = vor.u32 %v1457_v17, %v1456_v15  ;;  %v1455_v30 = vor.u32 %v1454_v11, %v1453_v0 }
  0xc3   : > { %v1461_v36 = vor.u32 %v1460_v19, %v1459_v26  ;;  %v1479_v57 = vand.u32 65535, %v5345_v48  ;;  %v5354_v6 = vsub.s32 32, %v5342_v44  ;;  %v1585_v15 = vand.u32 2147483647, %v5297_v35 }
  0xc4   : > { %v1470_v40 = vsel %vm1462_vm4, %v1449_v20, %v1452_v22  ;;  %v1471_v21 = vsel %vm1465_vm5, %v1458_v25, 920167782  ;;  %v1467_v41 = vsel %vm1465_vm5, %v1455_v30, 2102212464  ;;  %v1474_v43 = vsel %vm1462_vm4, %v1452_v22, %v1455_v30 }
  0xc5   : > { %v1472_v42 = vsel %vm1464_vm6, %v1455_v30, %v1471_v21  ;;  %v1475_v47 = vsel %vm1465_vm5, %v1461_v36, 1326507024  ;;  %v1466_v49 = vsel %vm1462_vm4, %v1446_v39, %v1449_v20  ;;  %v1468_v54 = vsel %vm1464_vm6, %v1452_v22, %v1467_v41 }
  0xc6   : > { %v1473_v45 = vsel %vm1463_vm7, %v1470_v40, %v1472_v42  ;;  %v1476_v50 = vsel %vm1464_vm6, %v1458_v25, %v1475_v47  ;;  %v5358_v11 = vsel %vm1463_vm7, %v1466_v49, %v1468_v54  ;;  %v1592_v42 = vand.u32 8388607, %v1585_v15 }
  0xc7   : > { %v1503_v52 = vand.u32 65535, %v1473_v45  ;;  %v1504_v53 = vshrl.u32 %v1473_v45, 16  ;;  %v1477_v55 = vsel %vm1463_vm7, %v1474_v43, %v1476_v50  ;;  %v1602_v47 = vshll.u32 %v8849_v12, %v5342_v44 }
  0xc8   : > { %v1481_v61 = vand.u32 65535, %v1477_v55  ;;  %v1482_v3 = vshrl.u32 %v1477_v55, 16  ;;  %v1606_v55 = vshrl.u32 %v8842_v5, %v5354_v6  ;;  %vm1617_vm12 = vcmp.lt.s32.totalorder %v5350_v59, 1 }
  0xc9   : > { %v1506_v8 = vmul.u32 %v1504_v53, %v1479_v57  ;;  %v1507_v9 = vmul.u32 %v1503_v52, %v1480_v58  ;;  %v1505_v0 = vmul.u32 %v1503_v52, %v1479_v57  ;;  %v1508_v19 = vmul.u32 %v1504_v53, %v1480_v58 }
  0xca   : > { %v1484_v13 = vmul.u32 %v1482_v3, %v1479_v57  ;;  %v1485_v14 = vmul.u32 %v1481_v61, %v1480_v58  ;;  %v1483_v17 = vmul.u32 %v1481_v61, %v1479_v57  ;;  %v1486_v22 = vmul.u32 %v1482_v3, %v1480_v58 }
  0xcb   : > { %v1509_v20 = vshll.u32 %v1506_v8, 16  ;;  %v1510_v26 = vshrl.u32 %v1506_v8, 16  ;;  %v1511_v30 = vshll.u32 %v1507_v9, 16  ;;  %v1512_v36 = vshrl.u32 %v1507_v9, 16 }
  0xcc   : > { %v1487_v25 = vshll.u32 %v1484_v13, 16  ;;  %v1488_v33 = vshrl.u32 %v1484_v13, 16  ;;  %v1489_v39 = vshll.u32 %v1485_v14, 16  ;;  %v1603_v52 = vshrl.u32 %v8844_v2, %v5354_v6 }
  0xcd   : > { %vm1513_vm8 = vc.u32 %v1505_v0, %v1509_v20  ;;  %v1515_v37 = vadd.s32 %v1509_v20, %v1505_v0  ;;  %v1605_v53 = vshll.u32 %v8844_v2, %v5342_v44  ;;  %v1608_v57 = vshll.u32 %v8842_v5, %v5342_v44 }
  0xce   : > { %vm1491_vm9 = vc.u32 %v1483_v17, %v1487_v25  ;;  %v1493_v18 = vadd.s32 %v1487_v25, %v1483_v17  ;;  %v1514_v40 = vsel %vm1513_vm8, 1, %v8847_v4  ;;  %v1609_v58 = vshrl.u32 %v8840_v10, %v5354_v6 }
  0xcf   : > { %v1492_v21 = vsel %vm1491_vm9, 1, %v8847_v4  ;;  %v1516_v41 = vadd.s32 %v1514_v40, %v1508_v19  ;;  %vm1517_vm10 = vc.u32 %v1515_v37, %v1511_v30  ;;  %v1490_v61 = vshrl.u32 %v1485_v14, 16 }
  0xd0   : > { %v1494_v43 = vadd.s32 %v1492_v21, %v1486_v22  ;;  %vm1495_vm11 = vc.u32 %v1493_v18, %v1489_v39  ;;  %v1518_v45 = vsel %vm1517_vm10, 1, %v8847_v4  ;;  %v1611_v8 = vshll.u32 %v8840_v10, %v5342_v44 }
  0xd1   : > { %v1496_v49 = vsel %vm1495_vm11, 1, %v8847_v4  ;;  %v1520_v50 = vadd.s32 %v1518_v45, %v1516_v41  ;;  %v1612_v9 = vshrl.u32 %v8838_v16, %v5354_v6  ;;  %v1604_v17 = vor.u32 %v1603_v52, %v1602_v47 }
  0xd2   : > { %v1498_v54 = vadd.s32 %v1496_v49, %v1494_v43  ;;  %v1607_v0 = vor.u32 %v1606_v55, %v1605_v53  ;;  %v1610_v19 = vor.u32 %v1609_v58, %v1608_v57  ;;  %v1614_v25 = vshll.u32 %v8838_v16, %v5342_v44 }
  0xd3   : > { %v1521_v3 = vadd.s32 %v1520_v50, %v1510_v26  ;;  %v1613_v22 = vor.u32 %v1612_v9, %v1611_v8  ;;  %v1615_v39 = vshrl.u32 %v8836_v1, %v5354_v6  ;;  %v814_v14 = vshrl.u32 %v813_v60, 23 }
  0xd4   : > { %v1499_v13 = vadd.s32 %v1498_v54, %v1488_v33  ;;  %v5389_v18 = vadd.s32 %v1515_v37, %v1511_v30  ;;  %v1593_v40 = vor.u32 8388608, %v1592_v42  ;;  %v1523_v33 = vmul.u32 %v5345_v48, %v5358_v11 }
  0xd5   : > { %v1522_v20 = vadd.s32 %v1521_v3, %v1512_v36  ;;  %v1616_v41 = vor.u32 %v1615_v39, %v1614_v25  ;;  %vm1618_vm14 = vcmp.lt.s32.totalorder %v5350_v59, 2  ;;  %vm1620_vm15 = vcmp.lt.s32.totalorder %v5350_v59, 4 }
  0xd6   : > { %v5387_v26 = vadd.s32 %v1499_v13, %v1490_v61  ;;  %v1625_v44 = vsel %vm1617_vm12, %v1604_v17, %v1607_v0  ;;  %vm1619_vm0 = vcmp.lt.s32.totalorder %v5350_v59, 3  ;;  %v1626_v30 = vsel %vm1620_vm15, %v1613_v22, 920167782 }
  0xd7   : > { %v1526_v21 = vadd.s32 1, %v1522_v20  ;;  %v1629_v48 = vsel %vm1617_vm12, %v1607_v0, %v1610_v19  ;;  %v1627_v36 = vsel %vm1619_vm0, %v1610_v19, %v1626_v30  ;;  %v1630_v37 = vsel %vm1620_vm15, %v1616_v41, 1326507024 }
  0xd8   : > { %vm1525_vm13 = vc.u32 %v5387_v26, %v5389_v18  ;;  %v5405_v42 = vshll.u32 %v1593_v40, 8  ;;  %v969_v43 = vshrl.u32 %v968_v7, 23  ;;  %v1601_v45 = vshrl.u32 %v8849_v12, %v5354_v6 }
  0xd9   : > { %v1527_v60 = vsel %vm1525_vm13, %v1526_v21, %v1522_v20  ;;  %v1628_v47 = vsel %vm1618_vm14, %v1625_v44, %v1627_v36  ;;  %v1631_v49 = vsel %vm1619_vm0, %v1613_v22, %v1630_v37  ;;  %v1622_v52 = vsel %vm1620_vm15, %v1610_v19, 2102212464 }
  0xda   : > { %v1528_v11 = vadd.s32 %v1527_v60, %v1523_v33  ;;  %v1632_v53 = vsel %vm1618_vm14, %v1629_v48, %v1631_v49  ;;  %v1634_v54 = vand.u32 65535, %v5405_v42  ;;  %v1635_v55 = vshrl.u32 %v5405_v42, 16 }
  0xdb   : > { %v1636_v57 = vand.u32 65535, %v1632_v53  ;;  %v1637_v7 = vshrl.u32 %v1632_v53, 16  ;;  %v1659_v58 = vshrl.u32 %v1628_v47, 16  ;;  %v5420_v6 = vshrl.u32 %v5308_v62, 5 }
  0xdc   : > { %v1529_v50 = vadd.s32 536870912, %v1528_v11  ;;  %v5423_v61 = vshrl.u32 %v5310_v63, 5  ;;  %v1658_v8 = vand.u32 65535, %v1628_v47  ;;  %v1621_v9 = vsel %vm1617_vm12, %v1601_v45, %v1604_v17 }
  0xdd   : > { %v1623_v13 = vsel %vm1619_vm0, %v1607_v0, %v1622_v52  ;;  %v1639_v19 = vmul.u32 %v1637_v7, %v1634_v54  ;;  %v1640_v20 = vmul.u32 %v1636_v57, %v1635_v55  ;;  %v5430_v22 = vsub.s32 32, %v5331_v29 }
  0xde   : > { %v1530_v3 = vshrl.u32 %v1529_v50, 30  ;;  %v5433_v25 = vsub.s32 32, %v5334_v31  ;;  %v1661_v39 = vmul.u32 %v1659_v58, %v1634_v54  ;;  %v4895_v63 = vadd.s32 4294967169, %v814_v14 }
  0xdf   : > { %v5435_v40 = vadd.s32 4294967169, %v969_v43  ;;  %v1638_v33 = vmul.u32 %v1636_v57, %v1634_v54  ;;  %v1642_v17 = vshll.u32 %v1639_v19, 16  ;;  %v5440_v0 = vsel %vm1618_vm14, %v1621_v9, %v1623_v13 }
  0xe0   : > { %v1531_v62 = vshll.u32 %v1530_v3, 30  ;;  %v1641_v41 = vmul.u32 %v1637_v7, %v1635_v55  ;;  %v1662_v44 = vmul.u32 %v1658_v8, %v1635_v55  ;;  %v1644_v60 = vshll.u32 %v1640_v20, 16 }
  0xe1   : > { %vm1646_vm2 = vc.u32 %v1638_v33, %v1642_v17  ;;  %v1648_v30 = vadd.s32 %v1642_v17, %v1638_v33  ;;  %v1664_v48 = vshll.u32 %v1661_v39, 16  ;;  %v1554_v14 = vsub.s32 4, %v1530_v3 }
  0xe2   : > { %v1532_v21 = vsub.s32 %v1528_v11, %v1531_v62  ;;  %v1647_v37 = vsel %vm1646_vm2, 1, %v8847_v4  ;;  %v1643_v43 = vshrl.u32 %v1639_v19, 16  ;;  %v1660_v47 = vmul.u32 %v1658_v8, %v1634_v54 }
  0xe3   : > { %v1649_v45 = vadd.s32 %v1647_v37, %v1641_v41  ;;  %vm1650_vm4 = vc.u32 %v1648_v30, %v1644_v60  ;;  %v1663_v49 = vmul.u32 %v1659_v58, %v1635_v55  ;;  %v1666_v50 = vshll.u32 %v1662_v44, 16 }
  0xe4   : > { %vm1533_vm3 = vcmp.lt.s32.totalorder %v1532_v21, 0  ;;  %v1534_v36 = vsub.s32 0, %v1532_v21  ;;  %v1651_v59 = vsel %vm1650_vm4, 1, %v8847_v4  ;;  %vm1668_vm5 = vc.u32 %v1660_v47, %v1664_v48 }
  0xe5   : > { %v1653_v53 = vadd.s32 %v1651_v59, %v1649_v45  ;;  %v1670_v57 = vadd.s32 %v1664_v48, %v1660_v47  ;;  %v5444_v7 = vadd.s32 1, %v4895_v63  ;;  %v1645_v9 = vshrl.u32 %v1640_v20, 16 }
  0xe6   : > { %v1535_v11 = vsel %vm1533_vm3, %v1534_v36, %v1532_v21  ;;  %v1669_v13 = vsel %vm1668_vm5, 1, %v8847_v4  ;;  %v1120_v62 = vand.u32 2147483647, %v5287_v23  ;;  %vm5450_vm7 = vcmp.le.f32.partialorder %v1430_v56, 0.7853982 }
  0xe7   : > { %v1536_v52 = vclz %v1535_v11  ;;  %v1654_v33 = vadd.s32 %v1653_v53, %v1643_v43  ;;  %v1671_v17 = vadd.s32 %v1669_v13, %v1663_v49  ;;  %vm1672_vm6 = vc.u32 %v1670_v57, %v1666_v50 }
  0xe8   : > { %v1524_v55 = vadd.s32 %v5389_v18, %v5387_v26  ;;  %v1555_v58 = vsel %vm1432_vm1, %v1554_v14, %v1530_v3  ;;  %v1673_v8 = vsel %vm1672_vm6, 1, %v8847_v4  ;;  %v1678_v20 = vmul.u32 %v5405_v42, %v5440_v0 }
  0xe9   : > { %v4908_v19 = vadd.s32 4294967294, %v1536_v52  ;;  %v5461_v63 = vadd.s32 %v1654_v33, %v1645_v9  ;;  %v1665_v41 = vshrl.u32 %v1661_v39, 16  ;;  %v1675_v60 = vadd.s32 %v1673_v8, %v1671_v17 }
  0xea   : > { %v1667_v30 = vshrl.u32 %v1662_v44, 16  ;;  %v5463_v48 = vadd.s32 %v1670_v57, %v1666_v50  ;;  %v1127_v26 = vand.u32 8388607, %v1120_v62  ;;  %v1137_v14 = vshll.u32 %v8849_v12, %v5331_v29 }
  0xeb   : > { %vm4909_vm8 = vcmp.lt.s32.totalorder %v4908_v19, 0  ;;  %v1676_v3 = vadd.s32 %v1675_v60, %v1665_v41  ;;  %v1138_v42 = vshrl.u32 %v8844_v2, %v5430_v22  ;;  %v1140_v39 = vshll.u32 %v8844_v2, %v5331_v29 }
  0xec   : > { %v1539_v56 = vsel %vm4909_vm8, 0, %v4908_v19  ;;  %v1141_v0 = vshrl.u32 %v8842_v5, %v5430_v22  ;;  %vm1680_vm9 = vc.u32 %v5461_v63, %v5463_v48  ;;  %v1143_v47 = vshll.u32 %v8842_v5, %v5331_v29 }
  0xed   : > { %v1540_v18 = vsub.s32 32, %v1539_v56  ;;  %v1544_v36 = vsub.s32 4294967266, %v1539_v56  ;;  %v1541_v37 = vshll.u32 %v1532_v21, %v1539_v56  ;;  %v1677_v45 = vadd.s32 %v1676_v3, %v1667_v30 }
  0xee   : > { %v1144_v21 = vshrl.u32 %v8840_v10, %v5430_v22  ;;  %v1146_v11 = vshll.u32 %v8840_v10, %v5331_v29  ;;  %v1147_v59 = vshrl.u32 %v8838_v16, %v5430_v22  ;;  %v5485_v53 = vor.u32 %v1141_v0, %v1140_v39 }
  0xef   : > { %v1542_v44 = vshrl.u32 %v1524_v55, %v1540_v18  ;;  %v1545_v43 = vadd.s32 127, %v1544_v36  ;;  %v1681_v52 = vadd.s32 1, %v1677_v45  ;;  %v1149_v13 = vshll.u32 %v8838_v16, %v5331_v29 }
  0xf0   : > { %v1145_v57 = vor.u32 %v1144_v21, %v1143_v47  ;;  %v1148_v9 = vor.u32 %v1147_v59, %v1146_v11  ;;  %v1150_v19 = vshrl.u32 %v8836_v1, %v5430_v22  ;;  %v5492_v33 = vadd.s32 1, %v5435_v40 }
  0xf1   : > { %v1543_v49 = vor.u32 %v1542_v44, %v1541_v37  ;;  %v1546_v50 = vshll.u32 %v1545_v43, 23  ;;  %v1557_v55 = vsel %vm5450_vm7, 0, %v1555_v58  ;;  %v1682_v8 = vsel %vm1680_vm9, %v1681_v52, %v1677_v45 }
  0xf2   : > { %v1683_v41 = vadd.s32 %v1682_v8, %v1678_v20  ;;  %v1128_v60 = vor.u32 8388608, %v1127_v26  ;;  %v1139_v56 = vor.u32 %v1138_v42, %v1137_v14  ;;  %v1151_v30 = vor.u32 %v1150_v19, %v1149_v13 }
  0xf3   : > { %v1547_v17 = vor.u32 4788187, %v1546_v50  ;;  %v1550_v29 = vcvt.s32.f32 %v1543_v49  ;;  %vm1152_vm10 = vcmp.lt.s32.totalorder %v5420_v6, 1  ;;  %vm1155_vm11 = vcmp.lt.s32.totalorder %v5420_v6, 4 }
  0xf4   : > { %v1574_v40 = vadd.s32 3, %v1557_v55  ;;  %v1684_v36 = vadd.s32 536870912, %v1683_v41  ;;  %v1161_v3 = vsel %vm1155_vm11, %v1148_v9, 920167782  ;;  %v1164_v58 = vsel %vm1152_vm10, %v5485_v53, %v1145_v57 }
  0xf5   : > { %v1548_v18 = vand.u32 2147483647, %v1547_v17  ;;  %vm821_vm12 = vcmp.gt.s32.totalorder %v5444_v7, 0  ;;  %vm1154_vm13 = vcmp.lt.s32.totalorder %v5420_v6, 3  ;;  %v1165_v26 = vsel %vm1155_vm11, %v1151_v30, 1326507024 }
  0xf6   : > { %v1685_v14 = vshrl.u32 %v1684_v36, 30  ;;  %vm1153_vm14 = vcmp.lt.s32.totalorder %v5420_v6, 2  ;;  %v1166_v37 = vsel %vm1154_vm13, %v1148_v9, %v1165_v26  ;;  %v5513_v42 = vshll.u32 %v1128_v60, 8 }
  0xf7   : > { %v1551_v20 = vmul.f32 %v1550_v29, %v1548_v18  ;;  %v1160_v0 = vsel %vm1152_vm10, %v1139_v56, %v5485_v53  ;;  %v1162_v44 = vsel %vm1154_vm13, %v1145_v57, %v1161_v3  ;;  %v1167_v43 = vsel %vm1153_vm14, %v1164_v58, %v1166_v37 }
  0xf8   : > { %v5523_v45 = vsel %vm821_vm12, %v5444_v7, 0  ;;  %v5525_v47 = vand.u32 3, %v1574_v40  ;;  %vm1587_vm15 = vcmp.lt.s32.totalorder %v5297_v35, 0  ;;  %v1686_v21 = vshll.u32 %v1685_v14, 30 }
  0xf9   : > { %v1552_v39 = vxor.u32 2147483648, %v1551_v20  ;;  %v1136_v59 = vshrl.u32 %v8849_v12, %v5430_v22  ;;  %v1169_v49 = vand.u32 65535, %v5513_v42  ;;  %v1172_v50 = vshrl.u32 %v1167_v43, 16 }
  0xfa   : > { %v5538_v7 = vsub.s32 %v1683_v41, %v1686_v21  ;;  %v5542_v9 = vsel %vm1153_vm14, %v1160_v0, %v1162_v44  ;;  %v1171_v13 = vand.u32 65535, %v1167_v43  ;;  %v1679_v22 = vadd.s32 %v5463_v48, %v5461_v63 }
  0xfb   : > { %v1553_v11 = vsel %vm1432_vm1, %v1552_v39, %v1551_v20  ;;  %v1157_v17 = vsel %vm1155_vm11, %v1145_v57, 2102212464  ;;  %v1174_v55 = vmul.u32 %v1172_v50, %v1169_v49  ;;  %vm5552_vm0 = vcmp.le.f32.partialorder %v1585_v15, 0.7853982 }
  0xfc   : > { %v5536_v52 = vsel %vm5450_vm7, %v5295_v34, %v1553_v11  ;;  %vm1688_vm1 = vcmp.lt.s32.totalorder %v5538_v7, 0  ;;  %v1689_v8 = vsub.s32 0, %v5538_v7  ;;  %v1709_v41 = vsub.s32 4, %v1685_v14 }
  0xfd   : > { %v1558_v19 = vmul.f32 %v5536_v52, %v5536_v52  ;;  %v1170_v60 = vshrl.u32 %v5513_v42, 16  ;;  %v1177_v63 = vshll.u32 %v1174_v55, 16  ;;  %v1193_v48 = vand.u32 65535, %v5542_v9 }
  0xfe   : > { %v1690_v57 = vsel %vm1688_vm1, %v1689_v8, %v5538_v7  ;;  %v1173_v29 = vmul.u32 %v1171_v13, %v1169_v49  ;;  %v1194_v15 = vshrl.u32 %v5542_v9, 16  ;;  %v1156_v20 = vsel %vm1152_vm10, %v1136_v59, %v1139_v56 }
  0xff   : > { %v1559_v30 = vmul.f32 -0.001358992, %v1558_v19  ;;  %v1566_v18 = vmul.f32 -0.00019511016, %v1558_v19  ;;  %v5561_v40 = vmul.u32 %v1171_v13, %v1170_v60  ;;  %v1691_v58 = vclz %v1690_v57 }
 0x100   : > { %v1710_v26 = vsel %vm1587_vm15, %v1709_v41, %v1685_v14  ;;  %v1158_v37 = vsel %vm1154_vm13, %v5485_v53, %v1157_v17  ;;  %v1176_v39 = vmul.u32 %v1172_v50, %v1170_v60  ;;  %vm1181_vm2 = vc.u32 %v1173_v29, %v1177_v63 }
 0x101   : > { %v1560_v36 = vadd.f32 0.041655596, %v1559_v30  ;;  %v1567_v3 = vadd.f32 0.008332121, %v1566_v18  ;;  %v4911_v43 = vadd.s32 4294967294, %v1691_v58  ;;  %v1182_v21 = vsel %vm1181_vm2, 1, %v8847_v4 }
 0x102   : > { %v1179_v11 = vshll.u32 %v5561_v40, 16  ;;  %v1183_v9 = vadd.s32 %v1177_v63, %v1173_v29  ;;  %v1195_v13 = vmul.u32 %v1193_v48, %v1169_v49  ;;  %v1196_v8 = vmul.u32 %v1194_v15, %v1169_v49 }
 0x103   : > { %v1561_v0 = vmul.f32 %v1560_v36, %v1558_v19  ;;  %v1568_v44 = vmul.f32 %v1567_v3, %v1558_v19  ;;  %vm4912_vm3 = vcmp.lt.s32.totalorder %v4911_v43, 0  ;;  %v1184_v14 = vadd.s32 %v1182_v21, %v1176_v39 }
 0x104   : > { %vm1577_vm4 = vcmp.eq.s32.totalorder %v5525_v47, 0  ;;  %vm1580_vm5 = vcmp.eq.s32.totalorder %v5525_v47, 2  ;;  %v1694_v53 = vsel %vm4912_vm3, 0, %v4911_v43  ;;  %vm1185_vm6 = vc.u32 %v1183_v9, %v1179_v11 }
 0x105   : > { %v1562_v56 = vadd.f32 -0.4999988, %v1561_v0  ;;  %v1569_v59 = vadd.f32 -0.16666654, %v1568_v44  ;;  %v1197_v50 = vmul.u32 %v1193_v48, %v1170_v60  ;;  %v1199_v17 = vshll.u32 %v1196_v8, 16 }
 0x106   : > { %vm1576_vm7 = vcmp.lt.s32.totalorder %v5525_v47, 2  ;;  %v1695_v18 = vsub.s32 32, %v1694_v53  ;;  %v1712_v49 = vsel %vm5552_vm0, 0, %v1710_v26  ;;  %vm1573_vm8 = vweird.f32 %v5295_v34 }
 0x107   : > { %v1563_v41 = vmul.f32 %v1562_v56, %v1558_v19  ;;  %v1570_v30 = vmul.f32 %v1569_v59, %v1558_v19  ;;  %v1696_v63 = vshll.u32 %v5538_v7, %v1694_v53  ;;  %v1699_v57 = vsub.s32 4294967266, %v1694_v53 }
 0x108   : > { %v1178_v29 = vshrl.u32 %v1174_v55, 16  ;;  %v1186_v36 = vsel %vm1185_vm6, 1, %v8847_v4  ;;  %v1697_v48 = vshrl.u32 %v1679_v22, %v1695_v18  ;;  %v1201_v19 = vshll.u32 %v1197_v50, 16 }
 0x109   : > { %v1564_v3 = vadd.f32 1.0, %v1563_v41  ;;  %v1571_v58 = vadd.f32 1.0, %v1570_v30  ;;  %v1188_v39 = vadd.s32 %v1186_v36, %v1184_v14  ;;  %v1700_v0 = vadd.s32 127, %v1699_v57 }
 0x10a   : > { %vm1203_vm9 = vc.u32 %v1195_v13, %v1199_v17  ;;  %v1205_v44 = vadd.s32 %v1199_v17, %v1195_v13  ;;  %v1698_v26 = vor.u32 %v1697_v48, %v1696_v63  ;;  %v1198_v56 = vmul.u32 %v1194_v15, %v1170_v60 }
 0x10b   : > { %v1572_v43 = vmul.f32 %v1571_v58, %v5536_v52  ;;  %v1581_v21 = vxor.u32 2147483648, %v1564_v3  ;;  %v1189_v11 = vadd.s32 %v1188_v39, %v1178_v29  ;;  %v1701_v9 = vshll.u32 %v1700_v0, 23 }
 0x10c   : > { %v1204_v7 = vsel %vm1203_vm9, 1, %v8847_v4  ;;  %vm1207_vm10 = vc.u32 %v1205_v44, %v1201_v19  ;;  %v1729_v59 = vadd.s32 3, %v1712_v49  ;;  %v1159_v22 = vsel %vm1153_vm14, %v1156_v20, %v1158_v37 }
 0x10d   : > { %v1578_v55 = vxor.u32 2147483648, %v1572_v43  ;;  %v1180_v14 = vshrl.u32 %v5561_v40, 16  ;;  %v1702_v53 = vor.u32 4788187, %v1701_v9  ;;  %v1200_v41 = vshrl.u32 %v1196_v8, 16 }
 0x10e   : > { %v1206_v13 = vadd.s32 %v1204_v7, %v1198_v56  ;;  %v1208_v52 = vsel %vm1207_vm10, 1, %v8847_v4  ;;  %v1582_v60 = vsel %vm1580_vm5, %v1581_v21, %v1572_v43  ;;  %v1705_v15 = vcvt.s32.f32 %v1698_v26 }
 0x10f   : > { %v1579_v17 = vsel %vm1577_vm4, %v1564_v3, %v1578_v55  ;;  %v5591_v30 = vadd.s32 %v1189_v11, %v1180_v14  ;;  %v1703_v20 = vand.u32 2147483647, %v1702_v53  ;;  %v1275_v40 = vand.u32 2147483647, %v5289_v24 }
 0x110   : > { %v1583_v6 = vsel %vm1576_vm7, %v1579_v17, %v1582_v60  ;;  %v1210_v37 = vadd.s32 %v1208_v52, %v1206_v13  ;;  %v5598_v18 = vand.u32 3, %v1729_v59  ;;  %v5600_v49 = vadd.s32 %v1205_v44, %v1201_v19 }
 0x111   : > { %v1584_v8 = vsel %vm1573_vm8, nan, %v1583_v6  ;;  %v1213_v63 = vmul.u32 %v5513_v42, %v1159_v22  ;;  %v1706_v57 = vmul.f32 %v1705_v15, %v1703_v20  ;;  %v1202_v29 = vshrl.u32 %v1197_v50, 16 }
 0x112   : > { %1793 = vmatpush.msra.mxu0 %v1584_v8  ;;  %v1211_v36 = vadd.s32 %v1210_v37, %v1200_v41  ;;  %v1293_v47 = vshrl.u32 %v8844_v2, %v5433_v25  ;;  %vm1215_vm11 = vc.u32 %v5591_v30, %v5600_v49  ;;  %v1292_v34 = vshll.u32 %v8849_v12, %v5334_v31 }
 0x113   : > { %v1296_v3 = vshrl.u32 %v8842_v5, %v5433_v25  ;;  %v1299_v58 = vshrl.u32 %v8840_v10, %v5433_v25  ;;  %vm976_vm12 = vcmp.gt.s32.totalorder %v5492_v33, 0  ;;  %v1707_v42 = vxor.u32 2147483648, %v1706_v57 }
 0x114   : > { %v1212_v50 = vadd.s32 %v1211_v36, %v1202_v29  ;;  %v1282_v48 = vand.u32 8388607, %v1275_v40  ;;  %v1295_v39 = vshll.u32 %v8844_v2, %v5334_v31  ;;  %v5618_v0 = vor.u32 %v1293_v47, %v1292_v34 }
 0x115   : > { %v1298_v19 = vshll.u32 %v8842_v5, %v5334_v31  ;;  %v1301_v44 = vshll.u32 %v8840_v10, %v5334_v31  ;;  %v1302_v43 = vshrl.u32 %v8838_v16, %v5433_v25  ;;  %v1708_v21 = vsel %vm1587_vm15, %v1707_v42, %v1706_v57 }
 0x116   : > { %v1216_v26 = vadd.s32 1, %v1212_v50  ;;  %v1304_v11 = vshll.u32 %v8838_v16, %v5334_v31  ;;  %v1305_v9 = vshrl.u32 %v8836_v1, %v5433_v25  ;;  %v1711_v56 = vsel %vm5552_vm0, %v5297_v35, %v1708_v21 }
 0x117   : > { %v5635_v7 = vor.u32 %v1296_v3, %v1295_v39  ;;  %v5637_v55 = vor.u32 %v1299_v58, %v1298_v19  ;;  %v1303_v59 = vor.u32 %v1302_v43, %v1301_v44  ;;  %v1713_v22 = vmul.f32 %v1711_v56, %v1711_v56 }
 0x118   : > { %v1217_v14 = vsel %vm1215_vm11, %v1216_v26, %v1212_v50  ;;  %v1283_v53 = vor.u32 8388608, %v1282_v48  ;;  %v1306_v41 = vor.u32 %v1305_v9, %v1304_v11  ;;  %vm1307_vm13 = vcmp.lt.s32.totalorder %v5423_v61, 1 }
 0x119   : > { %v1218_v31 = vadd.s32 %v1217_v14, %v1213_v63  ;;  %vm1309_vm14 = vcmp.lt.s32.totalorder %v5423_v61, 3  ;;  %vm1310_vm15 = vcmp.lt.s32.totalorder %v5423_v61, 4  ;;  %v1714_v54 = vmul.f32 -0.001358992, %v1713_v22 }
 0x11a   : > { %v1721_v13 = vmul.f32 -0.00019511016, %v1713_v22  ;;  %v1316_v52 = vsel %vm1310_vm15, %v1303_v59, 920167782  ;;  %v1315_v60 = vsel %vm1307_vm13, %v5618_v0, %v5635_v7  ;;  %v1319_v6 = vsel %vm1307_vm13, %v5635_v7, %v5637_v55 }
 0x11b   : > { %v1219_v17 = vadd.s32 536870912, %v1218_v31  ;;  %v1317_v15 = vsel %vm1309_vm14, %v5637_v55, %v1316_v52  ;;  %v1715_v20 = vadd.f32 0.041655596, %v1714_v54  ;;  %v1320_v8 = vsel %vm1310_vm15, %v1306_v41, 1326507024 }
 0x11c   : > { %v1722_v37 = vadd.f32 0.008332121, %v1721_v13  ;;  %vm1308_vm0 = vcmp.lt.s32.totalorder %v5423_v61, 2  ;;  %v1321_v57 = vsel %vm1309_vm14, %v1303_v59, %v1320_v8  ;;  %v5663_v29 = vshll.u32 %v1283_v53, 8 }
 0x11d   : > { %v1220_v63 = vshrl.u32 %v1219_v17, 30  ;;  %v1716_v36 = vmul.f32 %v1715_v20, %v1713_v22  ;;  %v5667_v34 = vsel %vm1308_vm0, %v1315_v60, %v1317_v15  ;;  %v1322_v3 = vsel %vm1308_vm0, %v1319_v6, %v1321_v57 }
 0x11e   : > { %v1723_v47 = vmul.f32 %v1722_v37, %v1713_v22  ;;  %v5672_v58 = vand.u32 31, %v5523_v45  ;;  %v5677_v42 = vsel %vm976_vm12, %v5492_v33, 0  ;;  %vm1122_vm1 = vcmp.lt.s32.totalorder %v5287_v23, 0 }
 0x11f   : > { %v1221_v50 = vshll.u32 %v1220_v63, 30  ;;  %v1717_v48 = vadd.f32 -0.4999988, %v1716_v36  ;;  %vm1735_vm2 = vcmp.eq.s32.totalorder %v5598_v18, 2  ;;  %v1327_v19 = vshrl.u32 %v1322_v3, 16 }
 0x120   : > { %v1724_v39 = vadd.f32 -0.16666654, %v1723_v47  ;;  %vm1732_vm3 = vcmp.eq.s32.totalorder %v5598_v18, 0  ;;  %v1324_v43 = vand.u32 65535, %v5663_v29  ;;  %v1326_v21 = vand.u32 65535, %v1322_v3 }
 0x121   : > { %v5682_v44 = vsub.s32 %v1218_v31, %v1221_v50  ;;  %v1349_v26 = vshrl.u32 %v5667_v34, 16  ;;  %v1718_v11 = vmul.f32 %v1717_v48, %v1713_v22  ;;  %vm1731_vm4 = vcmp.lt.s32.totalorder %v5598_v18, 2 }
 0x122   : > { %v1725_v33 = vmul.f32 %v1724_v39, %v1713_v22  ;;  %v1244_v9 = vsub.s32 4, %v1220_v63  ;;  %v1348_v59 = vand.u32 65535, %v5667_v34  ;;  %vm1728_vm5 = vweird.f32 %v5297_v35 }
 0x123   : > { %vm1223_vm6 = vcmp.lt.s32.totalorder %v5682_v44, 0  ;;  %v1224_v14 = vsub.s32 0, %v5682_v44  ;;  %v1325_v53 = vshrl.u32 %v5663_v29, 16  ;;  %v1329_v41 = vmul.u32 %v1327_v19, %v1324_v43 }
 0x124   : > { %v1719_v31 = vadd.f32 1.0, %v1718_v11  ;;  %v1726_v54 = vadd.f32 1.0, %v1725_v33  ;;  %v1214_v13 = vadd.s32 %v5600_v49, %v5591_v30  ;;  %v1291_v22 = vshrl.u32 %v8849_v12, %v5433_v25 }
 0x125   : > { %v1225_v52 = vsel %vm1223_vm6, %v1224_v14, %v5682_v44  ;;  %v5697_v17 = vmul.u32 %v1326_v21, %v1325_v53  ;;  %v1332_v60 = vshll.u32 %v1329_v41, 16  ;;  %v5699_v15 = vmul.u32 %v1349_v26, %v1324_v43 }
 0x126   : > { %v1727_v6 = vmul.f32 %v1726_v54, %v1711_v56  ;;  %v1736_v20 = vxor.u32 2147483648, %v1719_v31  ;;  %v1226_v37 = vclz %v1225_v52  ;;  %v1328_v8 = vmul.u32 %v1326_v21, %v1324_v43 }
 0x127   : > { %vm5703_vm7 = vcmp.le.f32.partialorder %v1120_v62, 0.7853982  ;;  %v1245_v25 = vsel %vm1122_vm1, %v1244_v9, %v1220_v63  ;;  %v1311_v30 = vsel %vm1307_vm13, %v1291_v22, %v5618_v0  ;;  %v1312_v49 = vsel %vm1310_vm15, %v5637_v55, 2102212464 }
 0x128   : > { %v1350_v56 = vmul.u32 %v1348_v59, %v1324_v43  ;;  %v1733_v36 = vxor.u32 2147483648, %v1727_v6  ;;  %v4902_v47 = vadd.s32 4294967294, %v1226_v37  ;;  %v1331_v34 = vmul.u32 %v1327_v19, %v1325_v53 }
 0x129   : > { %vm1336_vm8 = vc.u32 %v1328_v8, %v1332_v60  ;;  %v1737_v62 = vsel %vm1735_vm2, %v1736_v20, %v1727_v6  ;;  %v1334_v3 = vshll.u32 %v5697_v17, 16  ;;  %v1338_v50 = vadd.s32 %v1332_v60, %v1328_v8 }
 0x12a   : > { %v1337_v63 = vsel %vm1336_vm8, 1, %v8847_v4  ;;  %v1734_v0 = vsel %vm1732_vm3, %v1719_v31, %v1733_v36  ;;  %vm4903_vm9 = vcmp.lt.s32.totalorder %v4902_v47, 0  ;;  %v1354_v55 = vshll.u32 %v5699_v15, 16 }
 0x12b   : > { %v1339_v48 = vadd.s32 %v1337_v63, %v1331_v34  ;;  %v1738_v39 = vsel %vm1731_vm4, %v1734_v0, %v1737_v62  ;;  %v1229_v19 = vsel %vm4903_vm9, 0, %v4902_v47  ;;  %vm1340_vm10 = vc.u32 %v1338_v50, %v1334_v3 }
 0x12c   : > { %v1352_v43 = vmul.u32 %v1348_v59, %v1325_v53  ;;  %v1739_v21 = vsel %vm1728_vm5, nan, %v1738_v39  ;;  %v1230_v11 = vsub.s32 32, %v1229_v19  ;;  %v1234_v33 = vsub.s32 4294967266, %v1229_v19 }
 0x12d   : > { %v1333_v9 = vshrl.u32 %v1329_v41, 16  ;;  %1822 = vmatpush.msra.mxu1 %v1739_v21  ;;  %v1231_v14 = vshll.u32 %v5682_v44, %v1229_v19  ;;  %v1341_v31 = vsel %vm1340_vm10, 1, %v8847_v4  ;;  %v1353_v54 = vmul.u32 %v1349_v26, %v1325_v53 }
 0x12e   : > { %vm1358_vm11 = vc.u32 %v1350_v56, %v1354_v55  ;;  %v1232_v22 = vshrl.u32 %v1214_v13, %v1230_v11  ;;  %v1235_v52 = vadd.s32 127, %v1234_v33  ;;  %v1343_v18 = vadd.s32 %v1341_v31, %v1339_v48 }
 0x12f   : > { %v1359_v60 = vsel %vm1358_vm11, 1, %v8847_v4  ;;  %v1313_v35 = vsel %vm1309_vm14, %v5635_v7, %v1312_v49  ;;  %v1356_v59 = vshll.u32 %v1352_v43, 16  ;;  %v1360_v6 = vadd.s32 %v1354_v55, %v1350_v56 }
 0x130   : > { %v1361_v20 = vadd.s32 %v1359_v60, %v1353_v54  ;;  %v1233_v41 = vor.u32 %v1232_v22, %v1231_v14  ;;  %v1236_v37 = vshll.u32 %v1235_v52, 23  ;;  %v1247_v44 = vsel %vm5703_vm7, 0, %v1245_v25 }
 0x131   : > { %v1344_v8 = vadd.s32 %v1343_v18, %v1333_v9  ;;  %v5735_v26 = vshrl.u32 %v5523_v45, 5  ;;  %v5738_v53 = vsub.s32 32, %v5672_v58  ;;  %vm1362_vm12 = vc.u32 %v1360_v6, %v1356_v59 }
 0x132   : > { %v810_v13 = vand.u32 2147483647, %v5336_v32  ;;  %v5742_v7 = vand.u32 31, %v5677_v42  ;;  %v1237_v49 = vor.u32 4788187, %v1236_v37  ;;  %v1335_v56 = vshrl.u32 %v5697_v17, 16 }
 0x133   : > { %v1363_v36 = vsel %vm1362_vm12, 1, %v8847_v4  ;;  %v1264_v47 = vadd.s32 3, %v1247_v44  ;;  %v1314_v25 = vsel %vm1308_vm0, %v1311_v30, %v1313_v35  ;;  %v1355_v45 = vshrl.u32 %v5699_v15, 16 }
 0x134   : > { %v1365_v34 = vadd.s32 %v1363_v36, %v1361_v20  ;;  %v1238_v62 = vand.u32 2147483647, %v1237_v49  ;;  %v1240_v3 = vcvt.s32.f32 %v1233_v41  ;;  %v5749_v63 = vadd.s32 %v1344_v8, %v1335_v56 }
 0x135   : > { %v1357_v50 = vshrl.u32 %v1352_v43, 16  ;;  %v5751_v0 = vadd.s32 %v1360_v6, %v1356_v59  ;;  %v817_v17 = vand.u32 8388607, %v810_v13  ;;  %v831_v55 = vshrl.u32 %v8842_v5, %v5738_v53 }
 0x136   : > { %v1366_v48 = vadd.s32 %v1365_v34, %v1355_v45  ;;  %v1241_v39 = vmul.f32 %v1240_v3, %v1238_v62  ;;  %v827_v61 = vshll.u32 %v8849_v12, %v5672_v58  ;;  %v828_v15 = vshrl.u32 %v8844_v2, %v5738_v53 }
 0x137   : > { %v834_v30 = vshrl.u32 %v8840_v10, %v5738_v53  ;;  %v830_v43 = vshll.u32 %v8844_v2, %v5672_v58  ;;  %v833_v21 = vshll.u32 %v8842_v5, %v5672_v58  ;;  %v837_v11 = vshrl.u32 %v8838_v16, %v5738_v53 }
 0x138   : > { %v1367_v19 = vadd.s32 %v1366_v48, %v1357_v50  ;;  %v1242_v33 = vxor.u32 2147483648, %v1241_v39  ;;  %vm1370_vm13 = vc.u32 %v5749_v63, %v5751_v0  ;;  %v839_v9 = vshll.u32 %v8838_v16, %v5672_v58 }
 0x139   : > { %v840_v14 = vshrl.u32 %v8836_v1, %v5738_v53  ;;  %v5775_v54 = vor.u32 %v831_v55, %v830_v43  ;;  %v5777_v22 = vor.u32 %v834_v30, %v833_v21  ;;  %v836_v52 = vshll.u32 %v8840_v10, %v5672_v58 }
 0x13a   : > { %v1371_v31 = vadd.s32 1, %v1367_v19  ;;  %v1243_v18 = vsel %vm1122_vm1, %v1242_v33, %v1241_v39  ;;  %v1368_v60 = vmul.u32 %v5663_v29, %v1314_v25  ;;  %v818_v35 = vor.u32 8388608, %v817_v17 }
 0x13b   : > { %v841_v59 = vor.u32 %v840_v14, %v839_v9  ;;  %v5787_v6 = vsel %vm5703_vm7, %v5287_v23, %v1243_v18  ;;  %v5789_v41 = vor.u32 %v828_v15, %v827_v61  ;;  %v838_v37 = vor.u32 %v837_v11, %v836_v52 }
 0x13c   : > { %v1372_v20 = vsel %vm1370_vm13, %v1371_v31, %v1367_v19  ;;  %v1248_v44 = vmul.f32 %v5787_v6, %v5787_v6  ;;  %vm842_vm14 = vcmp.lt.s32.totalorder %v5735_v26, 1  ;;  %vm845_vm15 = vcmp.lt.s32.totalorder %v5735_v26, 4 }
 0x13d   : > { %v1373_v58 = vadd.s32 %v1372_v20, %v1368_v60  ;;  %v5795_v29 = vand.u32 3, %v1264_v47  ;;  %vm843_vm0 = vcmp.lt.s32.totalorder %v5735_v26, 2  ;;  %v854_v57 = vsel %vm842_vm14, %v5775_v54, %v5777_v22 }
 0x13e   : > { %v855_v8 = vsel %vm845_vm15, %v841_v59, 1326507024  ;;  %v1249_v49 = vmul.f32 -0.001358992, %v1248_v44  ;;  %v1256_v56 = vmul.f32 -0.00019511016, %v1248_v44  ;;  %v850_v47 = vsel %vm842_vm14, %v5789_v41, %v5775_v54 }
 0x13f   : > { %v1374_v36 = vadd.s32 536870912, %v1373_v58  ;;  %vm844_vm1 = vcmp.lt.s32.totalorder %v5735_v26, 3  ;;  %v851_v25 = vsel %vm845_vm15, %v838_v37, 920167782  ;;  %v5813_v34 = vshll.u32 %v818_v35, 8 }
 0x140   : > { %v856_v45 = vsel %vm844_vm1, %v838_v37, %v855_v8  ;;  %v1250_v62 = vadd.f32 0.041655596, %v1249_v49  ;;  %v1257_v3 = vadd.f32 0.008332121, %v1256_v56  ;;  %v852_v43 = vsel %vm844_vm1, %v5777_v22, %v851_v25 }
 0x141   : > { %v5815_v50 = vshrl.u32 %v1374_v36, 30  ;;  %v857_v48 = vsel %vm843_vm0, %v854_v57, %v856_v45  ;;  %v5820_v17 = vand.u32 65535, %v5813_v34  ;;  %v5823_v55 = vshrl.u32 %v5813_v34, 16 }
 0x142   : > { %v861_v39 = vand.u32 65535, %v857_v48  ;;  %v862_v61 = vshrl.u32 %v857_v48, 16  ;;  %v1251_v15 = vmul.f32 %v1250_v62, %v1248_v44  ;;  %v1258_v30 = vmul.f32 %v1257_v3, %v1248_v44 }
 0x143   : > { %v1376_v19 = vshll.u32 %v5815_v50, 30  ;;  %v5830_v21 = vadd.s32 1, %v5326_v27  ;;  %v5833_v11 = vadd.s32 4294967169, %v5328_v28  ;;  %v5840_v14 = vsub.s32 32, %v5742_v7 }
 0x144   : > { %v864_v33 = vmul.u32 %v862_v61, %v5820_v17  ;;  %v5837_v9 = vmul.u32 %v861_v39, %v5823_v55  ;;  %v1252_v31 = vadd.f32 -0.4999988, %v1251_v15  ;;  %v1259_v52 = vadd.f32 -0.16666654, %v1258_v30 }
 0x145   : > { %v5842_v18 = vsub.s32 %v1373_v58, %v1376_v19  ;;  %vm1267_vm2 = vcmp.eq.s32.totalorder %v5795_v29, 0  ;;  %v826_v27 = vshrl.u32 %v8849_v12, %v5738_v53  ;;  %v853_v28 = vsel %vm843_vm0, %v850_v47, %v852_v43 }
 0x146   : > { %v863_v60 = vmul.u32 %v861_v39, %v5820_v17  ;;  %v867_v35 = vshll.u32 %v864_v33, 16  ;;  %v1253_v59 = vmul.f32 %v1252_v31, %v1248_v44  ;;  %v1260_v20 = vmul.f32 %v1259_v52, %v1248_v44 }
 0x147   : > { %vm1266_vm3 = vcmp.lt.s32.totalorder %v5795_v29, 2  ;;  %vm1277_vm4 = vcmp.lt.s32.totalorder %v5289_v24, 0  ;;  %vm1378_vm5 = vcmp.lt.s32.totalorder %v5842_v18, 0  ;;  %v1379_v37 = vsub.s32 0, %v5842_v18 }
 0x148   : > { %vm1263_vm6 = vweird.f32 %v5287_v23  ;;  %v866_v53 = vmul.u32 %v862_v61, %v5823_v55  ;;  %v869_v58 = vshll.u32 %v5837_v9, 16  ;;  %vm871_vm7 = vc.u32 %v863_v60, %v867_v35 }
 0x149   : > { %v873_v57 = vadd.s32 %v867_v35, %v863_v60  ;;  %v1254_v8 = vadd.f32 1.0, %v1253_v59  ;;  %v1261_v49 = vadd.f32 1.0, %v1260_v20  ;;  %v1380_v44 = vsel %vm1378_vm5, %v1379_v37, %v5842_v18 }
 0x14a   : > { %v872_v56 = vsel %vm871_vm7, 1, %v8847_v4  ;;  %v1381_v36 = vclz %v1380_v44  ;;  %v847_v47 = vsel %vm845_vm15, %v5777_v22, 2102212464  ;;  %vm511_vm9 = vcmp.gt.s32.totalorder %v5830_v21, 0 }
 0x14b   : > { %v874_v25 = vadd.s32 %v872_v56, %v866_v53  ;;  %vm875_vm8 = vc.u32 %v873_v57, %v869_v58  ;;  %v1262_v45 = vmul.f32 %v1261_v49, %v5787_v6  ;;  %v1271_v62 = vxor.u32 2147483648, %v1254_v8 }
 0x14c   : > { %vm5866_vm10 = vcmp.le.f32.partialorder %v1275_v40, 0.7853982  ;;  %v876_v48 = vsel %vm875_vm8, 1, %v8847_v4  ;;  %v883_v39 = vand.u32 65535, %v853_v28  ;;  %vm1270_vm11 = vcmp.eq.s32.totalorder %v5795_v29, 2 }
 0x14d   : > { %v1369_v22 = vadd.s32 %v5751_v0, %v5749_v63  ;;  %v4905_v61 = vadd.s32 4294967294, %v1381_v36  ;;  %v1399_v15 = vsub.s32 4, %v5815_v50  ;;  %v1268_v30 = vxor.u32 2147483648, %v1262_v45 }
 0x14e   : > { %v846_v6 = vsel %vm842_vm14, %v826_v27, %v5789_v41  ;;  %v878_v40 = vadd.s32 %v876_v48, %v874_v25  ;;  %v884_v19 = vshrl.u32 %v853_v28, 16  ;;  %v1272_v43 = vsel %vm1270_vm11, %v1271_v62, %v1262_v45 }
 0x14f   : > { %vm4906_vm12 = vcmp.lt.s32.totalorder %v4905_v61, 0  ;;  %v848_v31 = vsel %vm844_vm1, %v5775_v54, %v847_v47  ;;  %v868_v52 = vshrl.u32 %v864_v33, 16  ;;  %v1269_v63 = vsel %vm1267_vm2, %v1254_v8, %v1268_v30 }
 0x150   : > { %v1384_v0 = vsel %vm4906_vm12, 0, %v4905_v61  ;;  %v886_v60 = vmul.u32 %v884_v19, %v5820_v17  ;;  %v887_v35 = vmul.u32 %v883_v39, %v5823_v55  ;;  %v1273_v41 = vsel %vm1266_vm3, %v1269_v63, %v1272_v43 }
 0x151   : > { %v1385_v27 = vsub.s32 32, %v1384_v0  ;;  %v1389_v28 = vsub.s32 4294967266, %v1384_v0  ;;  %v1400_v59 = vsel %vm1277_vm4, %v1399_v15, %v5815_v50  ;;  %v1274_v54 = vsel %vm1263_vm6, nan, %v1273_v41 }
 0x152   : > { %v879_v33 = vadd.s32 %v878_v40, %v868_v52  ;;  %v885_v20 = vmul.u32 %v883_v39, %v5820_v17  ;;  %v889_v37 = vshll.u32 %v886_v60, 16  ;;  %1794 = vmatpush.msra.mxu0 %v1274_v54  ;;  %v1386_v53 = vshll.u32 %v5842_v18, %v1384_v0 }
 0x153   : > { %v1387_v58 = vshrl.u32 %v1369_v22, %v1385_v27  ;;  %v1390_v57 = vadd.s32 127, %v1389_v28  ;;  %v870_v29 = vshrl.u32 %v5837_v9, 16  ;;  %v888_v8 = vmul.u32 %v884_v19, %v5823_v55 }
 0x154   : > { %v891_v49 = vshll.u32 %v887_v35, 16  ;;  %vm893_vm13 = vc.u32 %v885_v20, %v889_v37  ;;  %v895_v44 = vadd.s32 %v889_v37, %v885_v20  ;;  %v1402_v23 = vsel %vm5866_vm10, 0, %v1400_v59 }
 0x155   : > { %v1388_v50 = vor.u32 %v1387_v58, %v1386_v53  ;;  %v1391_v56 = vshll.u32 %v1390_v57, 23  ;;  %v894_v17 = vsel %vm893_vm13, 1, %v8847_v4  ;;  %v5899_v36 = vadd.s32 %v879_v33, %v870_v29 }
 0x156   : > { %v896_v47 = vadd.s32 %v894_v17, %v888_v8  ;;  %vm897_vm14 = vc.u32 %v895_v44, %v891_v49  ;;  %v965_v18 = vand.u32 2147483647, %v5339_v38  ;;  %v5905_v55 = vsel %vm511_vm9, %v5830_v21, 0 }
 0x157   : > { %v5908_v9 = vshrl.u32 %v5677_v42, 5  ;;  %v1392_v25 = vor.u32 4788187, %v1391_v56  ;;  %v898_v45 = vsel %vm897_vm14, 1, %v8847_v4  ;;  %v849_v62 = vsel %vm843_vm0, %v846_v6, %v848_v31 }
 0x158   : > { %v890_v48 = vshrl.u32 %v886_v60, 16  ;;  %v5913_v39 = vadd.s32 %v895_v44, %v891_v49  ;;  %v900_v22 = vadd.s32 %v898_v45, %v896_v47  ;;  %v1395_v15 = vcvt.s32.f32 %v1388_v50 }
 0x159   : > { %v1393_v61 = vand.u32 2147483647, %v1392_v25  ;;  %v1419_v30 = vadd.s32 3, %v1402_v23  ;;  %v892_v40 = vshrl.u32 %v887_v35, 16  ;;  %v972_v42 = vand.u32 8388607, %v965_v18 }
 0x15a   : > { %v901_v19 = vadd.s32 %v900_v22, %v890_v48  ;;  %vm905_vm15 = vc.u32 %v5899_v36, %v5913_v39  ;;  %v986_v21 = vshrl.u32 %v8842_v5, %v5840_v14  ;;  %v983_v6 = vshrl.u32 %v8844_v2, %v5840_v14 }
 0x15b   : > { %v1396_v26 = vmul.f32 %v1395_v15, %v1393_v61  ;;  %v985_v43 = vshll.u32 %v8844_v2, %v5742_v7  ;;  %v989_v31 = vshrl.u32 %v8840_v10, %v5840_v14  ;;  %v988_v63 = vshll.u32 %v8842_v5, %v5742_v7 }
 0x15c   : > { %v902_v52 = vadd.s32 %v901_v19, %v892_v40  ;;  %v991_v0 = vshll.u32 %v8840_v10, %v5742_v7  ;;  %v992_v60 = vshrl.u32 %v8838_v16, %v5840_v14  ;;  %v982_v41 = vshll.u32 %v8849_v12, %v5742_v7 }
 0x15d   : > { %v1397_v35 = vxor.u32 2147483648, %v1396_v26  ;;  %v994_v27 = vshll.u32 %v8838_v16, %v5742_v7  ;;  %v995_v28 = vshrl.u32 %v8836_v1, %v5840_v14  ;;  %v5939_v54 = vor.u32 %v986_v21, %v985_v43 }
 0x15e   : > { %v906_v59 = vadd.s32 1, %v902_v52  ;;  %v5941_v33 = vor.u32 %v989_v31, %v988_v63  ;;  %v993_v20 = vor.u32 %v992_v60, %v991_v0  ;;  %v903_v53 = vmul.u32 %v5813_v34, %v849_v62 }
 0x15f   : > { %v1398_v37 = vsel %vm1277_vm4, %v1397_v35, %v1396_v26  ;;  %v973_v58 = vor.u32 8388608, %v972_v42  ;;  %v996_v57 = vor.u32 %v995_v28, %v994_v27  ;;  %v5954_v8 = vor.u32 %v983_v6, %v982_v41 }
 0x160   : > { %v5949_v7 = vsel %vm5866_vm10, %v5289_v24, %v1398_v37  ;;  %v907_v29 = vsel %vm905_vm15, %v906_v59, %v902_v52  ;;  %vm1000_vm0 = vcmp.lt.s32.totalorder %v5908_v9, 4  ;;  %vm997_vm1 = vcmp.lt.s32.totalorder %v5908_v9, 1 }
 0x161   : > { %v1403_v49 = vmul.f32 %v5949_v7, %v5949_v7  ;;  %v908_v44 = vadd.s32 %v907_v29, %v903_v53  ;;  %v1006_v34 = vsel %vm1000_vm0, %v993_v20, 920167782  ;;  %v5962_v3 = vand.u32 3, %v1419_v30 }
 0x162   : > { %vm998_vm2 = vcmp.lt.s32.totalorder %v5908_v9, 2  ;;  %v1009_v50 = vsel %vm997_vm1, %v5939_v54, %v5941_v33  ;;  %v1010_v56 = vsel %vm1000_vm0, %v996_v57, 1326507024  ;;  %vm999_vm3 = vcmp.lt.s32.totalorder %v5908_v9, 3 }
 0x163   : > { %v1404_v23 = vmul.f32 -0.001358992, %v1403_v49  ;;  %v1411_v17 = vmul.f32 -0.00019511016, %v1403_v49  ;;  %v909_v47 = vadd.s32 536870912, %v908_v44  ;;  %v1005_v25 = vsel %vm997_vm1, %v5954_v8, %v5939_v54 }
 0x164   : > { %v1007_v45 = vsel %vm999_vm3, %v5941_v33, %v1006_v34  ;;  %v1011_v62 = vsel %vm999_vm3, %v993_v20, %v1010_v56  ;;  %v5981_v48 = vshll.u32 %v973_v58, 8  ;;  %v5994_v52 = vand.u32 31, %v5905_v55 }
 0x165   : > { %v1405_v22 = vadd.f32 0.041655596, %v1404_v23  ;;  %v1412_v61 = vadd.f32 0.008332121, %v1411_v17  ;;  %v910_v15 = vshrl.u32 %v909_v47, 30  ;;  %v1012_v30 = vsel %vm998_vm2, %v1009_v50, %v1011_v62 }
 0x166   : > { %v5986_v40 = vand.u32 65535, %v5981_v48  ;;  %v5989_v19 = vshrl.u32 %v5981_v48, 16  ;;  %v1016_v42 = vand.u32 65535, %v1012_v30  ;;  %v1017_v21 = vshrl.u32 %v1012_v30, 16 }
 0x167   : > { %v1406_v26 = vmul.f32 %v1405_v22, %v1403_v49  ;;  %v1413_v6 = vmul.f32 %v1412_v61, %v1403_v49  ;;  %v911_v43 = vshll.u32 %v910_v15, 30  ;;  %v1008_v31 = vsel %vm998_vm2, %v1005_v25, %v1007_v45 }
 0x168   : > { %v5997_v63 = vadd.s32 1, %v5833_v11  ;;  %v1019_v0 = vmul.u32 %v1017_v21, %v5986_v40  ;;  %v6001_v60 = vmul.u32 %v1016_v42, %v5989_v19  ;;  %vm812_vm4 = vcmp.lt.s32.totalorder %v5336_v32, 0 }
 0x169   : > { %v1407_v35 = vadd.f32 -0.4999988, %v1406_v26  ;;  %v1414_v41 = vadd.f32 -0.16666654, %v1413_v6  ;;  %v6004_v27 = vsub.s32 %v908_v44, %v911_v43  ;;  %vm1422_vm5 = vcmp.eq.s32.totalorder %v5962_v3, 0 }
 0x16a   : > { %v981_v28 = vshrl.u32 %v8849_v12, %v5840_v14  ;;  %v1018_v59 = vmul.u32 %v1016_v42, %v5986_v40  ;;  %v1022_v11 = vshll.u32 %v1019_v0, 16  ;;  %v1039_v20 = vshrl.u32 %v1008_v31, 16 }
 0x16b   : > { %v1408_v37 = vmul.f32 %v1407_v35, %v1403_v49  ;;  %v1415_v53 = vmul.f32 %v1414_v41, %v1403_v49  ;;  %vm1421_vm6 = vcmp.lt.s32.totalorder %v5962_v3, 2  ;;  %vm913_vm7 = vcmp.lt.s32.totalorder %v6004_v27, 0 }
 0x16c   : > { %v914_v58 = vsub.s32 0, %v6004_v27  ;;  %vm1418_vm8 = vweird.f32 %v5289_v24  ;;  %v1021_v57 = vmul.u32 %v1017_v21, %v5989_v19  ;;  %v1024_v29 = vshll.u32 %v6001_v60, 16 }
 0x16d   : > { %vm1026_vm9 = vc.u32 %v1018_v59, %v1022_v11  ;;  %v1028_v14 = vadd.s32 %v1022_v11, %v1018_v59  ;;  %v1409_v44 = vadd.f32 1.0, %v1408_v37  ;;  %v1416_v34 = vadd.f32 1.0, %v1415_v53 }
 0x16e   : > { %v915_v50 = vsel %vm913_vm7, %v914_v58, %v6004_v27  ;;  %v1027_v49 = vsel %vm1026_vm9, 1, %v8847_v4  ;;  %v934_v23 = vsub.s32 4, %v910_v15  ;;  %v1038_v62 = vand.u32 65535, %v1008_v31 }
 0x16f   : > { %v916_v56 = vclz %v915_v50  ;;  %v1029_v17 = vadd.s32 %v1027_v49, %v1021_v57  ;;  %vm1030_vm10 = vc.u32 %v1028_v14, %v1024_v29  ;;  %v1417_v47 = vmul.f32 %v1416_v34, %v5949_v7 }
 0x170   : > { %v1426_v25 = vxor.u32 2147483648, %v1409_v44  ;;  %v1031_v45 = vsel %vm1030_vm10, 1, %v8847_v4  ;;  %vm1425_vm11 = vcmp.eq.s32.totalorder %v5962_v3, 2  ;;  %vm6023_vm12 = vcmp.le.f32.partialorder %v810_v13, 0.7853982 }
 0x171   : > { %v904_v61 = vadd.s32 %v5913_v39, %v5899_v36  ;;  %v4896_v30 = vadd.s32 4294967294, %v916_v56  ;;  %v1001_v7 = vsel %vm997_vm1, %v981_v28, %v5954_v8  ;;  %v1423_v42 = vxor.u32 2147483648, %v1417_v47 }
 0x172   : > { %v1002_v21 = vsel %vm1000_vm0, %v5941_v33, 2102212464  ;;  %v1033_v26 = vadd.s32 %v1031_v45, %v1029_v17  ;;  %v1041_v6 = vmul.u32 %v1039_v20, %v5986_v40  ;;  %v1427_v13 = vsel %vm1425_vm11, %v1426_v25, %v1417_v47 }
 0x173   : > { %vm4897_vm13 = vcmp.lt.s32.totalorder %v4896_v30, 0  ;;  %v935_v43 = vsel %vm812_vm4, %v934_v23, %v910_v15  ;;  %v1023_v31 = vshrl.u32 %v1019_v0, 16  ;;  %v1424_v36 = vsel %vm1422_vm5, %v1409_v44, %v1423_v42 }
 0x174   : > { %v919_v39 = vsel %vm4897_vm13, 0, %v4896_v30  ;;  %v1042_v8 = vmul.u32 %v1038_v62, %v5989_v19  ;;  %v1044_v35 = vshll.u32 %v1041_v6, 16  ;;  %v1428_v41 = vsel %vm1421_vm6, %v1424_v36, %v1427_v13 }
 0x175   : > { %v920_v33 = vsub.s32 32, %v919_v39  ;;  %v924_v28 = vsub.s32 4294967266, %v919_v39  ;;  %v1040_v59 = vmul.u32 %v1038_v62, %v5986_v40  ;;  %v1429_v11 = vsel %vm1418_vm8, nan, %v1428_v41 }
 0x176   : > { %v1025_v15 = vshrl.u32 %v6001_v60, 16  ;;  %v1034_v0 = vadd.s32 %v1033_v26, %v1023_v31  ;;  %v1043_v37 = vmul.u32 %v1039_v20, %v5989_v19  ;;  %1823 = vmatpush.msra.mxu1 %v1429_v11  ;;  %v921_v53 = vshll.u32 %v6004_v27, %v919_v39 }
 0x177   : > { %v922_v58 = vshrl.u32 %v904_v61, %v920_v33  ;;  %v925_v57 = vadd.s32 127, %v924_v28  ;;  %vm1048_vm14 = vc.u32 %v1040_v59, %v1044_v35  ;;  %vm666_vm15 = vcmp.gt.s32.totalorder %v5997_v63, 0 }
 0x178   : > { %v1046_v3 = vshll.u32 %v1042_v8, 16  ;;  %v1049_v29 = vsel %vm1048_vm14, 1, %v8847_v4  ;;  %v1050_v40 = vadd.s32 %v1044_v35, %v1040_v59  ;;  %v500_v24 = vand.u32 2147483647, %v5301_v46 }
 0x179   : > { %v923_v14 = vor.u32 %v922_v58, %v921_v53  ;;  %v926_v44 = vshll.u32 %v925_v57, 23  ;;  %v1003_v19 = vsel %vm999_vm3, %v5939_v54, %v1002_v21  ;;  %v1051_v60 = vadd.s32 %v1049_v29, %v1043_v37 }
 0x17a   : > { %v6056_v27 = vsub.s32 32, %v5994_v52  ;;  %v937_v20 = vsel %vm6023_vm12, 0, %v935_v43  ;;  %v6060_v34 = vadd.s32 %v1034_v0, %v1025_v15  ;;  %vm1052_vm0 = vc.u32 %v1050_v40, %v1046_v3 }
 0x17b   : > { %v6063_v50 = vshrl.u32 %v5905_v55, 5  ;;  %v927_v49 = vor.u32 4788187, %v926_v44  ;;  %v1053_v56 = vsel %vm1052_vm0, 1, %v8847_v4  ;;  %v507_v23 = vand.u32 8388607, %v500_v24 }
 0x17c   : > { %v1004_v54 = vsel %vm998_vm2, %v1001_v7, %v1003_v19  ;;  %v1045_v17 = vshrl.u32 %v1041_v6, 16  ;;  %v6070_v47 = vadd.s32 %v1050_v40, %v1046_v3  ;;  %v1055_v25 = vadd.s32 %v1053_v56, %v1051_v60 }
 0x17d   : > { %v928_v45 = vand.u32 2147483647, %v927_v49  ;;  %v930_v62 = vcvt.s32.f32 %v923_v14  ;;  %v954_v61 = vadd.s32 3, %v937_v20  ;;  %v1047_v30 = vshrl.u32 %v1042_v8, 16 }
 0x17e   : > { %v1056_v42 = vadd.s32 %v1055_v25, %v1045_v17  ;;  %vm1060_vm1 = vc.u32 %v6060_v34, %v6070_v47  ;;  %v521_v55 = vshrl.u32 %v8842_v5, %v6056_v27  ;;  %v524_v21 = vshrl.u32 %v8840_v10, %v6056_v27 }
 0x17f   : > { %v931_v9 = vmul.f32 %v930_v62, %v928_v45  ;;  %v508_v7 = vor.u32 8388608, %v507_v23  ;;  %v526_v26 = vshll.u32 %v8840_v10, %v5994_v52  ;;  %v527_v6 = vshrl.u32 %v8838_v16, %v6056_v27 }
 0x180   : > { %v1057_v13 = vadd.s32 %v1056_v42, %v1047_v30  ;;  %v518_v43 = vshrl.u32 %v8844_v2, %v6056_v27  ;;  %v520_v31 = vshll.u32 %v8844_v2, %v5994_v52  ;;  %v523_v36 = vshll.u32 %v8842_v5, %v5994_v52 }
 0x181   : > { %v932_v39 = vxor.u32 2147483648, %v931_v9  ;;  %v528_v8 = vor.u32 %v527_v6, %v526_v26  ;;  %v529_v35 = vshll.u32 %v8838_v16, %v5994_v52  ;;  %v530_v41 = vshrl.u32 %v8836_v1, %v6056_v27 }
 0x182   : > { %v1061_v33 = vadd.s32 1, %v1057_v13  ;;  %v517_v28 = vshll.u32 %v8849_v12, %v5994_v52  ;;  %v6094_v59 = vor.u32 %v521_v55, %v520_v31  ;;  %v525_v11 = vor.u32 %v524_v21, %v523_v36 }
 0x183   : > { %v6099_v15 = vsel %vm666_vm15, %v5997_v63, 0  ;;  %v933_v0 = vsel %vm812_vm4, %v932_v39, %v931_v9  ;;  %v1058_v37 = vmul.u32 %v5981_v48, %v1004_v54  ;;  %v531_v53 = vor.u32 %v530_v41, %v529_v35 }
 0x184   : > { %v6107_v58 = vsel %vm6023_vm12, %v5336_v32, %v933_v0  ;;  %v1062_v52 = vsel %vm1060_vm1, %v1061_v33, %v1057_v13  ;;  %v6112_v57 = vor.u32 %v518_v43, %v517_v28  ;;  %vm535_vm2 = vcmp.lt.s32.totalorder %v6063_v50, 4 }
 0x185   : > { %v938_v63 = vmul.f32 %v6107_v58, %v6107_v58  ;;  %v1063_v3 = vadd.s32 %v1062_v52, %v1058_v37  ;;  %vm532_vm3 = vcmp.lt.s32.totalorder %v6063_v50, 1  ;;  %v541_v48 = vsel %vm535_vm2, %v528_v8, 920167782 }
 0x186   : > { %v6120_v22 = vand.u32 3, %v954_v61  ;;  %v544_v29 = vsel %vm532_vm3, %v6094_v59, %v525_v11  ;;  %v545_v40 = vsel %vm535_vm2, %v531_v53, 1326507024  ;;  %v6127_v14 = vshll.u32 %v508_v7, 8 }
 0x187   : > { %v939_v44 = vmul.f32 -0.001358992, %v938_v63  ;;  %v946_v19 = vmul.f32 -0.00019511016, %v938_v63  ;;  %v1064_v60 = vadd.s32 536870912, %v1063_v3  ;;  %vm534_vm4 = vcmp.lt.s32.totalorder %v6063_v50, 3 }
 0x188   : > { %vm533_vm5 = vcmp.lt.s32.totalorder %v6063_v50, 2  ;;  %v540_v20 = vsel %vm532_vm3, %v6112_v57, %v6094_v59  ;;  %v542_v49 = vsel %vm534_vm4, %v525_v11, %v541_v48  ;;  %v546_v56 = vsel %vm534_vm4, %v528_v8, %v545_v40 }
 0x189   : > { %v940_v23 = vadd.f32 0.041655596, %v939_v44  ;;  %v947_v54 = vadd.f32 0.008332121, %v946_v19  ;;  %v6139_v17 = vshrl.u32 %v1064_v60, 30  ;;  %v547_v25 = vsel %vm533_vm5, %v544_v29, %v546_v56 }
 0x18a   : > { %v549_v45 = vand.u32 65535, %v6127_v14  ;;  %v550_v62 = vshrl.u32 %v6127_v14, 16  ;;  %v551_v61 = vand.u32 65535, %v547_v25  ;;  %v552_v30 = vshrl.u32 %v547_v25, 16 }
 0x18b   : > { %v941_v42 = vmul.f32 %v940_v23, %v938_v63  ;;  %v948_v55 = vmul.f32 %v947_v54, %v938_v63  ;;  %v1066_v21 = vshll.u32 %v6139_v17, 30  ;;  %v543_v9 = vsel %vm533_vm5, %v540_v20, %v542_v49 }
 0x18c   : > { %v6149_v7 = vand.u32 31, %v6099_v15  ;;  %v516_v26 = vshrl.u32 %v8849_v12, %v6056_v27  ;;  %v554_v6 = vmul.u32 %v552_v30, %v549_v45  ;;  %v6153_v13 = vmul.u32 %v551_v61, %v550_v62 }
 0x18d   : > { %v942_v43 = vadd.f32 -0.4999988, %v941_v42  ;;  %v949_v31 = vadd.f32 -0.16666654, %v948_v55  ;;  %v6155_v36 = vsub.s32 %v1063_v3, %v1066_v21  ;;  %v537_v39 = vsel %vm535_vm2, %v525_v11, 2102212464 }
 0x18e   : > { %vm957_vm6 = vcmp.eq.s32.totalorder %v6120_v22, 0  ;;  %vm960_vm7 = vcmp.eq.s32.totalorder %v6120_v22, 2  ;;  %v553_v8 = vmul.u32 %v551_v61, %v549_v45  ;;  %v557_v35 = vshll.u32 %v554_v6, 16 }
 0x18f   : > { %v573_v41 = vand.u32 65535, %v543_v9  ;;  %v574_v33 = vshrl.u32 %v543_v9, 16  ;;  %v943_v28 = vmul.f32 %v942_v43, %v938_v63  ;;  %v950_v27 = vmul.f32 %v949_v31, %v938_v63 }
 0x190   : > { %vm956_vm8 = vcmp.lt.s32.totalorder %v6120_v22, 2  ;;  %vm1068_vm9 = vcmp.lt.s32.totalorder %v6155_v36, 0  ;;  %v1069_v0 = vsub.s32 0, %v6155_v36  ;;  %vm953_vm10 = vweird.f32 %v5336_v32 }
 0x191   : > { %v556_v37 = vmul.u32 %v552_v30, %v550_v62  ;;  %v559_v11 = vshll.u32 %v6153_v13, 16  ;;  %vm561_vm11 = vc.u32 %v553_v8, %v557_v35  ;;  %v563_v53 = vadd.s32 %v557_v35, %v553_v8 }
 0x192   : > { %v944_v52 = vadd.f32 1.0, %v943_v28  ;;  %v951_v3 = vadd.f32 1.0, %v950_v27  ;;  %v1070_v48 = vsel %vm1068_vm9, %v1069_v0, %v6155_v36  ;;  %v562_v29 = vsel %vm561_vm11, 1, %v8847_v4 }
 0x193   : > { %vm967_vm12 = vcmp.lt.s32.totalorder %v5339_v38, 0  ;;  %v1059_v63 = vadd.s32 %v6070_v47, %v6060_v34  ;;  %v1071_v40 = vclz %v1070_v48  ;;  %v564_v44 = vadd.s32 %v562_v29, %v556_v37 }
 0x194   : > { %vm565_vm13 = vc.u32 %v563_v53, %v559_v11  ;;  %v952_v19 = vmul.f32 %v951_v3, %v6107_v58  ;;  %v961_v60 = vxor.u32 2147483648, %v944_v52  ;;  %v576_v49 = vmul.u32 %v574_v33, %v549_v45 }
 0x195   : > { %v566_v20 = vsel %vm565_vm13, 1, %v8847_v4  ;;  %v4899_v56 = vadd.s32 4294967294, %v1071_v40  ;;  %v536_v23 = vsel %vm532_vm3, %v516_v26, %v6112_v57  ;;  %v538_v54 = vsel %vm534_vm4, %v6094_v59, %v537_v39 }
 0x196   : > { %v575_v25 = vmul.u32 %v573_v41, %v549_v45  ;;  %v958_v34 = vxor.u32 2147483648, %v952_v19  ;;  %v1089_v47 = vsub.s32 4, %v6139_v17  ;;  %v568_v61 = vadd.s32 %v566_v20, %v564_v44 }
 0x197   : > { %v577_v30 = vmul.u32 %v573_v41, %v550_v62  ;;  %vm4900_vm14 = vcmp.lt.s32.totalorder %v4899_v56, 0  ;;  %v558_v58 = vshrl.u32 %v554_v6, 16  ;;  %v560_v42 = vshrl.u32 %v6153_v13, 16 }
 0x198   : > { %v579_v55 = vshll.u32 %v576_v49, 16  ;;  %v959_v21 = vsel %vm957_vm6, %v944_v52, %v958_v34  ;;  %v962_v57 = vsel %vm960_vm7, %v961_v60, %v952_v19  ;;  %v1074_v9 = vsel %vm4900_vm14, 0, %v4899_v56 }
 0x199   : > { %v578_v26 = vmul.u32 %v574_v33, %v550_v62  ;;  %v963_v59 = vsel %vm956_vm8, %v959_v21, %v962_v57  ;;  %v1075_v45 = vsub.s32 32, %v1074_v9  ;;  %v1079_v43 = vsub.s32 4294967266, %v1074_v9 }
 0x19a   : > { %v569_v31 = vadd.s32 %v568_v61, %v558_v58  ;;  %v964_v6 = vsel %vm953_vm10, nan, %v963_v59  ;;  %v1076_v13 = vshll.u32 %v6155_v36, %v1074_v9  ;;  %v581_v39 = vshll.u32 %v577_v30, 16 }
 0x19b   : > { %vm583_vm15 = vc.u32 %v575_v25, %v579_v55  ;;  %1795 = vmatpush.msra.mxu0 %v964_v6  ;;  %v1077_v8 = vshrl.u32 %v1059_v63, %v1075_v45  ;;  %v1080_v35 = vadd.s32 127, %v1079_v43  ;;  %v585_v28 = vadd.s32 %v579_v55, %v575_v25 }
 0x19c   : > { %v584_v41 = vsel %vm583_vm15, 1, %v8847_v4  ;;  %v6192_v62 = vsub.s32 32, %v6149_v7  ;;  %v1090_v22 = vsel %vm967_vm12, %v1089_v47, %v6139_v17  ;;  %v655_v32 = vand.u32 2147483647, %v5303_v51 }
 0x19d   : > { %v586_v33 = vadd.s32 %v584_v41, %v578_v26  ;;  %v1078_v27 = vor.u32 %v1077_v8, %v1076_v13  ;;  %v1081_v36 = vshll.u32 %v1080_v35, 23  ;;  %v6198_v0 = vadd.s32 %v569_v31, %v560_v42 }
 0x19e   : > { %vm587_vm0 = vc.u32 %v585_v28, %v581_v39  ;;  %v6201_v37 = vshrl.u32 %v6099_v15, 5  ;;  %vm6205_vm1 = vcmp.le.f32.partialorder %v965_v18, 0.7853982  ;;  %v539_v17 = vsel %vm533_vm5, %v536_v23, %v538_v54 }
 0x19f   : > { %v588_v53 = vsel %vm587_vm0, 1, %v8847_v4  ;;  %v1082_v52 = vor.u32 4788187, %v1081_v36  ;;  %v580_v3 = vshrl.u32 %v576_v49, 16  ;;  %v6212_v48 = vadd.s32 %v585_v28, %v581_v39 }
 0x1a0   : > { %v590_v29 = vadd.s32 %v588_v53, %v586_v33  ;;  %v1085_v63 = vcvt.s32.f32 %v1078_v27  ;;  %v1092_v15 = vsel %vm6205_vm1, 0, %v1090_v22  ;;  %v582_v40 = vshrl.u32 %v577_v30, 16 }
 0x1a1   : > { %v662_v18 = vand.u32 8388607, %v655_v32  ;;  %v1083_v44 = vand.u32 2147483647, %v1082_v52  ;;  %vm595_vm2 = vc.u32 %v6198_v0, %v6212_v48  ;;  %v673_v50 = vshrl.u32 %v8844_v2, %v6192_v62 }
 0x1a2   : > { %v591_v19 = vadd.s32 %v590_v29, %v580_v3  ;;  %v675_v60 = vshll.u32 %v8844_v2, %v6149_v7  ;;  %v676_v20 = vshrl.u32 %v8842_v5, %v6192_v62  ;;  %v678_v49 = vshll.u32 %v8842_v5, %v6149_v7 }
 0x1a3   : > { %v679_v56 = vshrl.u32 %v8840_v10, %v6192_v62  ;;  %v1086_v23 = vmul.f32 %v1085_v63, %v1083_v44  ;;  %v681_v25 = vshll.u32 %v8840_v10, %v6149_v7  ;;  %v682_v34 = vshrl.u32 %v8838_v16, %v6192_v62 }
 0x1a4   : > { %v592_v54 = vadd.s32 %v591_v19, %v582_v40  ;;  %v672_v47 = vshll.u32 %v8849_v12, %v6149_v7  ;;  %v6236_v61 = vor.u32 %v676_v20, %v675_v60  ;;  %v684_v30 = vshll.u32 %v8838_v16, %v6149_v7 }
 0x1a5   : > { %v685_v58 = vshrl.u32 %v8836_v1, %v6192_v62  ;;  %v1087_v42 = vxor.u32 2147483648, %v1086_v23  ;;  %v6242_v21 = vor.u32 %v679_v56, %v678_v49  ;;  %v683_v57 = vor.u32 %v682_v34, %v681_v25 }
 0x1a6   : > { %v596_v55 = vadd.s32 1, %v592_v54  ;;  %v593_v9 = vmul.u32 %v6127_v14, %v539_v17  ;;  %v663_v26 = vor.u32 8388608, %v662_v18  ;;  %v1109_v43 = vadd.s32 3, %v1092_v15 }
 0x1a7   : > { %v686_v59 = vor.u32 %v685_v58, %v684_v30  ;;  %v1088_v45 = vsel %vm967_vm12, %v1087_v42, %v1086_v23  ;;  %v6250_v31 = vor.u32 %v673_v50, %v672_v47  ;;  %vm687_vm3 = vcmp.lt.s32.totalorder %v6201_v37, 1 }
 0x1a8   : > { %v597_v7 = vsel %vm595_vm2, %v596_v55, %v592_v54  ;;  %v1091_v6 = vsel %vm6205_vm1, %v5339_v38, %v1088_v45  ;;  %vm690_vm4 = vcmp.lt.s32.totalorder %v6201_v37, 4  ;;  %vm688_vm5 = vcmp.lt.s32.totalorder %v6201_v37, 2 }
 0x1a9   : > { %v598_v13 = vadd.s32 %v597_v7, %v593_v9  ;;  %v1093_v14 = vmul.f32 %v1091_v6, %v1091_v6  ;;  %v696_v39 = vsel %vm690_vm4, %v683_v57, 920167782  ;;  %v699_v8 = vsel %vm687_vm3, %v6236_v61, %v6242_v21 }
 0x1aa   : > { %vm689_vm6 = vcmp.lt.s32.totalorder %v6201_v37, 3  ;;  %v700_v41 = vsel %vm690_vm4, %v686_v59, 1326507024  ;;  %v6267_v28 = vshll.u32 %v663_v26, 8  ;;  %v695_v27 = vsel %vm687_vm3, %v6250_v31, %v6236_v61 }
 0x1ab   : > { %v599_v35 = vadd.s32 536870912, %v598_v13  ;;  %v1094_v22 = vmul.f32 -0.001358992, %v1093_v14  ;;  %v1101_v33 = vmul.f32 -0.00019511016, %v1093_v14  ;;  %v701_v36 = vsel %vm689_vm6, %v683_v57, %v700_v41 }
 0x1ac   : > { %v697_v17 = vsel %vm689_vm6, %v6242_v21, %v696_v39  ;;  %v702_v53 = vsel %vm688_vm5, %v699_v8, %v701_v36  ;;  %v704_v52 = vand.u32 65535, %v6267_v28  ;;  %v705_v18 = vshrl.u32 %v6267_v28, 16 }
 0x1ad   : > { %v6275_v11 = vshrl.u32 %v599_v35, 30  ;;  %v1095_v3 = vadd.f32 0.041655596, %v1094_v22  ;;  %v1102_v29 = vadd.f32 0.008332121, %v1101_v33  ;;  %v706_v63 = vand.u32 65535, %v702_v53 }
 0x1ae   : > { %v707_v15 = vshrl.u32 %v702_v53, 16  ;;  %v698_v50 = vsel %vm688_vm5, %v695_v27, %v697_v17  ;;  %v1110_v54 = vand.u32 3, %v1109_v43  ;;  %vm1108_vm9 = vweird.f32 %v5339_v38 }
 0x1af   : > { %v601_v40 = vshll.u32 %v6275_v11, 30  ;;  %v1096_v44 = vmul.f32 %v1095_v3, %v1093_v14  ;;  %v1103_v19 = vmul.f32 %v1102_v29, %v1093_v14  ;;  %v6287_v49 = vmul.u32 %v706_v63, %v705_v18 }
 0x1b0   : > { %v709_v60 = vmul.u32 %v707_v15, %v704_v52  ;;  %v708_v47 = vmul.u32 %v706_v63, %v704_v52  ;;  %v728_v30 = vand.u32 65535, %v698_v50  ;;  %v711_v55 = vmul.u32 %v707_v15, %v705_v18 }
 0x1b1   : > { %v602_v20 = vsub.s32 %v598_v13, %v601_v40  ;;  %v1097_v56 = vadd.f32 -0.4999988, %v1096_v44  ;;  %v1104_v23 = vadd.f32 -0.16666654, %v1103_v19  ;;  %v729_v57 = vshrl.u32 %v698_v50, 16 }
 0x1b2   : > { %v712_v25 = vshll.u32 %v709_v60, 16  ;;  %v714_v26 = vshll.u32 %v6287_v49, 16  ;;  %vm1111_vm10 = vcmp.lt.s32.totalorder %v1110_v54, 2  ;;  %vm1112_vm12 = vcmp.eq.s32.totalorder %v1110_v54, 0 }
 0x1b3   : > { %vm603_vm7 = vcmp.lt.s32.totalorder %v602_v20, 0  ;;  %v604_v34 = vsub.s32 0, %v602_v20  ;;  %v1098_v58 = vmul.f32 %v1097_v56, %v1093_v14  ;;  %v1105_v42 = vmul.f32 %v1104_v23, %v1093_v14 }
 0x1b4   : > { %vm716_vm8 = vc.u32 %v708_v47, %v712_v25  ;;  %v718_v59 = vadd.s32 %v712_v25, %v708_v47  ;;  %vm1115_vm13 = vcmp.eq.s32.totalorder %v1110_v54, 2  ;;  %v731_v22 = vmul.u32 %v729_v57, %v704_v52 }
 0x1b5   : > { %v605_v9 = vsel %vm603_vm7, %v604_v34, %v602_v20  ;;  %v1099_v45 = vadd.f32 1.0, %v1098_v58  ;;  %v1106_v7 = vadd.f32 1.0, %v1105_v42  ;;  %v717_v39 = vsel %vm716_vm8, 1, %v8847_v4 }
 0x1b6   : > { %v606_v13 = vclz %v605_v9  ;;  %v719_v43 = vadd.s32 %v717_v39, %v711_v55  ;;  %vm720_vm11 = vc.u32 %v718_v59, %v714_v26  ;;  %v594_v27 = vadd.s32 %v6212_v48, %v6198_v0 }
 0x1b7   : > { %v1107_v8 = vmul.f32 %v1106_v7, %v1091_v6  ;;  %v1116_v35 = vxor.u32 2147483648, %v1099_v45  ;;  %v721_v14 = vsel %vm720_vm11, 1, %v8847_v4  ;;  %v730_v36 = vmul.u32 %v728_v30, %v704_v52 }
 0x1b8   : > { %v4890_v41 = vadd.s32 4294967294, %v606_v13  ;;  %v732_v3 = vmul.u32 %v728_v30, %v705_v18  ;;  %v734_v29 = vshll.u32 %v731_v22, 16  ;;  %v723_v40 = vadd.s32 %v721_v14, %v719_v43 }
 0x1b9   : > { %v1113_v33 = vxor.u32 2147483648, %v1107_v8  ;;  %v1117_v17 = vsel %vm1115_vm13, %v1116_v35, %v1107_v8  ;;  %v713_v50 = vshrl.u32 %v709_v60, 16  ;;  %v733_v56 = vmul.u32 %v729_v57, %v705_v18 }
 0x1ba   : > { %vm4891_vm14 = vcmp.lt.s32.totalorder %v4890_v41, 0  ;;  %vm738_vm15 = vc.u32 %v730_v36, %v734_v29  ;;  %v736_v48 = vshll.u32 %v732_v3, 16  ;;  %v740_v34 = vadd.s32 %v734_v29, %v730_v36 }
 0x1bb   : > { %v609_v53 = vsel %vm4891_vm14, 0, %v4890_v41  ;;  %v1114_v63 = vsel %vm1112_vm12, %v1099_v45, %v1113_v33  ;;  %v739_v52 = vsel %vm738_vm15, 1, %v8847_v4  ;;  %v724_v58 = vadd.s32 %v723_v40, %v713_v50 }
 0x1bc   : > { %v610_v6 = vsub.s32 32, %v609_v53  ;;  %v614_v15 = vsub.s32 4294967266, %v609_v53  ;;  %v1118_v44 = vsel %vm1111_vm10, %v1114_v63, %v1117_v17  ;;  %v611_v19 = vshll.u32 %v602_v20, %v609_v53 }
 0x1bd   : > { %v1119_v23 = vsel %vm1108_vm9, nan, %v1118_v44  ;;  %v741_v42 = vadd.s32 %v739_v52, %v733_v56  ;;  %v671_v20 = vshrl.u32 %v8849_v12, %v6192_v62  ;;  %v692_v38 = vsel %vm690_vm4, %v6242_v21, 2102212464 }
 0x1be   : > { %v612_v25 = vshrl.u32 %v594_v27, %v610_v6  ;;  %v615_v0 = vadd.s32 127, %v614_v15  ;;  %1824 = vmatpush.msra.mxu1 %v1119_v23  ;;  %vm742_vm0 = vc.u32 %v740_v34, %v736_v48  ;;  %v715_v60 = vshrl.u32 %v6287_v49, 16 }
 0x1bf   : > { %v743_v54 = vsel %vm742_vm0, 1, %v8847_v4  ;;  %v691_v55 = vsel %vm687_vm3, %v671_v20, %v6250_v31  ;;  %v735_v57 = vshrl.u32 %v731_v22, 16  ;;  %v693_v62 = vsel %vm689_vm6, %v6236_v61, %v692_v38 }
 0x1c0   : > { %v613_v47 = vor.u32 %v612_v25, %v611_v19  ;;  %v616_v30 = vshll.u32 %v615_v0, 23  ;;  %v745_v9 = vadd.s32 %v743_v54, %v741_v42  ;;  %v725_v45 = vadd.s32 %v724_v58, %v715_v60 }
 0x1c1   : > { %v737_v21 = vshrl.u32 %v732_v3, 16  ;;  %v744_v39 = vadd.s32 %v740_v34, %v736_v48  ;;  %v694_v49 = vsel %vm688_vm5, %v691_v55, %v693_v62  ;;  %vm502_vm2 = vcmp.lt.s32.totalorder %v5301_v46, 0 }
 0x1c2   : > { %v617_v18 = vor.u32 4788187, %v616_v30  ;;  %v620_v59 = vcvt.s32.f32 %v613_v47  ;;  %v746_v7 = vadd.s32 %v745_v9, %v735_v57  ;;  %vm6317_vm3 = vcmp.le.f32.partialorder %v500_v24, 0.7853982 }
 0x1c3   : > { %vm750_vm1 = vc.u32 %v725_v45, %v744_v39  ;;  %v748_v41 = vmul.u32 %v6267_v28, %v694_v49  ;;  %v624_v14 = vsub.s32 4, %v6275_v11  ;;  %vm643_vm5 = vweird.f32 %v5301_v46 }
 0x1c4   : > { %v618_v26 = vand.u32 2147483647, %v617_v18  ;;  %v747_v43 = vadd.s32 %v746_v7, %v737_v21  ;;  %v749_v55 = vadd.s32 %v744_v39, %v725_v45  ;;  %vm1768_vm10 = vcmask 261120   ;;  %v1741_v39 = vld [vmem:[%s8828_s3 + $0x8] sm:$0xff] }
 0x1c5   : > { %v625_v24 = vsel %vm502_vm2, %v624_v14, %v6275_v11  ;;  %vm657_vm11 = vcmp.lt.s32.totalorder %v5303_v51, 0  ;;  %vm6340_vm12 = vcmp.le.f32.partialorder %v655_v32, 0.7853982  ;;  %vm798_vm0 = vweird.f32 %v5303_v51 }
 0x1c6   : > { %v621_v13 = vmul.f32 %v620_v59, %v618_v26  ;;  %v751_v31 = vadd.s32 1, %v747_v43  ;;  %v627_v28 = vsel %vm6317_vm3, 0, %v625_v24 }
 0x1c7   : > { %v644_v56 = vadd.s32 3, %v627_v28 }
 0x1c8   : > { %v622_v8 = vxor.u32 2147483648, %v621_v13  ;;  %v752_v22 = vsel %vm750_vm1, %v751_v31, %v747_v43 }
 0x1c9   : > { %v753_v27 = vadd.s32 %v752_v22, %v748_v41  ;;  %v645_v34 = vand.u32 3, %v644_v56 }
 0x1ca   : > { %v623_v61 = vsel %vm502_vm2, %v622_v8, %v621_v13 }
 0x1cb   : > { %v626_v37 = vsel %vm6317_vm3, %v5301_v46, %v623_v61  ;;  %v754_v53 = vadd.s32 536870912, %v753_v27  ;;  %vm647_vm6 = vcmp.eq.s32.totalorder %v645_v34, 0  ;;  %vm650_vm7 = vcmp.eq.s32.totalorder %v645_v34, 2  ;;  %v1740_v46 = vld [vmem:[%s8828_s3] sm:$0xff] }
 0x1cc   : > { %v628_v33 = vmul.f32 %v626_v37, %v626_v37  ;;  %vm646_vm9 = vcmp.lt.s32.totalorder %v645_v34, 2  ;;  %v6363_v34 = vpop.permute.xlu0 %1765 }
 0x1cd   : > { %v755_v63 = vshrl.u32 %v754_v53, 30 }
 0x1ce   : > { %v629_v36 = vmul.f32 -0.001358992, %v628_v33  ;;  %v636_v17 = vmul.f32 -0.00019511016, %v628_v33 }
 0x1cf   : > { %v756_v40 = vshll.u32 %v755_v63, 30  ;;  %v779_v41 = vsub.s32 4, %v755_v63 }
 0x1d0   : > { %v630_v3 = vadd.f32 0.041655596, %v629_v36  ;;  %v637_v29 = vadd.f32 0.008332121, %v636_v17  ;;  %v1742_v36 = vld [vmem:[%s8828_s3 + $0x10] sm:$0xff] }
 0x1d1   : > { %v757_v50 = vsub.s32 %v753_v27, %v756_v40  ;;  %v780_v27 = vsel %vm657_vm11, %v779_v41, %v755_v63  ;;  %v1743_v63 = vld [vmem:[%s8828_s3 + $0x18] sm:$0xff] }
 0x1d2   : > { %v631_v6 = vmul.f32 %v630_v3, %v628_v33  ;;  %v638_v15 = vmul.f32 %v637_v29, %v628_v33  ;;  %v782_v53 = vsel %vm6340_vm12, 0, %v780_v27 }
 0x1d3   : > { %vm758_vm4 = vcmp.lt.s32.totalorder %v757_v50, 0  ;;  %v759_v0 = vsub.s32 0, %v757_v50 }
 0x1d4   : > { %v632_v44 = vadd.f32 -0.4999988, %v631_v6  ;;  %v639_v19 = vadd.f32 -0.16666654, %v638_v15  ;;  %v799_v6 = vadd.s32 3, %v782_v53 }
 0x1d5   : > { %v760_v11 = vsel %vm758_vm4, %v759_v0, %v757_v50 }
 0x1d6   : > { %v633_v23 = vmul.f32 %v632_v44, %v628_v33  ;;  %v640_v25 = vmul.f32 %v639_v19, %v628_v33  ;;  %v761_v47 = vclz %v760_v11 }
 0x1d8   : > { %v634_v48 = vadd.f32 1.0, %v633_v23  ;;  %v641_v52 = vadd.f32 1.0, %v640_v25  ;;  %v4893_v42 = vadd.s32 4294967294, %v761_v47 }
 0x1da   : > { %v642_v30 = vmul.f32 %v641_v52, %v626_v37  ;;  %v651_v58 = vxor.u32 2147483648, %v634_v48  ;;  %vm4894_vm8 = vcmp.lt.s32.totalorder %v4893_v42, 0 }
 0x1db   : > { %v764_v60 = vsel %vm4894_vm8, 0, %v4893_v42 }
 0x1dc   : > { %v648_v20 = vxor.u32 2147483648, %v642_v30  ;;  %v652_v18 = vsel %vm650_vm7, %v651_v58, %v642_v30  ;;  %v765_v57 = vsub.s32 32, %v764_v60  ;;  %v769_v9 = vsub.s32 4294967266, %v764_v60  ;;  %v1751_v30 = vpop.permute.xlu0 %1750 }
 0x1dd   : > { %v766_v59 = vshll.u32 %v757_v50, %v764_v60  ;;  %v800_v50 = vand.u32 3, %v799_v6 }
 0x1de   : > { %v649_v38 = vsel %vm647_vm6, %v634_v48, %v648_v20  ;;  %v767_v62 = vshrl.u32 %v749_v55, %v765_v57  ;;  %v770_v21 = vadd.s32 127, %v769_v9  ;;  %v1756_v20 = vpop.permute.xlu2 %1755  ;;  %v1761_v9 = vpop.permute.xlu1 %1760 }
 0x1df   : > { %v653_v54 = vsel %vm646_vm9, %v649_v38, %v652_v18  ;;  %vm802_vm13 = vcmp.eq.s32.totalorder %v800_v50, 0  ;;  %vm805_vm14 = vcmp.eq.s32.totalorder %v800_v50, 2  ;;  %vm801_vm15 = vcmp.lt.s32.totalorder %v800_v50, 2 }
 0x1e0   : > { %v654_v26 = vsel %vm643_vm5, nan, %v653_v54  ;;  %v768_v7 = vor.u32 %v767_v62, %v766_v59  ;;  %v771_v13 = vshll.u32 %v770_v21, 23 }
 0x1e1   : > { %1796 = vmatpush.msra.mxu0 %v654_v26 }
 0x1e2   : > { %v772_v49 = vor.u32 4788187, %v771_v13  ;;  %4913 = vmatmul.msk.f32.vlgmr.msra.gmra.mxu0 %vm1768_vm10, %v1740_v46  ;;  %v775_v8 = vcvt.s32.f32 %v768_v7 }
 0x1e4   : > { %v773_v43 = vand.u32 2147483647, %v772_v49 }
 0x1e6   : > { %v776_v45 = vmul.f32 %v775_v8, %v773_v43 }
 0x1e8   : > { %v777_v31 = vxor.u32 2147483648, %v776_v45 }
 0x1ea   : > { %v778_v61 = vsel %vm657_vm11, %v777_v31, %v776_v45  ;;  %4914 = vmatmul.msk.f32.gmra.mxu0 %vm1768_vm10, %v1741_v39 }
 0x1eb   : > { %v781_v14 = vsel %vm6340_vm12, %v5303_v51, %v778_v61 }
 0x1ec   : > { %v783_v37 = vmul.f32 %v781_v14, %v781_v14 }
 0x1ee   : > { %v784_v22 = vmul.f32 -0.001358992, %v783_v37  ;;  %v791_v33 = vmul.f32 -0.00019511016, %v783_v37 }
 0x1f0   : > { %v785_v32 = vadd.f32 0.041655596, %v784_v22  ;;  %v792_v17 = vadd.f32 0.008332121, %v791_v33 }
 0x1f2   : > { %v786_v24 = vmul.f32 %v785_v32, %v783_v37  ;;  %v793_v3 = vmul.f32 %v792_v17, %v783_v37  ;;  %4915 = vmatmul.msk.f32.gmra.mxu0 %vm1768_vm10, %v1742_v36 }
 0x1f4   : > { %v787_v29 = vadd.f32 -0.4999988, %v786_v24  ;;  %v794_v28 = vadd.f32 -0.16666654, %v793_v3 }
 0x1f6   : > { %v788_v15 = vmul.f32 %v787_v29, %v783_v37  ;;  %v795_v40 = vmul.f32 %v794_v28, %v783_v37 }
 0x1f8   : > { %v789_v44 = vadd.f32 1.0, %v788_v15  ;;  %v796_v19 = vadd.f32 1.0, %v795_v40 }
 0x1fa   : > { %v797_v56 = vmul.f32 %v796_v19, %v781_v14  ;;  %v806_v23 = vxor.u32 2147483648, %v789_v44  ;;  %4916 = vmatmul.msk.f32.gmra.mxu0 %vm1768_vm10, %v1743_v63 }
 0x1fc   : > { %v803_v25 = vxor.u32 2147483648, %v797_v56  ;;  %v807_v48 = vsel %vm805_vm14, %v806_v23, %v797_v56 }
 0x1fe   : > { %v804_v0 = vsel %vm802_vm13, %v789_v44, %v803_v25 }
 0x1ff   : > { %v808_v52 = vsel %vm801_vm15, %v804_v0, %v807_v48 }
 0x200   : > { %v809_v11 = vsel %vm798_vm0, nan, %v808_v52 }
 0x201   : > { %1825 = vmatpush.msra.mxu1 %v809_v11 }
 0x202   : > { %4917 = vmatmul.msk.f32.vlgmr.msra.gmra.mxu1 %vm1768_vm10, %v1740_v46 }
 0x20a   : > { %4918 = vmatmul.msk.f32.gmra.mxu1 %vm1768_vm10, %v1741_v39 }
 0x212   : > { %4919 = vmatmul.msk.f32.gmra.mxu1 %vm1768_vm10, %v1742_v36 }
 0x21a   : > { %4920 = vmatmul.msk.f32.gmra.mxu1 %vm1768_vm10, %v1743_v63 }
 0x25f   : > { %v1798_v47 = vpop.f32.mrf.mxu0 }
 0x260   : > { %v1799_v58 = vadd.f32 %v1798_v47, %v1751_v30 }
 0x262   : > { %v6365_v42 = vmul.f32 30.0, %v1799_v58 }
 0x264   : > { %8920 = vst [vmem:[#allocation6_spill] sm:$0xff] %v6365_v42  ;;  %v1850_v18 = vand.u32 2139095040, %v6365_v42 }
 0x266   : > { %v1851_v55 = vshrl.u32 %v1850_v18, 23 }
 0x267   : > { %v1801_v51 = vpop.f32.mrf.mxu0 }
 0x268   : > { %v1802_v38 = vadd.f32 %v1801_v51, %v1756_v20  ;;  %v4921_v7 = vadd.s32 4294967169, %v1851_v55 }
 0x26a   : > { %v6368_v60 = vmul.f32 30.0, %v1802_v38  ;;  %v1857_v43 = vadd.s32 1, %v4921_v7 }
 0x26c   : > { %v2160_v54 = vand.u32 2139095040, %v6368_v60  ;;  %vm1858_vm2 = vcmp.gt.s32.totalorder %v1857_v43, 0 }
 0x26d   : > { %v1859_v33 = vsel %vm1858_vm2, %v1857_v43, 0 }
 0x26e   : > { %v2161_v57 = vshrl.u32 %v2160_v54, 23  ;;  %v6383_v17 = vand.u32 31, %v1859_v33 }
 0x26f   : > { %v1804_v59 = vpop.f32.mrf.mxu0 }
 0x270   : > { %v4927_v62 = vadd.s32 4294967169, %v2161_v57  ;;  %v1805_v21 = vadd.f32 %v1804_v59, %v1761_v9  ;;  %8924 = vst [vmem:[#allocation10_spill] sm:$0xff] %v6383_v17  ;;  %v6392_v15 = vsub.s32 32, %v6383_v17  ;;  %v1873_v23 = vshll.u32 %v8840_v10, %v6383_v17 }
 0x271   : > { %v6400_v25 = vshll.u32 %v8838_v16, %v6383_v17 }
 0x272   : > { %v6371_v13 = vmul.f32 30.0, %v1805_v21  ;;  %v2167_v46 = vadd.s32 1, %v4927_v62  ;;  %8926 = vst [vmem:[#allocation12_spill] sm:$0xff] %v6392_v15  ;;  %v1874_v48 = vshrl.u32 %v8838_v16, %v6392_v15  ;;  %v6416_v18 = vshrl.u32 %v8836_v1, %v6392_v15 }
 0x273   : > { %8927 = vst [vmem:[#allocation13_spill] sm:$0xff] %v6400_v25 }
 0x274   : > { %v2470_v49 = vand.u32 2139095040, %v6371_v13  ;;  %vm2168_vm1 = vcmp.gt.s32.totalorder %v2167_v46, 0  ;;  %8928 = vst [vmem:[#allocation14_spill] sm:$0xff] %v6416_v18 }
 0x275   : > { %v2169_v14 = vsel %vm2168_vm1, %v2167_v46, 0  ;;  %v6427_v46 = vshrl.u32 %v1859_v33, 5 }
 0x276   : > { %v2471_v8 = vshrl.u32 %v2470_v49, 23  ;;  %v6381_v36 = vand.u32 31, %v2169_v14  ;;  %v6418_v55 = vshrl.u32 %v2169_v14, 5 }
 0x277   : > { %v1807_v31 = vpop.f32.mrf.mxu0  ;;  %8931 = vst [vmem:[#allocation17_spill] sm:$0xff] %v6427_v46 }
 0x278   : > { %v1808_v61 = vadd.f32 %v1807_v31, %v6363_v34  ;;  %v4933_v41 = vadd.s32 4294967169, %v2471_v8  ;;  %8923 = vst [vmem:[#allocation9_spill] sm:$0xff] %v6381_v36  ;;  %v6389_v28 = vsub.s32 32, %v6381_v36  ;;  %v2183_v58 = vshll.u32 %v8840_v10, %v6381_v36 }
 0x279   : > { %8929 = vst [vmem:[#allocation15_spill] sm:$0xff] %v6418_v55  ;;  %v2186_v57 = vshll.u32 %v8838_v16, %v6381_v36  ;;  %vm2192_vm5 = vcmp.lt.s32.totalorder %v6418_v55, 4 }
 0x27a   : > { %v6377_v22 = vmul.f32 30.0, %v1808_v61  ;;  %v2477_v32 = vadd.s32 1, %v4933_v41  ;;  %8925 = vst [vmem:[#allocation11_spill] sm:$0xff] %v6389_v28  ;;  %v2184_v0 = vshrl.u32 %v8838_v16, %v6389_v28  ;;  %v2187_v52 = vshrl.u32 %v8836_v1, %v6389_v28 }
 0x27c   : > { %v2780_v3 = vand.u32 2139095040, %v6377_v22  ;;  %vm2478_vm3 = vcmp.gt.s32.totalorder %v2477_v32, 0  ;;  %v8835_v59 = vand.u32 2147483647, %v6377_v22  ;;  %v2188_v62 = vor.u32 %v2187_v52, %v2186_v57 }
 0x27d   : > { %v2479_v50 = vsel %vm2478_vm3, %v2477_v32, 0 }
 0x27e   : > { %v2781_v63 = vshrl.u32 %v2780_v3, 23  ;;  %v2784_v14 = vand.u32 8388607, %v8835_v59  ;;  %v6449_v33 = vsel %vm2192_vm5, %v2188_v62, 1326507024  ;;  %v6451_v32 = vshrl.u32 %v2479_v50, 5 }
 0x27f   : > { %v1827_v26 = vpop.f32.mrf.mxu1  ;;  %8935 = vst [vmem:[#allocation21_spill] sm:$0xff] %v6449_v33 }
 0x280   : > { %v1828_v35 = vadd.f32 %v1827_v26, %v1751_v30  ;;  %v4939_v56 = vadd.s32 4294967169, %v2781_v63  ;;  %vm2502_vm8 = vcmp.lt.s32.totalorder %v6451_v32, 4 }
 0x282   : > { %v6379_v27 = vmul.f32 30.0, %v1828_v35  ;;  %v2787_v51 = vadd.s32 1, %v4939_v56 }
 0x284   : > { %8922 = vst [vmem:[#allocation8_spill] sm:$0xff] %v6379_v27  ;;  %v2005_v29 = vand.u32 2139095040, %v6379_v27  ;;  %vm2788_vm4 = vcmp.gt.s32.totalorder %v2787_v51, 0 }
 0x285   : > { %v2789_v7 = vsel %vm2788_vm4, %v2787_v51, 0 }
 0x286   : > { %v2006_v19 = vshrl.u32 %v2005_v29, 23  ;;  %v2791_v43 = vand.u32 31, %v2789_v7 }
 0x287   : > { %v1830_v45 = vpop.f32.mrf.mxu1 }
 0x288   : > { %v1831_v39 = vadd.f32 %v1830_v45, %v1756_v20  ;;  %v6411_v20 = vand.u32 31, %v2479_v50  ;;  %v4924_v54 = vadd.s32 4294967169, %v2006_v19  ;;  %v6433_v45 = vor.u32 %v1874_v48, %v1873_v23 }
 0x289   : > { %v2792_v61 = vsub.s32 32, %v2791_v43  ;;  %v2785_v23 = vor.u32 8388608, %v2784_v14  ;;  %v2797_v48 = vshll.u32 %v8844_v2, %v2791_v43  ;;  %v2806_v62 = vshll.u32 %v8838_v16, %v2791_v43 }
 0x28a   : > { %v6375_v37 = vmul.f32 30.0, %v1831_v39  ;;  %v6430_v49 = vsub.s32 32, %v6411_v20  ;;  %8932 = vst [vmem:[#allocation18_spill] sm:$0xff] %v6433_v45  ;;  %v6437_v31 = vadd.s32 1, %v4924_v54  ;;  %v2496_v29 = vshll.u32 %v8838_v16, %v6411_v20 }
 0x28b   : > { %v2795_v63 = vshrl.u32 %v8844_v2, %v2792_v61  ;;  %v2798_v19 = vshrl.u32 %v8842_v5, %v2792_v61  ;;  %v2801_v50 = vshrl.u32 %v8840_v10, %v2792_v61  ;;  %v2804_v54 = vshrl.u32 %v8838_v16, %v2792_v61 }
 0x28c   : > { %8921 = vst [vmem:[#allocation7_spill] sm:$0xff] %v6375_v37  ;;  %v2315_v53 = vand.u32 2139095040, %v6375_v37  ;;  %v2494_v3 = vshrl.u32 %v8838_v16, %v6430_v49 }
 0x28d   : > { %8933 = vst [vmem:[#allocation19_spill] sm:$0xff] %v6437_v31  ;;  %v2799_v51 = vor.u32 %v2798_v19, %v2797_v48 }
 0x28e   : > { %v2316_v40 = vshrl.u32 %v2315_v53, 23 }
 0x28f   : > { %v1833_v24 = vpop.f32.mrf.mxu1 }
 0x290   : > { %v1834_v6 = vadd.f32 %v1833_v24, %v1761_v9  ;;  %v4930_v11 = vadd.s32 4294967169, %v2316_v40  ;;  %v6422_v9 = vor.u32 %v2184_v0, %v2183_v58  ;;  %v2493_v24 = vshll.u32 %v8840_v10, %v6411_v20 }
 0x291   : > { %v2497_v40 = vshrl.u32 %v8836_v1, %v6430_v49  ;;  %v2794_v0 = vshll.u32 %v8849_v12, %v2791_v43 }
 0x292   : > { %v6394_v44 = vmul.f32 30.0, %v1834_v6  ;;  %8930 = vst [vmem:[#allocation16_spill] sm:$0xff] %v6422_v9  ;;  %v2322_v21 = vadd.s32 1, %v4930_v11  ;;  %v6443_v35 = vsel %vm2192_vm5, %v6422_v9, 920167782  ;;  %v2790_v11 = vshrl.u32 %v2789_v7, 5 }
 0x293   : > { %8934 = vst [vmem:[#allocation20_spill] sm:$0xff] %v6443_v35  ;;  %v2796_v58 = vor.u32 %v2795_v63, %v2794_v0  ;;  %v2498_v14 = vor.u32 %v2497_v40, %v2496_v29  ;;  %v2793_v63 = vshrl.u32 %v8849_v12, %v2792_v61  ;;  %v8943_v9 = vmov 0  }
 0x294   : > { %v2625_v47 = vand.u32 2139095040, %v6394_v44  ;;  %vm2323_vm6 = vcmp.gt.s32.totalorder %v2322_v21, 0  ;;  %vm2809_vm11 = vcmp.lt.s32.totalorder %v2790_v11, 1  ;;  %vm2812_vm12 = vcmp.lt.s32.totalorder %v2790_v11, 4 }
 0x295   : > { %v2324_v56 = vsel %vm2323_vm6, %v2322_v21, 0  ;;  %v2807_v21 = vshrl.u32 %v8836_v1, %v2792_v61  ;;  %vm2810_vm13 = vcmp.lt.s32.totalorder %v2790_v11, 2  ;;  %vm2811_vm14 = vcmp.lt.s32.totalorder %v2790_v11, 3 }
 0x296   : > { %v2813_v48 = vsel %vm2809_vm11, %v2793_v63, %v2796_v58  ;;  %v6485_v59 = vand.u32 31, %v2324_v56 }
 0x297   : > { %v1836_v30 = vpop.f32.mrf.mxu1 }
 0x298   : > { %v1837_v38 = vadd.f32 %v1836_v30, %v6363_v34  ;;  %v2626_v34 = vshrl.u32 %v2625_v47, 23  ;;  %v2800_v30 = vshll.u32 %v8842_v5, %v2791_v43 }
 0x29a   : > { %v6424_v26 = vmul.f32 30.0, %v1837_v38  ;;  %v4936_v53 = vadd.s32 4294967169, %v2626_v34  ;;  %v2803_v38 = vshll.u32 %v8840_v10, %v2791_v43  ;;  %v2802_v57 = vor.u32 %v2801_v50, %v2800_v30 }
 0x29b   : > { %v6471_v34 = vor.u32 %v2494_v3, %v2493_v24  ;;  %v2817_v3 = vsel %vm2809_vm11, %v2796_v58, %v2799_v51 }
 0x29c   : > { %v2935_v8 = vand.u32 2139095040, %v6424_v26  ;;  %v2632_v52 = vadd.s32 1, %v4936_v53  ;;  %v2808_v53 = vor.u32 %v2807_v21, %v2806_v62  ;;  %v2814_v24 = vsel %vm2812_vm12, %v2802_v57, 2102212464 }
 0x29d   : > { %v2821_v50 = vsel %vm2809_vm11, %v2799_v51, %v2802_v57  ;;  %v6490_v58 = vsel %vm2502_vm8, %v6471_v34, 920167782 }
 0x29e   : > { %v2936_v41 = vshrl.u32 %v2935_v8, 23  ;;  %v2805_v8 = vor.u32 %v2804_v54, %v2803_v38  ;;  %vm2633_vm9 = vcmp.gt.s32.totalorder %v2632_v52, 0  ;;  %v2822_v0 = vsel %vm2812_vm12, %v2808_v53, 1326507024 }
 0x2a0   : > { %v4942_v6 = vadd.s32 4294967169, %v2936_v41  ;;  %v6474_v41 = vshrl.u32 %v2324_v56, 5  ;;  %v2818_v19 = vsel %vm2812_vm12, %v2805_v8, 920167782  ;;  %v2823_v40 = vsel %vm2811_vm14, %v2805_v8, %v2822_v0 }
 0x2a1   : > { %v2819_v29 = vsel %vm2811_vm14, %v2802_v57, %v2818_v19  ;;  %v2824_v30 = vsel %vm2810_vm13, %v2821_v50, %v2823_v40  ;;  %v6497_v57 = vsel %vm2633_vm9, %v2632_v52, 0  ;;  %v8846_v50 = vand.u32 2147483647, %v6424_v26 }
 0x2a2   : > { %v2942_v47 = vadd.s32 1, %v4942_v6  ;;  %8936 = vst [vmem:[#allocation22_spill] sm:$0xff] %v6474_v41  ;;  %v6476_v6 = vshll.u32 %v2785_v23, 8  ;;  %v2820_v23 = vsel %vm2810_vm13, %v2817_v3, %v2819_v29  ;;  %v2828_v54 = vand.u32 65535, %v2824_v30 }
 0x2a3   : > { %v2829_v62 = vshrl.u32 %v2824_v30, 16  ;;  %v2850_v21 = vand.u32 65535, %v2820_v23  ;;  %v2851_v39 = vshrl.u32 %v2820_v23, 16  ;;  %vm2779_vm12 = vcmp.lt.s32.totalorder %v6377_v22, 0 }
 0x2a4   : > { %vm2943_vm7 = vcmp.gt.s32.totalorder %v2942_v47, 0  ;;  %v2826_v61 = vand.u32 65535, %v6476_v6  ;;  %v2827_v38 = vshrl.u32 %v6476_v6, 16 }
 0x2a5   : > { %v2944_v7 = vsel %vm2943_vm7, %v2942_v47, 0  ;;  %v2815_v47 = vsel %vm2811_vm14, %v2799_v51, %v2814_v24  ;;  %v6494_v51 = vsel %vm2502_vm8, %v2498_v14, 1326507024 }
 0x2a6   : > { %v6479_v43 = vand.u32 31, %v2944_v7  ;;  %v6499_v8 = vshrl.u32 %v2944_v7, 5  ;;  %v2831_v63 = vmul.u32 %v2829_v62, %v2826_v61  ;;  %v2832_v56 = vmul.u32 %v2828_v54, %v2827_v38 }
 0x2a7   : > { %v6505_v24 = vsel %vm2810_vm13, %v2813_v48, %v2815_v47  ;;  %v2853_v3 = vmul.u32 %v2851_v39, %v2826_v61  ;;  %v2854_v19 = vmul.u32 %v2850_v21, %v2827_v38  ;;  %v2830_v0 = vmul.u32 %v2828_v54, %v2826_v61 }
 0x2a8   : > { %v6502_v53 = vsub.s32 32, %v6479_v43  ;;  %v2833_v14 = vmul.u32 %v2829_v62, %v2827_v38  ;;  %v2834_v29 = vshll.u32 %v2831_v63, 16  ;;  %v2852_v40 = vmul.u32 %v2850_v21, %v2826_v61 }
 0x2a9   : > { %v2835_v52 = vshrl.u32 %v2831_v63, 16  ;;  %v2836_v23 = vshll.u32 %v2832_v56, 16  ;;  %v2855_v7 = vmul.u32 %v2851_v39, %v2827_v38  ;;  %v2856_v30 = vshll.u32 %v2853_v3, 16 }
 0x2aa   : > { %v2837_v1 = vshrl.u32 %v2832_v56, 16  ;;  %vm2838_vm15 = vc.u32 %v2830_v0, %v2834_v29  ;;  %v2840_v16 = vadd.s32 %v2834_v29, %v2830_v0  ;;  %v2857_v10 = vshrl.u32 %v2853_v3, 16 }
 0x2ab   : > { %v2839_v11 = vsel %vm2838_vm15, 1, %v8847_v4  ;;  %v2858_v48 = vshll.u32 %v2854_v19, 16  ;;  %vm2860_vm0 = vc.u32 %v2852_v40, %v2856_v30  ;;  %v2862_v47 = vadd.s32 %v2856_v30, %v2852_v40 }
 0x2ac   : > { %v2841_v5 = vadd.s32 %v2839_v11, %v2833_v14  ;;  %vm2842_vm1 = vc.u32 %v2840_v16, %v2836_v23  ;;  %v2859_v2 = vshrl.u32 %v2854_v19, 16  ;;  %v2861_v54 = vsel %vm2860_vm0, 1, %v8847_v4 }
 0x2ad   : > { %v2843_v61 = vsel %vm2842_vm1, 1, %v8847_v4  ;;  %v2863_v62 = vadd.s32 %v2861_v54, %v2855_v7  ;;  %vm2864_vm2 = vc.u32 %v2862_v47, %v2858_v48  ;;  %v2939_v39 = vand.u32 8388607, %v8846_v50 }
 0x2ae   : > { %v2845_v38 = vadd.s32 %v2843_v61, %v2841_v5  ;;  %v2865_v21 = vsel %vm2864_vm2, 1, %v8847_v4  ;;  %v2949_v63 = vshll.u32 %v8849_v12, %v6479_v43  ;;  %v8937_v56 = vmov 2475754826  }
 0x2af   : > { %v2950_v3 = vshrl.u32 %v8937_v56, %v6502_v53  ;;  %v6518_v16 = vadd.s32 %v2862_v47, %v2858_v48  ;;  %v2867_v19 = vadd.s32 %v2865_v21, %v2863_v62  ;;  %v2952_v0 = vshll.u32 %v8937_v56, %v6479_v43 }
 0x2b0   : > { %v8938_v14 = vmov 2131351028   ;;  %v2846_v40 = vadd.s32 %v2845_v38, %v2835_v52  ;;  %v8939_v7 = vmov 2102212464   ;;  %v8940_v47 = vmov 920167782  }
 0x2b1   : > { %v2953_v29 = vshrl.u32 %v8938_v14, %v6502_v53  ;;  %v2951_v23 = vor.u32 %v2950_v3, %v2949_v63  ;;  %v2955_v5 = vshll.u32 %v8938_v14, %v6479_v43  ;;  %v2956_v30 = vshrl.u32 %v8939_v7, %v6502_v53 }
 0x2b2   : > { %v2868_v11 = vadd.s32 %v2867_v19, %v2857_v10  ;;  %v2958_v48 = vshll.u32 %v8939_v7, %v6479_v43  ;;  %v2959_v61 = vshrl.u32 %v8940_v47, %v6502_v53  ;;  %v6534_v62 = vadd.s32 %v2846_v40, %v2837_v1 }
 0x2b3   : > { %v6528_v54 = vor.u32 %v2953_v29, %v2952_v0  ;;  %v2957_v21 = vor.u32 %v2956_v30, %v2955_v5  ;;  %v2961_v52 = vshll.u32 %v8940_v47, %v6479_v43  ;;  %v8941_v38 = vmov 1326507024  }
 0x2b4   : > { %v2962_v63 = vshrl.u32 %v8941_v38, %v6502_v53  ;;  %v6541_v3 = vsub.s32 32, %v6485_v59  ;;  %v6544_v10 = vand.u32 31, %v6497_v57  ;;  %v2869_v19 = vadd.s32 %v2868_v11, %v2859_v2 }
 0x2b5   : > { %v2960_v0 = vor.u32 %v2959_v61, %v2958_v48  ;;  %vm2872_vm3 = vc.u32 %v6534_v62, %v6518_v16  ;;  %v2940_v1 = vor.u32 8388608, %v2939_v39  ;;  %vm2964_vm4 = vcmp.lt.s32.totalorder %v6499_v8, 1 }
 0x2b6   : > { %v2963_v29 = vor.u32 %v2962_v63, %v2961_v52  ;;  %v2870_v43 = vmul.u32 %v6476_v6, %v6505_v24  ;;  %v2873_v40 = vadd.s32 1, %v2869_v19  ;;  %vm2967_vm6 = vcmp.lt.s32.totalorder %v6499_v8, 4 }
 0x2b7   : > { %v2972_v5 = vsel %vm2964_vm4, %v2951_v23, %v6528_v54  ;;  %vm2966_vm7 = vcmp.lt.s32.totalorder %v6499_v8, 3  ;;  %v2973_v2 = vsel %vm2967_vm6, %v2960_v0, 920167782  ;;  %v2976_v39 = vsel %vm2964_vm4, %v6528_v54, %v2957_v21 }
 0x2b8   : > { %v2977_v30 = vsel %vm2967_vm6, %v2963_v29, 1326507024  ;;  %v2874_v6 = vsel %vm2872_vm3, %v2873_v40, %v2869_v19  ;;  %vm2965_vm9 = vcmp.lt.s32.totalorder %v6499_v8, 2  ;;  %v2974_v24 = vsel %vm2966_vm7, %v2957_v21, %v2973_v2 }
 0x2b9   : > { %v2978_v11 = vsel %vm2966_vm7, %v2960_v0, %v2977_v30  ;;  %v2875_v48 = vadd.s32 %v2874_v6, %v2870_v43  ;;  %v2975_v61 = vsel %vm2965_vm9, %v2972_v5, %v2974_v24  ;;  %v6572_v63 = vshll.u32 %v2940_v1, 8 }
 0x2ba   : > { %v2979_v52 = vsel %vm2965_vm9, %v2976_v39, %v2978_v11  ;;  %v6575_v29 = vsub.s32 32, %v6544_v10  ;;  %v3006_v50 = vshrl.u32 %v2975_v61, 16  ;;  %v6579_v2 = vshll.u32 %v8939_v7, %v6485_v59 }
 0x2bb   : > { %v2983_v19 = vand.u32 65535, %v2979_v52  ;;  %v2984_v40 = vshrl.u32 %v2979_v52, 16  ;;  %v2876_v0 = vadd.s32 536870912, %v2875_v48  ;;  %v2981_v43 = vand.u32 65535, %v6572_v63 }
 0x2bc   : > { %v2982_v5 = vshrl.u32 %v6572_v63, 16  ;;  %v6584_v30 = vshrl.u32 %v6497_v57, 5  ;;  %v6588_v1 = vshll.u32 %v8939_v7, %v6544_v10  ;;  %v3005_v39 = vand.u32 65535, %v2975_v61 }
 0x2bd   : > { %v6593_v24 = vshll.u32 %v8940_v47, %v6544_v10  ;;  %v6595_v11 = vshrl.u32 %v2876_v0, 30  ;;  %v2986_v52 = vmul.u32 %v2984_v40, %v2981_v43  ;;  %v6599_v12 = vshrl.u32 %v8940_v47, %v6575_v29 }
 0x2be   : > { %v2987_v4 = vmul.u32 %v2983_v19, %v2982_v5  ;;  %v6603_v57 = vshrl.u32 %v8941_v38, %v6575_v29  ;;  %v8942_v61 = vmov 683565275   ;;  %v3008_v6 = vmul.u32 %v3006_v50, %v2981_v43 }
 0x2bf   : > { %v2948_v27 = vshrl.u32 %v8942_v61, %v6502_v53  ;;  %v2878_v17 = vshll.u32 %v6595_v11, 30  ;;  %v2969_v0 = vsel %vm2967_vm6, %v2957_v21, 2102212464  ;;  %v2985_v15 = vmul.u32 %v2983_v19, %v2981_v43 }
 0x2c0   : > { %v2989_v42 = vshll.u32 %v2986_v52, 16  ;;  %v2988_v18 = vmul.u32 %v2984_v40, %v2982_v5  ;;  %v3009_v45 = vmul.u32 %v3005_v39, %v2982_v5  ;;  %v3011_v46 = vshll.u32 %v3008_v6, 16 }
 0x2c1   : > { %v2968_v25 = vsel %vm2964_vm4, %v2948_v27, %v2951_v23  ;;  %v6612_v37 = vsub.s32 %v2875_v48, %v2878_v17  ;;  %v2991_v41 = vshll.u32 %v2987_v4, 16  ;;  %v2970_v53 = vsel %vm2966_vm7, %v6528_v54, %v2969_v0 }
 0x2c2   : > { %vm2993_vm11 = vc.u32 %v2985_v15, %v2989_v42  ;;  %v2995_v35 = vadd.s32 %v2989_v42, %v2985_v15  ;;  %v3007_v21 = vmul.u32 %v3005_v39, %v2981_v43  ;;  %v3010_v19 = vmul.u32 %v3006_v50, %v2982_v5 }
 0x2c3   : > { %v2994_v33 = vsel %vm2993_vm11, 1, %v8943_v9  ;;  %vm2880_vm13 = vcmp.lt.s32.totalorder %v6612_v37, 0  ;;  %v2881_v27 = vsub.s32 0, %v6612_v37  ;;  %v3013_v48 = vshll.u32 %v3009_v45, 16 }
 0x2c4   : > { %v2996_v23 = vadd.s32 %v2994_v33, %v2988_v18  ;;  %vm2997_vm14 = vc.u32 %v2995_v35, %v2991_v41  ;;  %vm3015_vm15 = vc.u32 %v3007_v21, %v3011_v46  ;;  %v3017_v42 = vadd.s32 %v3011_v46, %v3007_v21 }
 0x2c5   : > { %v2998_v17 = vsel %vm2997_vm14, 1, %v8943_v9  ;;  %v2882_v15 = vsel %vm2880_vm13, %v2881_v27, %v6612_v37  ;;  %v2990_v54 = vshrl.u32 %v2986_v52, 16  ;;  %v3016_v43 = vsel %vm3015_vm15, 1, %v8943_v9 }
 0x2c6   : > { %v3000_v40 = vadd.s32 %v2998_v17, %v2996_v23  ;;  %v8944_v50 = vand.u32 2147483647, %v6377_v22  ;;  %v2871_v18 = vadd.s32 %v6518_v16, %v6534_v62  ;;  %v2883_v35 = vclz %v2882_v15 }
 0x2c7   : > { %v3018_v33 = vadd.s32 %v3016_v43, %v3010_v19  ;;  %vm3019_vm1 = vc.u32 %v3017_v42, %v3013_v48  ;;  %v2901_v46 = vsub.s32 4, %v6595_v11  ;;  %v2971_v41 = vsel %vm2965_vm9, %v2968_v25, %v2970_v53 }
 0x2c8   : > { %vm6626_vm0 = vcmp.le.f32.partialorder %v8944_v50, 0.7853982  ;;  %v3001_v39 = vadd.s32 %v3000_v40, %v2990_v54  ;;  %v3020_v52 = vsel %vm3019_vm1, 1, %v8943_v9  ;;  %v4940_v0 = vadd.s32 4294967294, %v2883_v35 }
 0x2c9   : > { %v2992_v21 = vshrl.u32 %v2987_v4, 16  ;;  %v3012_v27 = vshrl.u32 %v3008_v6, 16  ;;  %v3022_v23 = vadd.s32 %v3020_v52, %v3018_v33  ;;  %v8947_v17 = vand.u32 2147483647, %v6371_v13 }
 0x2ca   : > { %v2485_v16 = vshrl.u32 %v8937_v56, %v6430_v49  ;;  %v2488_v62 = vshrl.u32 %v8938_v14, %v6430_v49  ;;  %v2491_v8 = vshrl.u32 %v8939_v7, %v6430_v49  ;;  %vm4941_vm2 = vcmp.lt.s32.totalorder %v4940_v0, 0 }
 0x2cb   : > { %v2474_v50 = vand.u32 8388607, %v8947_v17  ;;  %v3002_v25 = vadd.s32 %v3001_v39, %v2992_v21  ;;  %v3014_v53 = vshrl.u32 %v3009_v45, 16  ;;  %v3023_v19 = vadd.s32 %v3022_v23, %v3012_v27 }
 0x2cc   : > { %v2886_v15 = vsel %vm4941_vm2, 0, %v4940_v0  ;;  %v2484_v4 = vshll.u32 %v8942_v61, %v6411_v20  ;;  %v2487_v6 = vshll.u32 %v8937_v56, %v6411_v20  ;;  %v2490_v54 = vshll.u32 %v8938_v14, %v6411_v20 }
 0x2cd   : > { %v2887_v40 = vsub.s32 32, %v2886_v15  ;;  %v2891_v43 = vsub.s32 4294967266, %v2886_v15  ;;  %v2902_v35 = vsel %vm2779_vm12, %v2901_v46, %v6595_v11  ;;  %v3021_v33 = vadd.s32 %v3017_v42, %v3013_v48 }
 0x2ce   : > { %v3024_v39 = vadd.s32 %v3023_v19, %v3014_v53  ;;  %v2486_v45 = vor.u32 %v2485_v16, %v2484_v4  ;;  %v2489_v52 = vor.u32 %v2488_v62, %v2487_v6  ;;  %v2492_v0 = vor.u32 %v2491_v8, %v2490_v54 }
 0x2cf   : > { %v2888_v21 = vshll.u32 %v6612_v37, %v2886_v15  ;;  %v2889_v27 = vshrl.u32 %v2871_v18, %v2887_v40  ;;  %v2892_v23 = vadd.s32 127, %v2891_v43  ;;  %vm3027_vm3 = vc.u32 %v3002_v25, %v3021_v33 }
 0x2d0   : > { %v2904_v17 = vsel %vm6626_vm0, 0, %v2902_v35  ;;  %v3025_v20 = vmul.u32 %v6572_v63, %v2971_v41  ;;  %v3028_v55 = vadd.s32 1, %v3024_v39  ;;  %v2475_v28 = vor.u32 8388608, %v2474_v50 }
 0x2d1   : > { %v2890_v36 = vor.u32 %v2889_v27, %v2888_v21  ;;  %v2893_v31 = vshll.u32 %v2892_v23, 23  ;;  %vm2499_vm4 = vcmp.lt.s32.totalorder %v6451_v32, 1  ;;  %vm2501_vm6 = vcmp.lt.s32.totalorder %v6451_v32, 3 }
 0x2d2   : > { %v3029_v11 = vsel %vm3027_vm3, %v3028_v55, %v3024_v39  ;;  %v2507_v37 = vsel %vm2499_vm4, %v2486_v45, %v2489_v52  ;;  %v2509_v48 = vsel %vm2501_vm6, %v2492_v0, %v6490_v58  ;;  %v2511_v42 = vsel %vm2499_vm4, %v2489_v52, %v2492_v0 }
 0x2d3   : > { %v6668_v63 = vor.u32 %v6599_v12, %v6588_v1  ;;  %v2894_v18 = vor.u32 4788187, %v2893_v31  ;;  %v2921_v46 = vadd.s32 3, %v2904_v17  ;;  %v3030_v41 = vadd.s32 %v3029_v11, %v3025_v20 }
 0x2d4   : > { %v2897_v50 = vcvt.s32.f32 %v2890_v36  ;;  %vm2500_vm7 = vcmp.lt.s32.totalorder %v6451_v32, 2  ;;  %v2513_v55 = vsel %vm2501_vm6, %v6471_v34, %v6494_v51  ;;  %v6675_v16 = vshll.u32 %v2475_v28, 8 }
 0x2d5   : > { %v2895_v58 = vand.u32 2147483647, %v2894_v18  ;;  %v3031_v62 = vadd.s32 536870912, %v3030_v41  ;;  %v2510_v8 = vsel %vm2500_vm7, %v2507_v37, %v2509_v48  ;;  %v2514_v12 = vsel %vm2500_vm7, %v2511_v42, %v2513_v55 }
 0x2d6   : > { %v2516_v31 = vand.u32 65535, %v6675_v16  ;;  %v2517_v36 = vshrl.u32 %v6675_v16, 16  ;;  %v2518_v1 = vand.u32 65535, %v2514_v12  ;;  %v2519_v53 = vshrl.u32 %v2514_v12, 16 }
 0x2d7   : > { %v2653_v19 = vor.u32 %v6603_v57, %v6593_v24  ;;  %v2898_v34 = vmul.f32 %v2897_v50, %v2895_v58  ;;  %v6685_v28 = vshrl.u32 %v3031_v62, 30  ;;  %v2504_v51 = vsel %vm2502_vm8, %v2492_v0, 2102212464 }
 0x2d8   : > { %v2483_v15 = vshrl.u32 %v8942_v61, %v6430_v49  ;;  %v2521_v4 = vmul.u32 %v2519_v53, %v2516_v31  ;;  %v6691_v6 = vmul.u32 %v2518_v1, %v2517_v36  ;;  %v2541_v54 = vshrl.u32 %v2510_v8, 16 }
 0x2d9   : > { %v2899_v40 = vxor.u32 2147483648, %v2898_v34  ;;  %v6693_v43 = vand.u32 3, %v2921_v46  ;;  %v6695_v35 = vadd.s32 %v3021_v33, %v3002_v25  ;;  %v3033_v39 = vshll.u32 %v6685_v28, 30 }
 0x2da   : > { %v2503_v21 = vsel %vm2499_vm4, %v2483_v15, %v2486_v45  ;;  %v2505_v0 = vsel %vm2501_vm6, %v2489_v52, %v2504_v51  ;;  %v2520_v27 = vmul.u32 %v2518_v1, %v2516_v31  ;;  %v2524_v23 = vshll.u32 %v2521_v4, 16 }
 0x2db   : > { %v2900_v49 = vsel %vm2779_vm12, %v2899_v40, %v2898_v34  ;;  %v6704_v17 = vsub.s32 %v3030_v41, %v3033_v39  ;;  %v2526_v20 = vshll.u32 %v6691_v6, 16  ;;  %v2540_v11 = vand.u32 65535, %v2510_v8 }
 0x2dc   : > { %v6710_v25 = vsel %vm6626_vm0, %v6377_v22, %v2900_v49  ;;  %vm2528_vm8 = vc.u32 %v2520_v27, %v2524_v23  ;;  %v2530_v33 = vadd.s32 %v2524_v23, %v2520_v27  ;;  %v6712_v45 = vmul.u32 %v2541_v54, %v2516_v31 }
 0x2dd   : > { %v2905_v52 = vmul.f32 %v6710_v25, %v6710_v25  ;;  %vm2934_vm9 = vcmp.lt.s32.totalorder %v6424_v26, 0  ;;  %vm3035_vm11 = vcmp.lt.s32.totalorder %v6704_v17, 0  ;;  %v3036_v37 = vsub.s32 0, %v6704_v17 }
 0x2de   : > { %v6721_v48 = vsel %vm2500_vm7, %v2503_v21, %v2505_v0  ;;  %v2523_v5 = vmul.u32 %v2519_v53, %v2517_v36  ;;  %v2529_v42 = vsel %vm2528_vm8, 1, %v8943_v9  ;;  %vm2532_vm12 = vc.u32 %v2530_v33, %v2526_v20 }
 0x2df   : > { %v2622_v18 = vand.u32 2147483647, %v6394_v44  ;;  %v2906_v46 = vmul.f32 -0.001358992, %v2905_v52  ;;  %v2913_v41 = vmul.f32 -0.00019511016, %v2905_v52  ;;  %v3037_v50 = vsel %vm3035_vm11, %v3036_v37, %v6704_v17 }
 0x2e0   : > { %v2544_v55 = vmul.u32 %v2540_v11, %v2517_v36  ;;  %v3038_v58 = vclz %v3037_v50  ;;  %v2531_v62 = vadd.s32 %v2529_v42, %v2523_v5  ;;  %v2533_v8 = vsel %vm2532_vm12, 1, %v8943_v9 }
 0x2e1   : > { %v2546_v12 = vshll.u32 %v6712_v45, 16  ;;  %v2907_v32 = vadd.f32 0.041655596, %v2906_v46  ;;  %v2914_v1 = vadd.f32 0.008332121, %v2913_v41  ;;  %v3056_v53 = vsub.s32 4, %v6685_v28 }
 0x2e2   : > { %v2542_v34 = vmul.u32 %v2540_v11, %v2516_v31  ;;  %v4943_v51 = vadd.s32 4294967294, %v3038_v58  ;;  %v2525_v15 = vshrl.u32 %v2521_v4, 16  ;;  %v2527_v40 = vshrl.u32 %v6691_v6, 16 }
 0x2e3   : > { %v2535_v39 = vadd.s32 %v2533_v8, %v2531_v62  ;;  %v2908_v21 = vmul.f32 %v2907_v32, %v2905_v52  ;;  %v2915_v0 = vmul.f32 %v2914_v1, %v2905_v52  ;;  %v8948_v27 = vand.u32 2147483647, %v6424_v26 }
 0x2e4   : > { %v2545_v49 = vmul.u32 %v2541_v54, %v2517_v36  ;;  %v2548_v20 = vshll.u32 %v2544_v55, 16  ;;  %vm4944_vm14 = vcmp.lt.s32.totalorder %v4943_v51, 0  ;;  %vm2550_vm15 = vc.u32 %v2542_v34, %v2546_v12 }
 0x2e5   : > { %vm6732_vm13 = vcmp.le.f32.partialorder %v8948_v27, 0.7853982  ;;  %v2536_v33 = vadd.s32 %v2535_v39, %v2525_v15  ;;  %v2552_v37 = vadd.s32 %v2546_v12, %v2542_v34  ;;  %v2909_v31 = vadd.f32 -0.4999988, %v2908_v21 }
 0x2e6   : > { %v2916_v11 = vadd.f32 -0.16666654, %v2915_v0  ;;  %v3041_v4 = vsel %vm4944_vm14, 0, %v4943_v51  ;;  %v2551_v6 = vsel %vm2550_vm15, 1, %v8943_v9  ;;  %vm2924_vm0 = vcmp.eq.s32.totalorder %v6693_v43, 0 }
 0x2e7   : > { %v3042_v5 = vsub.s32 32, %v3041_v4  ;;  %v3043_v42 = vshll.u32 %v6704_v17, %v3041_v4  ;;  %v3046_v46 = vsub.s32 4294967266, %v3041_v4  ;;  %v3057_v36 = vsel %vm2934_vm9, %v3056_v53, %v6685_v28 }
 0x2e8   : > { %v2910_v54 = vmul.f32 %v2909_v31, %v2905_v52  ;;  %v2917_v41 = vmul.f32 %v2916_v11, %v2905_v52  ;;  %vm2923_vm1 = vcmp.lt.s32.totalorder %v6693_v43, 2  ;;  %v2553_v50 = vadd.s32 %v2551_v6, %v2545_v49 }
 0x2e9   : > { %vm2554_vm2 = vc.u32 %v2552_v37, %v2548_v20  ;;  %vm2920_vm3 = vweird.f32 %v6377_v22  ;;  %v3044_v58 = vshrl.u32 %v6695_v35, %v3042_v5  ;;  %v3047_v62 = vadd.s32 127, %v3046_v46 }
 0x2ea   : > { %v6745_v8 = vadd.s32 %v2536_v33, %v2527_v40  ;;  %v2555_v17 = vsel %vm2554_vm2, 1, %v8943_v9  ;;  %v2911_v12 = vadd.f32 1.0, %v2910_v54  ;;  %v2918_v32 = vadd.f32 1.0, %v2917_v41 }
 0x2eb   : > { %v2547_v1 = vshrl.u32 %v6712_v45, 16  ;;  %v2557_v28 = vadd.s32 %v2555_v17, %v2553_v50  ;;  %vm2927_vm4 = vcmp.eq.s32.totalorder %v6693_v43, 2  ;;  %v3045_v52 = vor.u32 %v3044_v58, %v3043_v42 }
 0x2ec   : > { %v3048_v53 = vshll.u32 %v3047_v62, 23  ;;  %v6750_v34 = vadd.s32 %v2552_v37, %v2548_v20  ;;  %v2919_v51 = vmul.f32 %v2918_v32, %v6710_v25  ;;  %v2928_v15 = vxor.u32 2147483648, %v2911_v12 }
 0x2ed   : > { %v2549_v35 = vshrl.u32 %v2544_v55, 16  ;;  %v2558_v39 = vadd.s32 %v2557_v28, %v2547_v1  ;;  %v3059_v21 = vsel %vm6732_vm13, 0, %v3057_v36  ;;  %v2560_v0 = vmul.u32 %v6675_v16, %v6721_v48 }
 0x2ee   : > { %v3049_v40 = vor.u32 4788187, %v3048_v53  ;;  %vm2562_vm6 = vc.u32 %v6745_v8, %v6750_v34  ;;  %v2925_v45 = vxor.u32 2147483648, %v2919_v51  ;;  %v3052_v27 = vcvt.s32.f32 %v3045_v52 }
 0x2ef   : > { %v2559_v49 = vadd.s32 %v2558_v39, %v2549_v35  ;;  %v2629_v20 = vand.u32 8388607, %v2622_v18  ;;  %v2929_v25 = vsel %vm2927_vm4, %v2928_v15, %v2919_v51  ;;  %v2639_v33 = vshll.u32 %v8942_v61, %v6544_v10 }
 0x2f0   : > { %v3050_v55 = vand.u32 2147483647, %v3049_v40  ;;  %v2640_v37 = vshrl.u32 %v8937_v56, %v6575_v29  ;;  %v2926_v16 = vsel %vm2924_vm0, %v2911_v12, %v2925_v45  ;;  %v2642_v31 = vshll.u32 %v8937_v56, %v6544_v10 }
 0x2f1   : > { %v2563_v48 = vadd.s32 1, %v2559_v49  ;;  %v2643_v11 = vshrl.u32 %v8938_v14, %v6575_v29  ;;  %v2930_v4 = vsel %vm2923_vm1, %v2926_v16, %v2929_v25  ;;  %v2645_v5 = vshll.u32 %v8938_v14, %v6544_v10 }
 0x2f2   : > { %v3053_v6 = vmul.f32 %v3052_v27, %v3050_v55  ;;  %v2646_v42 = vshrl.u32 %v8939_v7, %v6575_v29  ;;  %v2931_v46 = vsel %vm2920_vm3, nan, %v2930_v4  ;;  %v2630_v54 = vor.u32 8388608, %v2629_v20 }
 0x2f3   : > { %v2564_v36 = vsel %vm2562_vm6, %v2563_v48, %v2559_v49  ;;  %v6784_v41 = vor.u32 %v2643_v11, %v2642_v31  ;;  %vm2657_vm7 = vcmp.lt.s32.totalorder %v6584_v30, 4  ;;  %3139 = vmatpush.msra.mxu2 %v2931_v46  ;;  %v6789_v10 = vshll.u32 %v8940_v47, %v6485_v59 }
 0x2f4   : > { %v3054_v43 = vxor.u32 2147483648, %v3053_v6  ;;  %v2565_v50 = vadd.s32 %v2564_v36, %v2560_v0  ;;  %v2647_v58 = vor.u32 %v2646_v42, %v2645_v5  ;;  %v2663_v22 = vsel %vm2657_vm7, %v6668_v63, 920167782 }
 0x2f5   : > { %v2667_v62 = vsel %vm2657_vm7, %v2653_v19, 1326507024  ;;  %v2641_v17 = vor.u32 %v2640_v37, %v2639_v33  ;;  %v3076_v32 = vadd.s32 3, %v3059_v21  ;;  %vm2654_vm8 = vcmp.lt.s32.totalorder %v6584_v30, 1 }
 0x2f6   : > { %v3055_v12 = vsel %vm2934_vm9, %v3054_v43, %v3053_v6  ;;  %v2566_v1 = vadd.s32 536870912, %v2565_v50  ;;  %vm2656_vm11 = vcmp.lt.s32.totalorder %v6584_v30, 3  ;;  %v2666_v24 = vsel %vm2654_vm8, %v6784_v41, %v2647_v58 }
 0x2f7   : > { %v6805_v28 = vsel %vm6732_vm13, %v6424_v26, %v3055_v12  ;;  %v6811_v57 = vshll.u32 %v2630_v54, 8  ;;  %vm2655_vm9 = vcmp.lt.s32.totalorder %v6584_v30, 2  ;;  %v2668_v23 = vsel %vm2656_vm11, %v6668_v63, %v2667_v62 }
 0x2f8   : > { %v3060_v19 = vmul.f32 %v6805_v28, %v6805_v28  ;;  %v6815_v52 = vshrl.u32 %v2566_v1, 30  ;;  %v6823_v53 = vshrl.u32 %v8940_v47, %v6541_v3  ;;  %v6827_v51 = vshrl.u32 %v8941_v38, %v6541_v3 }
 0x2f9   : > { %v2662_v15 = vsel %vm2654_vm8, %v2641_v17, %v6784_v41  ;;  %v2669_v35 = vsel %vm2655_vm9, %v2666_v24, %v2668_v23  ;;  %v2664_v63 = vsel %vm2656_vm11, %v2647_v58, %v2663_v22  ;;  %v2671_v0 = vand.u32 65535, %v6811_v57 }
 0x2fa   : > { %v3061_v39 = vmul.f32 -0.001358992, %v3060_v19  ;;  %v3068_v40 = vmul.f32 -0.00019511016, %v3060_v19  ;;  %v2568_v21 = vshll.u32 %v6815_v52, 30  ;;  %v6839_v45 = vshrl.u32 %v6811_v57, 16 }
 0x2fb   : > { %v2673_v27 = vand.u32 65535, %v2669_v35  ;;  %v2674_v49 = vshrl.u32 %v2669_v35, 16  ;;  %v6841_v55 = vand.u32 3, %v3076_v32  ;;  %v2561_v37 = vadd.s32 %v6750_v34, %v6745_v8 }
 0x2fc   : > { %v3062_v20 = vadd.f32 0.041655596, %v3061_v39  ;;  %v3069_v25 = vadd.f32 0.008332121, %v3068_v40  ;;  %v6843_v33 = vsub.s32 %v2565_v50, %v2568_v21  ;;  %v2665_v16 = vsel %vm2655_vm9, %v2662_v15, %v2664_v63 }
 0x2fd   : > { %v2676_v48 = vmul.u32 %v2674_v49, %v2671_v0  ;;  %v6850_v31 = vmul.u32 %v2673_v27, %v6839_v45  ;;  %vm2469_vm12 = vcmp.lt.s32.totalorder %v6371_v13, 0  ;;  %v2638_v5 = vshrl.u32 %v8942_v61, %v6575_v29 }
 0x2fe   : > { %v3063_v11 = vmul.f32 %v3062_v20, %v3060_v19  ;;  %v3070_v4 = vmul.f32 %v3069_v25, %v3060_v19  ;;  %vm2570_vm13 = vcmp.lt.s32.totalorder %v6843_v33, 0  ;;  %v2571_v6 = vsub.s32 0, %v6843_v33 }
 0x2ff   : > { %v2659_v8 = vsel %vm2657_vm7, %v2647_v58, 2102212464  ;;  %v2675_v34 = vmul.u32 %v2673_v27, %v2671_v0  ;;  %v2679_v42 = vshll.u32 %v2676_v48, 16  ;;  %v2696_v43 = vshrl.u32 %v2665_v16, 16 }
 0x300   : > { %v3064_v46 = vadd.f32 -0.4999988, %v3063_v11  ;;  %v3071_v36 = vadd.f32 -0.16666654, %v3070_v4  ;;  %v2572_v54 = vsel %vm2570_vm13, %v2571_v6, %v6843_v33  ;;  %vm3079_vm14 = vcmp.eq.s32.totalorder %v6841_v55, 0 }
 0x301   : > { %vm3082_vm15 = vcmp.eq.s32.totalorder %v6841_v55, 2  ;;  %v2573_v50 = vclz %v2572_v54  ;;  %v2678_v22 = vmul.u32 %v2674_v49, %v6839_v45  ;;  %v2681_v62 = vshll.u32 %v6850_v31, 16 }
 0x302   : > { %vm2683_vm0 = vc.u32 %v2675_v34, %v2679_v42  ;;  %v3065_v29 = vmul.f32 %v3064_v46, %v3060_v19  ;;  %v3072_v12 = vmul.f32 %v3071_v36, %v3060_v19  ;;  %vm3078_vm1 = vcmp.lt.s32.totalorder %v6841_v55, 2 }
 0x303   : > { %v2684_v58 = vsel %vm2683_vm0, 1, %v8943_v9  ;;  %v2685_v32 = vadd.s32 %v2679_v42, %v2675_v34  ;;  %vm3075_vm2 = vweird.f32 %v6424_v26  ;;  %v4934_v1 = vadd.s32 4294967294, %v2573_v50 }
 0x304   : > { %v2591_v24 = vsub.s32 4, %v6815_v52  ;;  %v2658_v23 = vsel %vm2654_vm8, %v2638_v5, %v2641_v17  ;;  %v2695_v15 = vand.u32 65535, %v2665_v16  ;;  %v3066_v35 = vadd.f32 1.0, %v3065_v29 }
 0x305   : > { %v3073_v39 = vadd.f32 1.0, %v3072_v12  ;;  %v2686_v40 = vadd.s32 %v2684_v58, %v2678_v22  ;;  %vm2687_vm3 = vc.u32 %v2685_v32, %v2681_v62  ;;  %v8951_v19 = vand.u32 2147483647, %v6371_v13 }
 0x306   : > { %vm4935_vm6 = vcmp.lt.s32.totalorder %v4934_v1, 0  ;;  %v2660_v63 = vsel %vm2656_vm11, %v6784_v41, %v2659_v8  ;;  %v2688_v27 = vsel %vm2687_vm3, 1, %v8943_v9  ;;  %v2698_v49 = vmul.u32 %v2696_v43, %v2671_v0 }
 0x307   : > { %vm6872_vm4 = vcmp.le.f32.partialorder %v8951_v19, 0.7853982  ;;  %v3074_v17 = vmul.f32 %v3073_v39, %v6805_v28  ;;  %v3083_v20 = vxor.u32 2147483648, %v3066_v35  ;;  %v2576_v25 = vsel %vm4935_vm6, 0, %v4934_v1 }
 0x308   : > { %v2690_v16 = vadd.s32 %v2688_v27, %v2686_v40  ;;  %v2577_v11 = vsub.s32 32, %v2576_v25  ;;  %v2581_v4 = vsub.s32 4294967266, %v2576_v25  ;;  %v2592_v6 = vsel %vm2469_vm12, %v2591_v24, %v6815_v52  ;;  %v8955_v27 = vld [vmem:[#allocation9_spill] sm:$0xff] }
 0x309   : > { %v2697_v5 = vmul.u32 %v2695_v15, %v2671_v0  ;;  %v3080_v34 = vxor.u32 2147483648, %v3074_v17  ;;  %v2680_v42 = vshrl.u32 %v2676_v48, 16  ;;  %v2699_v46 = vmul.u32 %v2695_v15, %v6839_v45 }
 0x30a   : > { %v2701_v41 = vshll.u32 %v2698_v49, 16  ;;  %v2578_v8 = vshll.u32 %v6843_v33, %v2576_v25  ;;  %v2579_v36 = vshrl.u32 %v2561_v37, %v2577_v11  ;;  %v2582_v54 = vadd.s32 127, %v2581_v4 }
 0x30b   : > { %v2700_v28 = vmul.u32 %v2696_v43, %v6839_v45  ;;  %v3081_v50 = vsel %vm3079_vm14, %v3066_v35, %v3080_v34  ;;  %v3084_v22 = vsel %vm3082_vm15, %v3083_v20, %v3074_v17  ;;  %v2691_v62 = vadd.s32 %v2690_v16, %v2680_v42 }
 0x30c   : > { %vm2705_vm7 = vc.u32 %v2697_v5, %v2701_v41  ;;  %v3085_v52 = vsel %vm3078_vm1, %v3081_v50, %v3084_v22  ;;  %v2580_v0 = vor.u32 %v2579_v36, %v2578_v8  ;;  %v2583_v48 = vshll.u32 %v2582_v54, 23  ;;  %v8957_v8 = vld [vmem:[#allocation15_spill] sm:$0xff]  ;;  %v8959_v50 = vld [vmem:[#allocation16_spill] sm:$0xff] }
 0x30d   : > { %v2706_v29 = vsel %vm2705_vm7, 1, %v8943_v9  ;;  %v3086_v33 = vsel %vm3075_vm2, nan, %v3085_v52  ;;  %v2703_v37 = vshll.u32 %v2699_v46, 16  ;;  %v2707_v45 = vadd.s32 %v2701_v41, %v2697_v5 }
 0x30e   : > { %v2708_v43 = vadd.s32 %v2706_v29, %v2700_v28  ;;  %v6898_v12 = vor.u32 %v6823_v53, %v6579_v2  ;;  %3168 = vmatpush.msra.mxu3 %v3086_v33  ;;  %v2584_v58 = vor.u32 4788187, %v2583_v48  ;;  %v2682_v32 = vshrl.u32 %v6850_v31, 16  ;;  %v8954_v53 = vld [vmem:[#allocation19_spill] sm:$0xff]  ;;  %v8958_v28 = vld [vmem:[#allocation21_spill] sm:$0xff]  ;;  %v8960_v48 = vld [vmem:[#allocation20_spill] sm:$0xff] }
 0x30f   : > { %v2157_v55 = vand.u32 2147483647, %v6368_v60  ;;  %v2594_v1 = vsel %vm6872_vm4, 0, %v2592_v6  ;;  %v2661_v26 = vsel %vm2655_vm9, %v2658_v23, %v2660_v63  ;;  %v2702_v24 = vshrl.u32 %v2698_v49, 16  ;;  %v8956_v23 = vld [vmem:[#allocation11_spill] sm:$0xff] }
 0x310   : > { %vm2709_vm8 = vc.u32 %v2707_v45, %v2703_v37  ;;  %v2585_v15 = vand.u32 2147483647, %v2584_v58  ;;  %v2587_v35 = vcvt.s32.f32 %v2580_v0  ;;  %v6906_v39 = vadd.s32 %v2691_v62, %v2682_v32 }
 0x311   : > { %v2710_v2 = vsel %vm2709_vm8, 1, %v8943_v9  ;;  %vm2013_vm11 = vcmp.gt.s32.totalorder %v8954_v53, 0  ;;  %v2704_v40 = vshrl.u32 %v2699_v46, 16  ;;  %v2164_v19 = vand.u32 8388607, %v2157_v55 }
 0x312   : > { %v2712_v31 = vadd.s32 %v2710_v2, %v2708_v43  ;;  %v2174_v17 = vshll.u32 %v8942_v61, %v8955_v27  ;;  %v2588_v30 = vmul.f32 %v2587_v35, %v2585_v15  ;;  %v2175_v63 = vshrl.u32 %v8937_v56, %v8956_v23 }
 0x313   : > { %v2177_v49 = vshll.u32 %v8937_v56, %v8955_v27  ;;  %v2178_v20 = vshrl.u32 %v8938_v14, %v8956_v23  ;;  %v6920_v25 = vadd.s32 %v2707_v45, %v2703_v37  ;;  %v2180_v11 = vshll.u32 %v8938_v14, %v8955_v27 }
 0x314   : > { %v2713_v16 = vadd.s32 %v2712_v31, %v2702_v24  ;;  %v2181_v4 = vshrl.u32 %v8939_v7, %v8956_v23  ;;  %v2589_v6 = vxor.u32 2147483648, %v2588_v30  ;;  %v2165_v5 = vor.u32 8388608, %v2164_v19 }
 0x315   : > { %v6926_v34 = vor.u32 %v2175_v63, %v2174_v17  ;;  %v6928_v42 = vor.u32 %v2178_v20, %v2177_v49  ;;  %vm2189_vm9 = vcmp.lt.s32.totalorder %v8957_v8, 1  ;;  %vm2191_vm13 = vcmp.lt.s32.totalorder %v8957_v8, 3 }
 0x316   : > { %v2714_v46 = vadd.s32 %v2713_v16, %v2704_v40  ;;  %v2182_v41 = vor.u32 %v2181_v4, %v2180_v11  ;;  %v2590_v36 = vsel %vm2469_vm12, %v2589_v6, %v2588_v30  ;;  %vm2717_vm14 = vc.u32 %v6906_v39, %v6920_v25 }
 0x317   : > { %v2197_v54 = vsel %vm2189_vm9, %v6926_v34, %v6928_v42  ;;  %v2203_v22 = vsel %vm2191_vm13, %v8959_v50, %v8958_v28  ;;  %v6947_v62 = vsel %vm6872_vm4, %v6371_v13, %v2590_v36  ;;  %v2611_v52 = vadd.s32 3, %v2594_v1 }
 0x318   : > { %v2718_v0 = vadd.s32 1, %v2714_v46  ;;  %v2199_v29 = vsel %vm2191_vm13, %v2182_v41, %v8960_v48  ;;  %v2595_v33 = vmul.f32 %v6947_v62, %v6947_v62  ;;  %v2715_v37 = vmul.u32 %v6811_v57, %v2661_v26 }
 0x319   : > { %vm2190_vm12 = vcmp.lt.s32.totalorder %v8957_v8, 2  ;;  %v2201_v45 = vsel %vm2189_vm9, %v6928_v42, %v2182_v41  ;;  %v6965_v32 = vshll.u32 %v2165_v5, 8  ;;  %v2343_v26 = vor.u32 %v6827_v51, %v6789_v10  ;;  %v8961_v10 = vld [vmem:[#allocation22_spill] sm:$0xff] }
 0x31a   : > { %v2719_v21 = vsel %vm2717_vm14, %v2718_v0, %v2714_v46  ;;  %v6961_v43 = vsel %vm2190_vm12, %v2197_v54, %v2199_v29  ;;  %v2204_v58 = vsel %vm2190_vm12, %v2201_v45, %v2203_v22  ;;  %v2596_v1 = vmul.f32 -0.001358992, %v2595_v33 }
 0x31b   : > { %v2603_v24 = vmul.f32 -0.00019511016, %v2595_v33  ;;  %v2720_v15 = vadd.s32 %v2719_v21, %v2715_v37  ;;  %v2208_v57 = vand.u32 65535, %v2204_v58  ;;  %v2206_v35 = vand.u32 65535, %v6965_v32 }
 0x31c   : > { %v2207_v2 = vshrl.u32 %v6965_v32, 16  ;;  %v2209_v40 = vshrl.u32 %v2204_v58, 16  ;;  %v6974_v31 = vsel %vm2013_vm11, %v8954_v53, 0  ;;  %v2597_v19 = vadd.f32 0.041655596, %v2596_v1 }
 0x31d   : > { %v2604_v27 = vadd.f32 0.008332121, %v2603_v24  ;;  %v2721_v17 = vadd.s32 536870912, %v2720_v15  ;;  %v2612_v30 = vand.u32 3, %v2611_v52  ;;  %v2231_v20 = vshrl.u32 %v6961_v43, 16 }
 0x31e   : > { %v2211_v63 = vmul.u32 %v2209_v40, %v2206_v35  ;;  %v6976_v49 = vmul.u32 %v2208_v57, %v2207_v2  ;;  %vm2347_vm15 = vcmp.lt.s32.totalorder %v8961_v10, 4  ;;  %v2598_v51 = vmul.f32 %v2597_v19, %v2595_v33 }
 0x31f   : > { %v2605_v16 = vmul.f32 %v2604_v27, %v2595_v33  ;;  %v6980_v11 = vshrl.u32 %v2721_v17, 30  ;;  %v6985_v53 = vsel %vm2347_vm15, %v6898_v12, 920167782  ;;  %v6989_v4 = vsel %vm2347_vm15, %v2343_v26, 1326507024 }
 0x320   : > { %v2210_v6 = vmul.u32 %v2208_v57, %v2206_v35  ;;  %v2214_v5 = vshll.u32 %v2211_v63, 16  ;;  %v2599_v46 = vadd.f32 -0.4999988, %v2598_v51  ;;  %v2230_v28 = vand.u32 65535, %v6961_v43 }
 0x321   : > { %v2606_v36 = vadd.f32 -0.16666654, %v2605_v16  ;;  %v2723_v54 = vshll.u32 %v6980_v11, 30  ;;  %vm2614_vm0 = vcmp.eq.s32.totalorder %v2612_v30, 0  ;;  %v2216_v50 = vshll.u32 %v6976_v49, 16 }
 0x322   : > { %vm2218_vm1 = vc.u32 %v2210_v6, %v2214_v5  ;;  %v2220_v22 = vadd.s32 %v2214_v5, %v2210_v6  ;;  %v6994_v52 = vmul.u32 %v2231_v20, %v2206_v35  ;;  %v2600_v0 = vmul.f32 %v2599_v46, %v2595_v33 }
 0x323   : > { %v2607_v48 = vmul.f32 %v2606_v36, %v2595_v33  ;;  %vm2613_vm2 = vcmp.lt.s32.totalorder %v2612_v30, 2  ;;  %v6996_v29 = vsub.s32 %v2720_v15, %v2723_v54  ;;  %v2173_v37 = vshrl.u32 %v8942_v61, %v8956_v23 }
 0x324   : > { %vm2610_vm3 = vweird.f32 %v6371_v13  ;;  %v2194_v45 = vsel %vm2192_vm5, %v2182_v41, 2102212464  ;;  %v2213_v21 = vmul.u32 %v2209_v40, %v2207_v2  ;;  %v2219_v43 = vsel %vm2218_vm1, 1, %v8943_v9 }
 0x325   : > { %vm2222_vm4 = vc.u32 %v2220_v22, %v2216_v50  ;;  %v2601_v58 = vadd.f32 1.0, %v2600_v0  ;;  %v2608_v1 = vadd.f32 1.0, %v2607_v48  ;;  %vm2725_vm6 = vcmp.lt.s32.totalorder %v6996_v29, 0 }
 0x326   : > { %v2726_v33 = vsub.s32 0, %v6996_v29  ;;  %v2221_v24 = vadd.s32 %v2219_v43, %v2213_v21  ;;  %v2223_v15 = vsel %vm2222_vm4, 1, %v8943_v9  ;;  %v2234_v57 = vmul.u32 %v2230_v28, %v2207_v2  ;;  %v8965_v43 = vld [vmem:[#allocation17_spill] sm:$0xff] }
 0x327   : > { %v2236_v23 = vshll.u32 %v6994_v52, 16  ;;  %v2609_v26 = vmul.f32 %v2608_v1, %v6947_v62  ;;  %v2618_v19 = vxor.u32 2147483648, %v2601_v58  ;;  %v2232_v40 = vmul.u32 %v2230_v28, %v2206_v35 }
 0x328   : > { %v2727_v41 = vsel %vm2725_vm6, %v2726_v33, %v6996_v29  ;;  %vm2617_vm5 = vcmp.eq.s32.totalorder %v2612_v30, 2  ;;  %v2716_v27 = vadd.s32 %v6920_v25, %v6906_v39  ;;  %v2225_v51 = vadd.s32 %v2223_v15, %v2221_v24 }
 0x329   : > { %v2728_v17 = vclz %v2727_v41  ;;  %v2615_v16 = vxor.u32 2147483648, %v2609_v26  ;;  %v2193_v6 = vsel %vm2189_vm9, %v2173_v37, %v6926_v34  ;;  %v2195_v5 = vsel %vm2191_vm13, %v6928_v42, %v2194_v45 }
 0x32a   : > { %vm2240_vm7 = vc.u32 %v2232_v40, %v2236_v23  ;;  %v2215_v46 = vshrl.u32 %v2211_v63, 16  ;;  %v2235_v36 = vmul.u32 %v2231_v20, %v2207_v2  ;;  %v2238_v35 = vshll.u32 %v2234_v57, 16 }
 0x32b   : > { %v4937_v62 = vadd.s32 4294967294, %v2728_v17  ;;  %v2616_v54 = vsel %vm2614_vm0, %v2601_v58, %v2615_v16  ;;  %v2619_v28 = vsel %vm2617_vm5, %v2618_v19, %v2609_v26  ;;  %v2241_v39 = vsel %vm2240_vm7, 1, %v8943_v9 }
 0x32c   : > { %v2242_v25 = vadd.s32 %v2236_v23, %v2232_v40  ;;  %v2620_v50 = vsel %vm2613_vm2, %v2616_v54, %v2619_v28  ;;  %v2226_v22 = vadd.s32 %v2225_v51, %v2215_v46  ;;  %v2243_v34 = vadd.s32 %v2241_v39, %v2235_v36 }
 0x32d   : > { %vm4938_vm8 = vcmp.lt.s32.totalorder %v4937_v62, 0  ;;  %v2621_v0 = vsel %vm2610_vm3, nan, %v2620_v50  ;;  %vm7025_vm11 = vcmp.le.f32.partialorder %v2622_v18, 0.7853982  ;;  %v2746_v63 = vsub.s32 4, %v6980_v11  ;;  %v8964_v18 = vld [vmem:[#allocation7_spill] sm:$0xff] }
 0x32e   : > { %v2731_v2 = vsel %vm4938_vm8, 0, %v4937_v62  ;;  %vm2244_vm9 = vc.u32 %v2242_v25, %v2238_v35  ;;  %3140 = vmatpush.msra.mxu2 %v2621_v0  ;;  %v2217_v48 = vshrl.u32 %v6976_v49, 16  ;;  %vm2624_vm13 = vcmp.lt.s32.totalorder %v6394_v44, 0 }
 0x32f   : > { %v2732_v20 = vsub.s32 32, %v2731_v2  ;;  %v2736_v30 = vsub.s32 4294967266, %v2731_v2  ;;  %v2245_v37 = vsel %vm2244_vm9, 1, %v8943_v9  ;;  %v2237_v13 = vshrl.u32 %v6994_v52, 16 }
 0x330   : > { %v2247_v45 = vadd.s32 %v2245_v37, %v2243_v34  ;;  %v2312_v21 = vand.u32 2147483647, %v8964_v18  ;;  %vm1882_vm14 = vcmp.lt.s32.totalorder %v8965_v43, 4  ;;  %v2733_v58 = vshll.u32 %v6996_v29, %v2731_v2  ;;  %v8966_v34 = vld [vmem:[#allocation18_spill] sm:$0xff] }
 0x331   : > { %v2734_v1 = vshrl.u32 %v2716_v27, %v2732_v20  ;;  %v2737_v33 = vadd.s32 127, %v2736_v30  ;;  %v7037_v24 = vadd.s32 %v2226_v22, %v2217_v48  ;;  %v2747_v49 = vsel %vm2624_vm13, %v2746_v63, %v6980_v11  ;;  %v8967_v20 = vld [vmem:[#allocation14_spill] sm:$0xff]  ;;  %v8968_v30 = vld [vmem:[#allocation13_spill] sm:$0xff] }
 0x332   : > { %v2196_v15 = vsel %vm2190_vm12, %v2193_v6, %v2195_v5  ;;  %v2239_v23 = vshrl.u32 %v2234_v57, 16  ;;  %v2248_v52 = vadd.s32 %v2247_v45, %v2237_v13  ;;  %v7044_v41 = vadd.s32 %v2242_v25, %v2238_v35 }
 0x333   : > { %v2735_v26 = vor.u32 %v2734_v1, %v2733_v58  ;;  %v2738_v19 = vshll.u32 %v2737_v33, 23  ;;  %v2319_v29 = vand.u32 8388607, %v2312_v21  ;;  %v2330_v27 = vshrl.u32 %v8937_v56, %v6541_v3 }
 0x334   : > { %v2249_v40 = vadd.s32 %v2248_v52, %v2239_v23  ;;  %v2332_v17 = vshll.u32 %v8937_v56, %v6485_v59  ;;  %v2333_v8 = vshrl.u32 %v8938_v14, %v6541_v3  ;;  %vm2252_vm12 = vc.u32 %v7037_v24, %v7044_v41 }
 0x335   : > { %v2739_v11 = vor.u32 4788187, %v2738_v19  ;;  %v2320_v57 = vor.u32 8388608, %v2319_v29  ;;  %v2329_v51 = vshll.u32 %v8942_v61, %v6485_v59  ;;  %v2335_v5 = vshll.u32 %v8938_v14, %v6485_v59 }
 0x336   : > { %v2253_v16 = vadd.s32 1, %v2249_v40  ;;  %v7058_v6 = vor.u32 %v2333_v8, %v2332_v17  ;;  %v2336_v62 = vshrl.u32 %v8939_v7, %v6541_v3  ;;  %v2742_v36 = vcvt.s32.f32 %v2735_v26 }
 0x337   : > { %v2740_v46 = vand.u32 2147483647, %v2739_v11  ;;  %v2749_v35 = vsel %vm7025_vm11, 0, %v2747_v49  ;;  %v2250_v54 = vmul.u32 %v6965_v32, %v2196_v15  ;;  %v7067_v39 = vor.u32 %v2330_v27, %v2329_v51 }
 0x338   : > { %v2254_v28 = vsel %vm2252_vm12, %v2253_v16, %v2249_v40  ;;  %v2337_v25 = vor.u32 %v2336_v62, %v2335_v5  ;;  %vm2346_vm0 = vcmp.lt.s32.totalorder %v8961_v10, 3  ;;  %vm2344_vm1 = vcmp.lt.s32.totalorder %v8961_v10, 1 }
 0x339   : > { %v2743_v50 = vmul.f32 %v2742_v36, %v2740_v46  ;;  %v2255_v22 = vadd.s32 %v2254_v28, %v2250_v54  ;;  %v2358_v59 = vsel %vm2346_vm0, %v6898_v12, %v6989_v4  ;;  %v7078_v0 = vsel %vm1882_vm14, %v8966_v34, 920167782 }
 0x33a   : > { %v7081_v32 = vand.u32 31, %v6974_v31  ;;  %v2356_v2 = vsel %vm2344_vm1, %v7058_v6, %v2337_v25  ;;  %v7086_v63 = vshll.u32 %v2320_v57, 8  ;;  %v8969_v48 = vor.u32 %v8967_v20, %v8968_v30 }
 0x33b   : > { %v2744_v4 = vxor.u32 2147483648, %v2743_v50  ;;  %v2256_v37 = vadd.s32 536870912, %v2255_v22  ;;  %vm2345_vm2 = vcmp.lt.s32.totalorder %v8961_v10, 2  ;;  %v2766_v13 = vadd.s32 3, %v2749_v35 }
 0x33c   : > { %v7093_v12 = vsel %vm1882_vm14, %v8969_v48, 1326507024  ;;  %v2352_v45 = vsel %vm2344_vm1, %v7067_v39, %v7058_v6  ;;  %v2354_v58 = vsel %vm2346_vm0, %v2337_v25, %v6985_v53  ;;  %v2359_v1 = vsel %vm2345_vm2, %v2356_v2, %v2358_v59 }
 0x33d   : > { %v2745_v33 = vsel %vm2624_vm13, %v2744_v4, %v2743_v50  ;;  %v7107_v49 = vshrl.u32 %v2256_v37, 30  ;;  %v2363_v15 = vand.u32 65535, %v2359_v1  ;;  %v2364_v23 = vshrl.u32 %v2359_v1, 16 }
 0x33e   : > { %v7110_v52 = vsub.s32 32, %v7081_v32  ;;  %v7115_v26 = vsel %vm7025_vm11, %v6394_v44, %v2745_v33  ;;  %v2361_v53 = vand.u32 65535, %v7086_v63  ;;  %v2362_v19 = vshrl.u32 %v7086_v63, 16 }
 0x33f   : > { %v7121_v29 = vshll.u32 %v8939_v7, %v7081_v32  ;;  %v2750_v40 = vmul.f32 %v7115_v26, %v7115_v26  ;;  %v2258_v27 = vshll.u32 %v7107_v49, 30  ;;  %v2355_v17 = vsel %vm2345_vm2, %v2352_v45, %v2354_v58 }
 0x340   : > { %v7130_v42 = vshll.u32 %v8940_v47, %v7081_v32  ;;  %v7132_v8 = vand.u32 3, %v2766_v13  ;;  %v2366_v11 = vmul.u32 %v2364_v23, %v2361_v53  ;;  %v7134_v57 = vmul.u32 %v2363_v15, %v2362_v19 }
 0x341   : > { %v2751_v51 = vmul.f32 -0.001358992, %v2750_v40  ;;  %v2758_v16 = vmul.f32 -0.00019511016, %v2750_v40  ;;  %v7136_v5 = vsub.s32 %v2255_v22, %v2258_v27  ;;  %v2349_v62 = vsel %vm2347_vm15, %v2337_v25, 2102212464 }
 0x342   : > { %v2365_v46 = vmul.u32 %v2363_v15, %v2361_v53  ;;  %v2369_v36 = vshll.u32 %v2366_v11, 16  ;;  %v2385_v35 = vand.u32 65535, %v2355_v17  ;;  %v2386_v54 = vshrl.u32 %v2355_v17, 16 }
 0x343   : > { %v2752_v28 = vadd.f32 0.041655596, %v2751_v51  ;;  %v2759_v50 = vadd.f32 0.008332121, %v2758_v16  ;;  %vm2260_vm3 = vcmp.lt.s32.totalorder %v7136_v5, 0  ;;  %v2261_v59 = vsub.s32 0, %v7136_v5 }
 0x344   : > { %v2368_v2 = vmul.u32 %v2364_v23, %v2362_v19  ;;  %v2371_v20 = vshll.u32 %v7134_v57, 16  ;;  %vm2373_vm4 = vc.u32 %v2365_v46, %v2369_v36  ;;  %v2375_v30 = vadd.s32 %v2369_v36, %v2365_v46 }
 0x345   : > { %v2753_v22 = vmul.f32 %v2752_v28, %v2750_v40  ;;  %v2760_v48 = vmul.f32 %v2759_v50, %v2750_v40  ;;  %v2262_v4 = vsel %vm2260_vm3, %v2261_v59, %v7136_v5  ;;  %v2374_v25 = vsel %vm2373_vm4, 1, %v8943_v9 }
 0x346   : > { %v2263_v37 = vclz %v2262_v4  ;;  %v2328_v13 = vshrl.u32 %v8942_v61, %v6541_v3  ;;  %v2376_v45 = vadd.s32 %v2374_v25, %v2368_v2  ;;  %vm2377_vm15 = vc.u32 %v2375_v30, %v2371_v20 }
 0x347   : > { %v2754_v58 = vadd.f32 -0.4999988, %v2753_v22  ;;  %v2761_v1 = vadd.f32 -0.16666654, %v2760_v48  ;;  %v2378_v33 = vsel %vm2377_vm15, 1, %v8943_v9  ;;  %v2388_v15 = vmul.u32 %v2386_v54, %v2361_v53 }
 0x348   : > { %vm2769_vm6 = vcmp.eq.s32.totalorder %v7132_v8, 0  ;;  %vm2772_vm5 = vcmp.eq.s32.totalorder %v7132_v8, 2  ;;  %v2251_v23 = vadd.s32 %v7044_v41, %v7037_v24  ;;  %v4928_v27 = vadd.s32 4294967294, %v2263_v37 }
 0x349   : > { %v2348_v17 = vsel %vm2344_vm1, %v2328_v13, %v7067_v39  ;;  %v2350_v3 = vsel %vm2346_vm0, %v7058_v6, %v2349_v62  ;;  %v2755_v51 = vmul.f32 %v2754_v58, %v2750_v40  ;;  %v2762_v16 = vmul.f32 %v2761_v1, %v2750_v40 }
 0x34a   : > { %vm2768_vm7 = vcmp.lt.s32.totalorder %v7132_v8, 2  ;;  %v2380_v46 = vadd.s32 %v2378_v33, %v2376_v45  ;;  %v2389_v36 = vmul.u32 %v2385_v35, %v2362_v19  ;;  %vm2765_vm8 = vweird.f32 %v6394_v44 }
 0x34b   : > { %vm4929_vm11 = vcmp.lt.s32.totalorder %v4928_v27, 0  ;;  %v2281_v24 = vsub.s32 4, %v7107_v49  ;;  %v2370_v41 = vshrl.u32 %v2366_v11, 16  ;;  %v2391_v28 = vshll.u32 %v2388_v15, 16 }
 0x34c   : > { %v2756_v50 = vadd.f32 1.0, %v2755_v51  ;;  %v2763_v59 = vadd.f32 1.0, %v2762_v16  ;;  %v2266_v39 = vsel %vm4929_vm11, 0, %v4928_v27  ;;  %v2387_v2 = vmul.u32 %v2385_v35, %v2361_v53  ;;  %v8970_v35 = vld [vmem:[#allocation6_spill] sm:$0xff] }
 0x34d   : > { %vm2159_vm9 = vcmp.lt.s32.totalorder %v6368_v60, 0  ;;  %v2267_v6 = vsub.s32 32, %v2266_v39  ;;  %v2271_v62 = vsub.s32 4294967266, %v2266_v39  ;;  %v2381_v40 = vadd.s32 %v2380_v46, %v2370_v41 }
 0x34e   : > { %v2390_v20 = vmul.u32 %v2386_v54, %v2362_v19  ;;  %v2764_v30 = vmul.f32 %v2763_v59, %v7115_v26  ;;  %v2773_v22 = vxor.u32 2147483648, %v2756_v50  ;;  %v2268_v48 = vshll.u32 %v7136_v5, %v2266_v39 }
 0x34f   : > { %v2393_v4 = vshll.u32 %v2389_v36, 16  ;;  %v2269_v25 = vshrl.u32 %v2251_v23, %v2267_v6  ;;  %v2272_v37 = vadd.s32 127, %v2271_v62  ;;  %vm2395_vm13 = vc.u32 %v2387_v2, %v2391_v28 }
 0x350   : > { %v2397_v11 = vadd.s32 %v2391_v28, %v2387_v2  ;;  %v2770_v13 = vxor.u32 2147483648, %v2764_v30  ;;  %v2372_v45 = vshrl.u32 %v7134_v57, 16  ;;  %v2396_v53 = vsel %vm2395_vm13, 1, %v8943_v9  ;;  %v8973_v2 = vld [vmem:[#allocation12_spill] sm:$0xff] }
 0x351   : > { %v1847_v58 = vand.u32 2147483647, %v8970_v35  ;;  %v2270_v1 = vor.u32 %v2269_v25, %v2268_v48  ;;  %v2273_v33 = vshll.u32 %v2272_v37, 23  ;;  %v2398_v19 = vadd.s32 %v2396_v53, %v2390_v20  ;;  %v8974_v20 = vld [vmem:[#allocation10_spill] sm:$0xff] }
 0x352   : > { %vm2399_vm12 = vc.u32 %v2397_v11, %v2393_v4  ;;  %v2771_v26 = vsel %vm2769_vm6, %v2756_v50, %v2770_v13  ;;  %v2774_v5 = vsel %vm2772_vm5, %v2773_v22, %v2764_v30  ;;  %v2392_v54 = vshrl.u32 %v2388_v15, 16 }
 0x353   : > { %v2400_v23 = vsel %vm2399_vm12, 1, %v8943_v9  ;;  %v2775_v57 = vsel %vm2768_vm7, %v2771_v26, %v2774_v5  ;;  %v2274_v27 = vor.u32 4788187, %v2273_v33  ;;  %v7174_v51 = vadd.s32 %v2381_v40, %v2372_v45 }
 0x354   : > { %v2402_v16 = vadd.s32 %v2400_v23, %v2398_v19  ;;  %v2776_v46 = vsel %vm2765_vm8, nan, %v2775_v57  ;;  %vm7180_vm0 = vcmp.le.f32.partialorder %v2157_v55, 0.7853982  ;;  %v2394_v28 = vshrl.u32 %v2389_v36, 16 }
 0x355   : > { %v7184_v15 = vadd.s32 %v2397_v11, %v2393_v4  ;;  %3169 = vmatpush.msra.mxu3 %v2776_v46  ;;  %v2275_v50 = vand.u32 2147483647, %v2274_v27  ;;  %v2277_v8 = vcvt.s32.f32 %v2270_v1  ;;  %v1854_v39 = vand.u32 8388607, %v1847_v58 }
 0x356   : > { %v2403_v59 = vadd.s32 %v2402_v16, %v2392_v54  ;;  %v2282_v44 = vsel %vm2159_vm9, %v2281_v24, %v7107_v49  ;;  %v2351_v55 = vsel %vm2345_vm2, %v2348_v17, %v2350_v3  ;;  %v1865_v6 = vshrl.u32 %v8937_v56, %v8973_v2 }
 0x357   : > { %v1868_v36 = vshrl.u32 %v8938_v14, %v8973_v2  ;;  %v2278_v62 = vmul.f32 %v2277_v8, %v2275_v50  ;;  %vm2407_vm1 = vc.u32 %v7174_v51, %v7184_v15  ;;  %v1867_v30 = vshll.u32 %v8937_v56, %v8974_v20 }
 0x358   : > { %v2404_v40 = vadd.s32 %v2403_v59, %v2394_v28  ;;  %v1855_v22 = vor.u32 8388608, %v1854_v39  ;;  %v1864_v49 = vshll.u32 %v8942_v61, %v8974_v20  ;;  %v1870_v10 = vshll.u32 %v8938_v14, %v8974_v20 }
 0x359   : > { %v1871_v17 = vshrl.u32 %v8939_v7, %v8973_v2  ;;  %v2279_v3 = vxor.u32 2147483648, %v2278_v62  ;;  %v2405_v24 = vmul.u32 %v7086_v63, %v2351_v55  ;;  %v7208_v4 = vor.u32 %v1868_v36, %v1867_v30 }
 0x35a   : > { %v2408_v48 = vadd.s32 1, %v2404_v40  ;;  %v2284_v25 = vsel %vm7180_vm0, 0, %v2282_v44  ;;  %v7212_v37 = vor.u32 %v1865_v6, %v1864_v49  ;;  %vm1881_vm2 = vcmp.lt.s32.totalorder %v8965_v43, 3 }
 0x35b   : > { %v7214_v11 = vor.u32 %v1871_v17, %v1870_v10  ;;  %v2029_v13 = vshrl.u32 %v8940_v47, %v7110_v52  ;;  %v2280_v45 = vsel %vm2159_vm9, %v2279_v3, %v2278_v62  ;;  %v1893_v53 = vsel %vm1881_vm2, %v8966_v34, %v7093_v12 }
 0x35c   : > { %v2409_v63 = vsel %vm2407_vm1, %v2408_v48, %v2404_v40  ;;  %v7231_v1 = vsel %vm7180_vm0, %v6368_v60, %v2280_v45  ;;  %vm1879_vm3 = vcmp.lt.s32.totalorder %v8965_v43, 1  ;;  %v7234_v19 = vshll.u32 %v1855_v22, 8 }
 0x35d   : > { %v2410_v33 = vadd.s32 %v2409_v63, %v2405_v24  ;;  %v2285_v26 = vmul.f32 %v7231_v1, %v7231_v1  ;;  %v2301_v5 = vadd.s32 3, %v2284_v25  ;;  %vm1880_vm4 = vcmp.lt.s32.totalorder %v8965_v43, 2 }
 0x35e   : > { %v1891_v34 = vsel %vm1879_vm3, %v7208_v4, %v7214_v11  ;;  %v1887_v54 = vsel %vm1879_vm3, %v7212_v37, %v7208_v4  ;;  %v1889_v23 = vsel %vm1881_vm2, %v7214_v11, %v7078_v0  ;;  %v7255_v27 = vshrl.u32 %v8941_v38, %v7110_v52 }
 0x35f   : > { %v2411_v12 = vadd.s32 536870912, %v2410_v33  ;;  %v1894_v57 = vsel %vm1880_vm4, %v1891_v34, %v1893_v53  ;;  %v2286_v16 = vmul.f32 -0.001358992, %v2285_v26  ;;  %v2293_v46 = vmul.f32 -0.00019511016, %v2285_v26 }
 0x360   : > { %v1898_v41 = vand.u32 65535, %v1894_v57  ;;  %v1896_v50 = vand.u32 65535, %v7234_v19  ;;  %v1897_v8 = vshrl.u32 %v7234_v19, 16  ;;  %v1899_v59 = vshrl.u32 %v1894_v57, 16 }
 0x361   : > { %v7257_v28 = vshrl.u32 %v2411_v12, 30  ;;  %v2287_v39 = vadd.f32 0.041655596, %v2286_v16  ;;  %v2294_v44 = vadd.f32 0.008332121, %v2293_v46  ;;  %v7261_v0 = vand.u32 3, %v2301_v5 }
 0x362   : > { %v1890_v55 = vsel %vm1880_vm4, %v1887_v54, %v1889_v23  ;;  %v7266_v6 = vshrl.u32 %v6974_v31, 5  ;;  %v1901_v62 = vmul.u32 %v1899_v59, %v1896_v50  ;;  %v7269_v40 = vmul.u32 %v1898_v41, %v1897_v8 }
 0x363   : > { %v2413_v36 = vshll.u32 %v7257_v28, 30  ;;  %v7272_v20 = vor.u32 %v2029_v13, %v7121_v29  ;;  %v2033_v30 = vor.u32 %v7255_v27, %v7130_v42  ;;  %v2288_v22 = vmul.f32 %v2287_v39, %v2285_v26 }
 0x364   : > { %v2295_v49 = vmul.f32 %v2294_v44, %v2285_v26  ;;  %v1900_v17 = vmul.u32 %v1898_v41, %v1896_v50  ;;  %v1904_v3 = vshll.u32 %v1901_v62, 16  ;;  %v1921_v24 = vshrl.u32 %v1890_v55, 16 }
 0x365   : > { %v7276_v10 = vsub.s32 %v2410_v33, %v2413_v36  ;;  %v2289_v31 = vadd.f32 -0.4999988, %v2288_v22  ;;  %vm2307_vm15 = vcmp.eq.s32.totalorder %v7261_v0, 2  ;;  %v1863_v25 = vshrl.u32 %v8942_v61, %v8973_v2 }
 0x366   : > { %v2296_v48 = vadd.f32 -0.16666654, %v2295_v49  ;;  %v1903_v45 = vmul.u32 %v1899_v59, %v1897_v8  ;;  %vm2304_vm6 = vcmp.eq.s32.totalorder %v7261_v0, 0  ;;  %v1906_v13 = vshll.u32 %v7269_v40, 16 }
 0x367   : > { %vm2415_vm5 = vcmp.lt.s32.totalorder %v7276_v10, 0  ;;  %v2416_v29 = vsub.s32 0, %v7276_v10  ;;  %vm1908_vm7 = vc.u32 %v1900_v17, %v1904_v3  ;;  %v2290_v63 = vmul.f32 %v2289_v31, %v2285_v26 }
 0x368   : > { %v2297_v53 = vmul.f32 %v2296_v48, %v2285_v26  ;;  %vm2303_vm8 = vcmp.lt.s32.totalorder %v7261_v0, 2  ;;  %v1909_v33 = vsel %vm1908_vm7, 1, %v8943_v9  ;;  %v1910_v5 = vadd.s32 %v1904_v3, %v1900_v17 }
 0x369   : > { %vm2300_vm11 = vweird.f32 %v6368_v60  ;;  %v2417_v2 = vsel %vm2415_vm5, %v2416_v29, %v7276_v10  ;;  %v1911_v34 = vadd.s32 %v1909_v33, %v1903_v45  ;;  %v1920_v12 = vand.u32 65535, %v1890_v55 }
 0x36a   : > { %v1923_v54 = vmul.u32 %v1921_v24, %v1896_v50  ;;  %vm2037_vm9 = vcmp.lt.s32.totalorder %v7266_v6, 4  ;;  %v2291_v23 = vadd.f32 1.0, %v2290_v63  ;;  %v2298_v57 = vadd.f32 1.0, %v2297_v53 }
 0x36b   : > { %v2418_v16 = vclz %v2417_v2  ;;  %vm1912_vm13 = vc.u32 %v1910_v5, %v1906_v13  ;;  %v2406_v26 = vadd.s32 %v7184_v15, %v7174_v51  ;;  %v1883_v46 = vsel %vm1879_vm3, %v1863_v25, %v7212_v37 }
 0x36c   : > { %v1884_v41 = vsel %vm1882_vm14, %v7214_v11, 2102212464  ;;  %v1913_v59 = vsel %vm1912_vm13, 1, %v8943_v9  ;;  %v2299_v39 = vmul.f32 %v2298_v57, %v7231_v1  ;;  %v2308_v44 = vxor.u32 2147483648, %v2291_v23 }
 0x36d   : > { %v4931_v55 = vadd.s32 4294967294, %v2418_v16  ;;  %v1915_v36 = vadd.s32 %v1913_v59, %v1911_v34  ;;  %v1905_v22 = vshrl.u32 %v1901_v62, 16  ;;  %v1922_v49 = vmul.u32 %v1920_v12, %v1896_v50 }
 0x36e   : > { %v1924_v17 = vmul.u32 %v1920_v12, %v1897_v8  ;;  %v1926_v3 = vshll.u32 %v1923_v54, 16  ;;  %v2305_v51 = vxor.u32 2147483648, %v2299_v39  ;;  %v1885_v15 = vsel %vm1881_vm2, %v7208_v4, %v1884_v41 }
 0x36f   : > { %vm4932_vm12 = vcmp.lt.s32.totalorder %v4931_v55, 0  ;;  %v1925_v37 = vmul.u32 %v1921_v24, %v1897_v8  ;;  %v2309_v11 = vsel %vm2307_vm15, %v2308_v44, %v2299_v39  ;;  %v1916_v48 = vadd.s32 %v1915_v36, %v1905_v22 }
 0x370   : > { %v2421_v31 = vsel %vm4932_vm12, 0, %v4931_v55  ;;  %vm1930_vm14 = vc.u32 %v1922_v49, %v1926_v3  ;;  %v2306_v1 = vsel %vm2304_vm6, %v2291_v23, %v2305_v51  ;;  %v1928_v25 = vshll.u32 %v1924_v17, 16 }
 0x371   : > { %v2422_v62 = vsub.s32 32, %v2421_v31  ;;  %v2426_v50 = vsub.s32 4294967266, %v2421_v31  ;;  %v2310_v45 = vsel %vm2303_vm8, %v2306_v1, %v2309_v11  ;;  %v2423_v29 = vshll.u32 %v7276_v10, %v2421_v31  ;;  %v8975_v10 = vld [vmem:[#allocation8_spill] sm:$0xff] }
 0x372   : > { %v1931_v4 = vsel %vm1930_vm14, 1, %v8943_v9  ;;  %v1932_v8 = vadd.s32 %v1926_v3, %v1922_v49  ;;  %v2311_v24 = vsel %vm2300_vm11, nan, %v2310_v45  ;;  %v2043_v33 = vsel %vm2037_vm9, %v7272_v20, 920167782 }
 0x373   : > { %v2424_v13 = vshrl.u32 %v2406_v26, %v2422_v62  ;;  %v2427_v63 = vadd.s32 127, %v2426_v50  ;;  %v1933_v53 = vadd.s32 %v1931_v4, %v1925_v37  ;;  %v2047_v0 = vsel %vm2037_vm9, %v2033_v30, 1326507024  ;;  %3141 = vmatpush.msra.mxu2 %v2311_v24 }
 0x374   : > { %vm1934_vm0 = vc.u32 %v1932_v8, %v1928_v25  ;;  %v2002_v5 = vand.u32 2147483647, %v8975_v10  ;;  %v1907_v34 = vshrl.u32 %v7269_v40, 16  ;;  %vm2314_vm1 = vcmp.lt.s32.totalorder %v8964_v18, 0 }
 0x375   : > { %v2425_v2 = vor.u32 %v2424_v13, %v2423_v29  ;;  %v2428_v60 = vshll.u32 %v2427_v63, 23  ;;  %v1935_v12 = vsel %vm1934_vm0, 1, %v8943_v9  ;;  %v1886_v23 = vsel %vm1880_vm4, %v1883_v46, %v1885_v15 }
 0x376   : > { %v1927_v57 = vshrl.u32 %v1923_v54, 16  ;;  %v1929_v42 = vshrl.u32 %v1924_v17, 16  ;;  %v1937_v27 = vadd.s32 %v1935_v12, %v1933_v53  ;;  %v7327_v30 = vadd.s32 %v1916_v48, %v1907_v34 }
 0x377   : > { %v2429_v16 = vor.u32 4788187, %v2428_v60  ;;  %v7329_v26 = vadd.s32 %v1932_v8, %v1928_v25  ;;  %v2009_v41 = vand.u32 8388607, %v2002_v5  ;;  %v2432_v59 = vcvt.s32.f32 %v2425_v2 }
 0x378   : > { %v1938_v40 = vadd.s32 %v1937_v27, %v1927_v57  ;;  %v2019_v39 = vshll.u32 %v8942_v61, %v7081_v32  ;;  %v2020_v43 = vshrl.u32 %v8937_v56, %v7110_v52  ;;  %v2022_v44 = vshll.u32 %v8937_v56, %v7081_v32 }
 0x379   : > { %v2430_v46 = vand.u32 2147483647, %v2429_v16  ;;  %v2010_v54 = vor.u32 8388608, %v2009_v41  ;;  %v2023_v55 = vshrl.u32 %v8938_v14, %v7110_v52  ;;  %v2025_v49 = vshll.u32 %v8938_v14, %v7081_v32 }
 0x37a   : > { %v1939_v36 = vadd.s32 %v1938_v40, %v1929_v42  ;;  %v7341_v22 = vor.u32 %v2020_v43, %v2019_v39  ;;  %v2026_v17 = vshrl.u32 %v8939_v7, %v7110_v52  ;;  %v2436_v51 = vsub.s32 4, %v7257_v28 }
 0x37b   : > { %v2433_v3 = vmul.f32 %v2432_v59, %v2430_v46  ;;  %vm1942_vm2 = vc.u32 %v7327_v30, %v7329_v26  ;;  %v7350_v15 = vor.u32 %v2023_v55, %v2022_v44  ;;  %vm2034_vm3 = vcmp.lt.s32.totalorder %v7266_v6, 1 }
 0x37c   : > { %v1943_v37 = vadd.s32 1, %v1939_v36  ;;  %v7352_v11 = vor.u32 %v2026_v17, %v2025_v49  ;;  %vm2036_vm4 = vcmp.lt.s32.totalorder %v7266_v6, 3  ;;  %v1940_v32 = vmul.u32 %v7234_v19, %v1886_v23 }
 0x37d   : > { %v2434_v31 = vxor.u32 2147483648, %v2433_v3  ;;  %v2042_v48 = vsel %vm2034_vm3, %v7341_v22, %v7350_v15  ;;  %v2048_v1 = vsel %vm2036_vm4, %v7272_v20, %v2047_v0  ;;  %v7371_v19 = vshll.u32 %v2010_v54, 8 }
 0x37e   : > { %v1944_v62 = vsel %vm1942_vm2, %v1943_v37, %v1939_v36  ;;  %v2044_v50 = vsel %vm2036_vm4, %v7352_v11, %v2043_v33  ;;  %v2046_v25 = vsel %vm2034_vm3, %v7350_v15, %v7352_v11  ;;  %vm7375_vm15 = vcmp.le.f32.partialorder %v2312_v21, 0.7853982 }
 0x37f   : > { %v2435_v20 = vsel %vm2314_vm1, %v2434_v31, %v2433_v3  ;;  %v1945_v29 = vadd.s32 %v1944_v62, %v1940_v32  ;;  %vm2035_vm6 = vcmp.lt.s32.totalorder %v7266_v6, 2  ;;  %v2437_v4 = vsel %vm2314_vm1, %v2436_v51, %v7257_v28 }
 0x380   : > { %v2438_v8 = vsel %vm7375_vm15, %v8964_v18, %v2435_v20  ;;  %v2049_v21 = vsel %vm2035_vm6, %v2046_v25, %v2048_v1  ;;  %v2045_v63 = vsel %vm2035_vm6, %v2042_v48, %v2044_v50  ;;  %v2051_v33 = vand.u32 65535, %v7371_v19 }
 0x381   : > { %v2440_v24 = vmul.f32 %v2438_v8, %v2438_v8  ;;  %v1946_v13 = vadd.s32 536870912, %v1945_v29  ;;  %v2053_v53 = vand.u32 65535, %v2049_v21  ;;  %v2052_v0 = vshrl.u32 %v7371_v19, 16 }
 0x382   : > { %v2054_v2 = vshrl.u32 %v2049_v21, 16  ;;  %v2439_v28 = vsel %vm7375_vm15, 0, %v2437_v4  ;;  %v2076_v42 = vshrl.u32 %v2045_v63, 16  ;;  %v2075_v32 = vand.u32 65535, %v2045_v63 }
 0x383   : > { %v2441_v60 = vmul.f32 -0.001358992, %v2440_v24  ;;  %v2448_v34 = vmul.f32 -0.00019511016, %v2440_v24  ;;  %v7396_v12 = vshrl.u32 %v1946_v13, 30  ;;  %v7398_v57 = vmul.u32 %v2053_v53, %v2052_v0 }
 0x384   : > { %v2056_v23 = vmul.u32 %v2054_v2, %v2051_v33  ;;  %v2456_v59 = vadd.s32 3, %v2439_v28  ;;  %v2055_v40 = vmul.u32 %v2053_v53, %v2051_v33  ;;  %v2058_v44 = vmul.u32 %v2054_v2, %v2052_v0 }
 0x385   : > { %v2442_v27 = vadd.f32 0.041655596, %v2441_v60  ;;  %v2449_v16 = vadd.f32 0.008332121, %v2448_v34  ;;  %v1948_v41 = vshll.u32 %v7396_v12, 30  ;;  %v2061_v55 = vshll.u32 %v7398_v57, 16 }
 0x386   : > { %v2059_v39 = vshll.u32 %v2056_v23, 16  ;;  %v7402_v49 = vmul.u32 %v2076_v42, %v2051_v33  ;;  %v2457_v37 = vand.u32 3, %v2456_v59  ;;  %vm2455_vm11 = vweird.f32 %v8964_v18 }
 0x387   : > { %v2443_v43 = vmul.f32 %v2442_v27, %v2440_v24  ;;  %v2450_v46 = vmul.f32 %v2449_v16, %v2440_v24  ;;  %v1949_v54 = vsub.s32 %v1945_v29, %v1948_v41  ;;  %v2077_v53 = vmul.u32 %v2075_v32, %v2051_v33 }
 0x388   : > { %vm2063_vm5 = vc.u32 %v2055_v40, %v2059_v39  ;;  %v2065_v36 = vadd.s32 %v2059_v39, %v2055_v40  ;;  %v2081_v21 = vshll.u32 %v7402_v49, 16  ;;  %vm2458_vm13 = vcmp.lt.s32.totalorder %v2457_v37, 2 }
 0x389   : > { %v2444_v17 = vadd.f32 -0.4999988, %v2443_v43  ;;  %v2451_v3 = vadd.f32 -0.16666654, %v2450_v46  ;;  %vm1950_vm7 = vcmp.lt.s32.totalorder %v1949_v54, 0  ;;  %v1951_v51 = vsub.s32 0, %v1949_v54 }
 0x38a   : > { %v2064_v31 = vsel %vm2063_vm5, 1, %v8943_v9  ;;  %vm2067_vm8 = vc.u32 %v2065_v36, %v2061_v55  ;;  %v2079_v2 = vmul.u32 %v2075_v32, %v2052_v0  ;;  %vm2459_vm12 = vcmp.eq.s32.totalorder %v2457_v37, 0 }
 0x38b   : > { %v2445_v48 = vmul.f32 %v2444_v17, %v2440_v24  ;;  %v2452_v1 = vmul.f32 %v2451_v3, %v2440_v24  ;;  %v1952_v62 = vsel %vm1950_vm7, %v1951_v51, %v1949_v54  ;;  %v2066_v50 = vadd.s32 %v2064_v31, %v2058_v44 }
 0x38c   : > { %v1953_v25 = vclz %v1952_v62  ;;  %v2068_v45 = vsel %vm2067_vm8, 1, %v8943_v9  ;;  %v2060_v24 = vshrl.u32 %v2056_v23, 16  ;;  %vm2462_vm14 = vcmp.eq.s32.totalorder %v2457_v37, 2 }
 0x38d   : > { %v2446_v20 = vadd.f32 1.0, %v2445_v48  ;;  %v2453_v29 = vadd.f32 1.0, %v2452_v1  ;;  %v2070_v4 = vadd.s32 %v2068_v45, %v2066_v50  ;;  %v1941_v60 = vadd.s32 %v7329_v26, %v7327_v30 }
 0x38e   : > { %v4922_v13 = vadd.s32 4294967294, %v1953_v25  ;;  %vm2085_vm1 = vc.u32 %v2077_v53, %v2081_v21  ;;  %v2080_v41 = vmul.u32 %v2076_v42, %v2052_v0  ;;  %v2083_v39 = vshll.u32 %v2079_v2, 16 }
 0x38f   : > { %v2454_v28 = vmul.f32 %v2453_v29, %v2438_v8  ;;  %v2463_v63 = vxor.u32 2147483648, %v2446_v20  ;;  %v2071_v16 = vadd.s32 %v2070_v4, %v2060_v24  ;;  %v2086_v33 = vsel %vm2085_vm1, 1, %v8943_v9 }
 0x390   : > { %vm4923_vm0 = vcmp.lt.s32.totalorder %v4922_v13, 0  ;;  %v2087_v46 = vadd.s32 %v2081_v21, %v2077_v53  ;;  %v2088_v44 = vadd.s32 %v2086_v33, %v2080_v41  ;;  %v2018_v0 = vshrl.u32 %v8942_v61, %v7110_v52 }
 0x391   : > { %v2460_v34 = vxor.u32 2147483648, %v2454_v28  ;;  %v1956_v27 = vsel %vm4923_vm0, 0, %v4922_v13  ;;  %v2464_v8 = vsel %vm2462_vm14, %v2463_v63, %v2454_v28  ;;  %v2039_v42 = vsel %vm2037_vm9, %v7352_v11, 2102212464 }
 0x392   : > { %v1957_v59 = vsub.s32 32, %v1956_v27  ;;  %v1961_v40 = vsub.s32 4294967266, %v1956_v27  ;;  %v1958_v55 = vshll.u32 %v1949_v54, %v1956_v27  ;;  %vm2089_vm2 = vc.u32 %v2087_v46, %v2083_v39 }
 0x393   : > { %v2461_v43 = vsel %vm2459_vm12, %v2446_v20, %v2460_v34  ;;  %v2062_v51 = vshrl.u32 %v7398_v57, 16  ;;  %v2090_v54 = vsel %vm2089_vm2, 1, %v8943_v9  ;;  %v2082_v37 = vshrl.u32 %v7402_v49, 16 }
 0x394   : > { %v2465_v23 = vsel %vm2458_vm13, %v2461_v43, %v2464_v8  ;;  %v1959_v36 = vshrl.u32 %v1941_v60, %v1957_v59  ;;  %v1962_v30 = vadd.s32 127, %v1961_v40  ;;  %v2092_v31 = vadd.s32 %v2090_v54, %v2088_v44 }
 0x395   : > { %v2466_v26 = vsel %vm2455_vm11, nan, %v2465_v23  ;;  %v2038_v52 = vsel %vm2034_vm3, %v2018_v0, %v7341_v22  ;;  %v2040_v11 = vsel %vm2036_vm4, %v7350_v15, %v2039_v42  ;;  %v2072_v32 = vadd.s32 %v2071_v16, %v2062_v51 }
 0x396   : > { %3170 = vmatpush.msra.mxu3 %v2466_v26  ;;  %v1960_v17 = vor.u32 %v1959_v36, %v1958_v55  ;;  %v1963_v3 = vshll.u32 %v1962_v30, 23  ;;  %v2084_v48 = vshrl.u32 %v2079_v2, 16  ;;  %v2093_v1 = vadd.s32 %v2092_v31, %v2082_v37 }
 0x397   : > { %v2091_v57 = vadd.s32 %v2087_v46, %v2083_v39  ;;  %v2041_v25 = vsel %vm2035_vm6, %v2038_v52, %v2040_v11  ;;  %vm1849_vm3 = vcmp.lt.s32.totalorder %v8970_v35, 0  ;;  %v1971_v15 = vsub.s32 4, %v7396_v12 }
 0x398   : > { %v1964_v18 = vor.u32 4788187, %v1963_v3  ;;  %v1967_v50 = vcvt.s32.f32 %v1960_v17  ;;  %v2094_v49 = vadd.s32 %v2093_v1, %v2084_v48  ;;  %v2095_v22 = vmul.u32 %v7371_v19, %v2041_v25 }
 0x399   : > { %vm2097_vm9 = vc.u32 %v2072_v32, %v2091_v57  ;;  %vm7435_vm4 = vcmp.le.f32.partialorder %v1847_v58, 0.7853982  ;;  %v1972_v19 = vsel %vm1849_vm3, %v1971_v15, %v7396_v12  ;;  %v2096_v51 = vadd.s32 %v2091_v57, %v2072_v32 }
 0x39a   : > { %v1965_v62 = vand.u32 2147483647, %v1964_v18  ;;  %v2098_v20 = vadd.s32 1, %v2094_v49  ;;  %v1974_v34 = vsel %vm7435_vm4, 0, %v1972_v19  ;;  %vm1990_vm8 = vweird.f32 %v8970_v35 }
 0x39b   : > { %v1991_v39 = vadd.s32 3, %v1974_v34  ;;  %vm2004_vm13 = vcmp.lt.s32.totalorder %v8975_v10, 0  ;;  %vm7456_vm12 = vcmp.le.f32.partialorder %v2002_v5, 0.7853982  ;;  %vm2145_vm2 = vweird.f32 %v8975_v10 }
 0x39c   : > { %v1968_v45 = vmul.f32 %v1967_v50, %v1965_v62  ;;  %v2099_v4 = vsel %vm2097_vm9, %v2098_v20, %v2094_v49  ;;  %v3087_v49 = vld [vmem:[%s8830_s5] sm:$0xff]  ;;  %v3088_v20 = vld [vmem:[%s8830_s5 + $0x8] sm:$0xff] }
 0x39d   : > { %v2100_v13 = vadd.s32 %v2099_v4, %v2095_v22  ;;  %v1992_v30 = vand.u32 3, %v1991_v39 }
 0x39e   : > { %v1969_v29 = vxor.u32 2147483648, %v1968_v45 }
 0x39f   : > { %v2101_v28 = vadd.s32 536870912, %v2100_v13  ;;  %vm1994_vm5 = vcmp.eq.s32.totalorder %v1992_v30, 0  ;;  %vm1997_vm7 = vcmp.eq.s32.totalorder %v1992_v30, 2  ;;  %vm1993_vm11 = vcmp.lt.s32.totalorder %v1992_v30, 2 }
 0x3a0   : > { %v1970_v6 = vsel %vm1849_vm3, %v1969_v29, %v1968_v45 }
 0x3a1   : > { %v1973_v53 = vsel %vm7435_vm4, %v8970_v35, %v1970_v6  ;;  %v2102_v60 = vshrl.u32 %v2101_v28, 30  ;;  %v3089_v28 = vld [vmem:[%s8830_s5 + $0x10] sm:$0xff] }
 0x3a2   : > { %v1975_v2 = vmul.f32 %v1973_v53, %v1973_v53 }
 0x3a3   : > { %v2103_v16 = vshll.u32 %v2102_v60, 30  ;;  %v2126_v4 = vsub.s32 4, %v2102_v60 }
 0x3a4   : > { %v1976_v63 = vmul.f32 -0.001358992, %v1975_v2  ;;  %v1983_v24 = vmul.f32 -0.00019511016, %v1975_v2 }
 0x3a5   : > { %v2104_v40 = vsub.s32 %v2100_v13, %v2103_v16 }
 0x3a6   : > { %v1977_v58 = vadd.f32 0.041655596, %v1976_v63  ;;  %v1984_v27 = vadd.f32 0.008332121, %v1983_v24 }
 0x3a7   : > { %vm2105_vm15 = vcmp.lt.s32.totalorder %v2104_v40, 0  ;;  %v2106_v8 = vsub.s32 0, %v2104_v40 }
 0x3a8   : > { %v1978_v41 = vmul.f32 %v1977_v58, %v1975_v2  ;;  %v1985_v59 = vmul.f32 %v1984_v27, %v1975_v2 }
 0x3a9   : > { %v2107_v12 = vsel %vm2105_vm15, %v2106_v8, %v2104_v40 }
 0x3aa   : > { %v1979_v33 = vadd.f32 -0.4999988, %v1978_v41  ;;  %v1986_v43 = vadd.f32 -0.16666654, %v1985_v59  ;;  %v2108_v23 = vclz %v2107_v12 }
 0x3ac   : > { %v1980_v46 = vmul.f32 %v1979_v33, %v1975_v2  ;;  %v1987_v44 = vmul.f32 %v1986_v43, %v1975_v2  ;;  %v4925_v26 = vadd.s32 4294967294, %v2108_v23  ;;  %v2127_v2 = vsel %vm2004_vm13, %v2126_v4, %v2102_v60  ;;  %v3090_v60 = vld [vmem:[%s8830_s5 + $0x18] sm:$0xff] }
 0x3ad   : > { %v2129_v63 = vsel %vm7456_vm12, 0, %v2127_v2 }
 0x3ae   : > { %v1981_v55 = vadd.f32 1.0, %v1980_v46  ;;  %v1988_v36 = vadd.f32 1.0, %v1987_v44  ;;  %vm4926_vm6 = vcmp.lt.s32.totalorder %v4925_v26, 0  ;;  %v2146_v16 = vadd.s32 3, %v2129_v63 }
 0x3af   : > { %v2111_v3 = vsel %vm4926_vm6, 0, %v4925_v26 }
 0x3b0   : > { %v1989_v0 = vmul.f32 %v1988_v36, %v1973_v53  ;;  %v1998_v42 = vxor.u32 2147483648, %v1981_v55  ;;  %v2112_v54 = vsub.s32 32, %v2111_v3  ;;  %v2116_v37 = vsub.s32 4294967266, %v2111_v3  ;;  %v7479_v36 = vpop.permute.xlu1 %3112 }
 0x3b1   : > { %v2113_v11 = vshll.u32 %v2104_v40, %v2111_v3  ;;  %v2147_v33 = vand.u32 3, %v2146_v16 }
 0x3b2   : > { %v1995_v17 = vxor.u32 2147483648, %v1989_v0  ;;  %v1999_v18 = vsel %vm1997_vm7, %v1998_v42, %v1989_v0  ;;  %v2114_v48 = vshrl.u32 %v2096_v51, %v2112_v54  ;;  %v2117_v1 = vadd.s32 127, %v2116_v37 }
 0x3b3   : > { %vm2149_vm14 = vcmp.eq.s32.totalorder %v2147_v33, 0  ;;  %vm2152_vm0 = vcmp.eq.s32.totalorder %v2147_v33, 2  ;;  %vm2148_vm1 = vcmp.lt.s32.totalorder %v2147_v33, 2 }
 0x3b4   : > { %v1996_v31 = vsel %vm1994_vm5, %v1981_v55, %v1995_v17  ;;  %v2115_v50 = vor.u32 %v2114_v48, %v2113_v11  ;;  %v2118_v25 = vshll.u32 %v2117_v1, 23  ;;  %v3103_v17 = vpop.permute.xlu0 %3102  ;;  %v3108_v11 = vpop.permute.xlu2 %3107 }
 0x3b5   : > { %v2000_v52 = vsel %vm1993_vm11, %v1996_v31, %v1999_v18 }
 0x3b6   : > { %v2001_v62 = vsel %vm1990_vm8, nan, %v2000_v52  ;;  %v2119_v32 = vor.u32 4788187, %v2118_v25  ;;  %v2122_v35 = vcvt.s32.f32 %v2115_v50 }
 0x3b7   : > { %3142 = vmatpush.msra.mxu2 %v2001_v62 }
 0x3b8   : > { %4945 = vmatmul.msk.f32.vlgmr.msra.gmra.mxu2 %vm1768_vm10, %v3087_v49  ;;  %v2120_v57 = vand.u32 2147483647, %v2119_v32  ;;  %v3098_v26 = vpop.permute.xlu1 %3097 }
 0x3ba   : > { %v2123_v45 = vmul.f32 %v2122_v35, %v2120_v57 }
 0x3bc   : > { %v2124_v29 = vxor.u32 2147483648, %v2123_v45 }
 0x3be   : > { %v2125_v15 = vsel %vm2004_vm13, %v2124_v29, %v2123_v45 }
 0x3bf   : > { %v2128_v21 = vsel %vm7456_vm12, %v8975_v10, %v2125_v15 }
 0x3c0   : > { %4946 = vmatmul.msk.f32.gmra.mxu2 %vm1768_vm10, %v3088_v20  ;;  %v2130_v6 = vmul.f32 %v2128_v21, %v2128_v21 }
 0x3c2   : > { %v2131_v13 = vmul.f32 -0.001358992, %v2130_v6  ;;  %v2138_v53 = vmul.f32 -0.00019511016, %v2130_v6 }
 0x3c4   : > { %v2132_v5 = vadd.f32 0.041655596, %v2131_v13  ;;  %v2139_v19 = vadd.f32 0.008332121, %v2138_v53 }
 0x3c6   : > { %v2133_v24 = vmul.f32 %v2132_v5, %v2130_v6  ;;  %v2140_v34 = vmul.f32 %v2139_v19, %v2130_v6 }
 0x3c8   : > { %4947 = vmatmul.msk.f32.gmra.mxu2 %vm1768_vm10, %v3089_v28  ;;  %v2134_v58 = vadd.f32 -0.4999988, %v2133_v24  ;;  %v2141_v27 = vadd.f32 -0.16666654, %v2140_v34 }
 0x3ca   : > { %v2135_v41 = vmul.f32 %v2134_v58, %v2130_v6  ;;  %v2142_v59 = vmul.f32 %v2141_v27, %v2130_v6 }
 0x3cc   : > { %v2136_v40 = vadd.f32 1.0, %v2135_v41  ;;  %v2143_v39 = vadd.f32 1.0, %v2142_v59 }
 0x3ce   : > { %v2144_v43 = vmul.f32 %v2143_v39, %v2128_v21  ;;  %v2153_v8 = vxor.u32 2147483648, %v2136_v40 }
 0x3d0   : > { %4948 = vmatmul.msk.f32.gmra.mxu2 %vm1768_vm10, %v3090_v60  ;;  %v2150_v46 = vxor.u32 2147483648, %v2144_v43  ;;  %v2154_v12 = vsel %vm2152_vm0, %v2153_v8, %v2144_v43 }
 0x3d2   : > { %v2151_v44 = vsel %vm2149_vm14, %v2136_v40, %v2150_v46 }
 0x3d3   : > { %v2155_v23 = vsel %vm2148_vm1, %v2151_v44, %v2154_v12 }
 0x3d4   : > { %v2156_v55 = vsel %vm2145_vm2, nan, %v2155_v23 }
 0x3d5   : > { %3171 = vmatpush.msra.mxu3 %v2156_v55 }
 0x3d6   : > { %4949 = vmatmul.msk.f32.vlgmr.msra.gmra.mxu3 %vm1768_vm10, %v3087_v49 }
 0x3de   : > { %4950 = vmatmul.msk.f32.gmra.mxu3 %vm1768_vm10, %v3088_v20 }
 0x3e6   : > { %4951 = vmatmul.msk.f32.gmra.mxu3 %vm1768_vm10, %v3089_v28 }
 0x3ee   : > { %4952 = vmatmul.msk.f32.gmra.mxu3 %vm1768_vm10, %v3090_v60 }
 0x43b   : > { %v3144_v30 = vpop.f32.mrf.mxu2 }
 0x43c   : > { %v3145_v0 = vadd.f32 %v3144_v30, %v3098_v26 }
 0x43e   : > { %v7481_v42 = vmul.f32 30.0, %v3145_v0 }
 0x440   : > { %8982 = vst [vmem:[#allocation19_spill] sm:$0xff] %v7481_v42  ;;  %v3196_v10 = vand.u32 2139095040, %v7481_v42 }
 0x442   : > { %v3197_v54 = vshrl.u32 %v3196_v10, 23 }
 0x443   : > { %v3147_v3 = vpop.f32.mrf.mxu2 }
 0x444   : > { %v3148_v51 = vadd.f32 %v3147_v3, %v3103_v17  ;;  %v4953_v18 = vadd.s32 4294967169, %v3197_v54 }
 0x446   : > { %v7484_v37 = vmul.f32 30.0, %v3148_v51  ;;  %v3203_v50 = vadd.s32 1, %v4953_v18 }
 0x448   : > { %v3506_v31 = vand.u32 2139095040, %v7484_v37  ;;  %vm3204_vm9 = vcmp.gt.s32.totalorder %v3203_v50, 0 }
 0x449   : > { %v3205_v22 = vsel %vm3204_vm9, %v3203_v50, 0 }
 0x44a   : > { %v3507_v52 = vshrl.u32 %v3506_v31, 23  ;;  %v7494_v2 = vand.u32 31, %v3205_v22  ;;  %v7514_v43 = vshrl.u32 %v3205_v22, 5 }
 0x44b   : > { %v3150_v62 = vpop.f32.mrf.mxu2 }
 0x44c   : > { %v4959_v1 = vadd.s32 4294967169, %v3507_v52  ;;  %v3151_v49 = vadd.f32 %v3150_v62, %v3108_v11  ;;  %8984 = vst [vmem:[#allocation11_spill] sm:$0xff] %v7494_v2  ;;  %v7503_v58 = vsub.s32 32, %v7494_v2  ;;  %v3219_v44 = vshll.u32 %v8939_v7, %v7494_v2 }
 0x44d   : > { %8987 = vst [vmem:[#allocation16_spill] sm:$0xff] %v7514_v43  ;;  %v3222_v12 = vshll.u32 %v8940_v47, %v7494_v2  ;;  %vm3228_vm6 = vcmp.lt.s32.totalorder %v7514_v43, 4 }
 0x44e   : > { %v7489_v57 = vmul.f32 30.0, %v3151_v49  ;;  %v3513_v35 = vadd.s32 1, %v4959_v1  ;;  %8986 = vst [vmem:[#allocation21_spill] sm:$0xff] %v7503_v58  ;;  %v3220_v40 = vshrl.u32 %v8940_v47, %v7503_v58  ;;  %v3223_v39 = vshrl.u32 %v8941_v38, %v7503_v58 }
 0x450   : > { %v3816_v45 = vand.u32 2139095040, %v7489_v57  ;;  %vm3514_vm3 = vcmp.gt.s32.totalorder %v3513_v35, 0  ;;  %v7526_v10 = vor.u32 %v3220_v40, %v3219_v44 }
 0x451   : > { %v3515_v28 = vsel %vm3514_vm3, %v3513_v35, 0 }
 0x452   : > { %v3817_v29 = vshrl.u32 %v3816_v45, 23  ;;  %v7500_v24 = vand.u32 31, %v3515_v28  ;;  %8988 = vst [vmem:[#allocation20_spill] sm:$0xff] %v7526_v10  ;;  %v7528_v3 = vshrl.u32 %v3515_v28, 5  ;;  %v7544_v49 = vsel %vm3228_vm6, %v7526_v10, 920167782 }
 0x453   : > { %v3153_v21 = vpop.f32.mrf.mxu2  ;;  %8990 = vst [vmem:[#allocation7_spill] sm:$0xff] %v7544_v49 }
 0x454   : > { %v4965_v13 = vadd.s32 4294967169, %v3817_v29  ;;  %v3154_v53 = vadd.f32 %v3153_v21, %v7479_v36  ;;  %v7508_v60 = vsub.s32 32, %v7500_v24  ;;  %v3529_v51 = vshll.u32 %v8939_v7, %v7500_v24 }
 0x455   : > { %v3532_v54 = vshll.u32 %v8940_v47, %v7500_v24  ;;  %vm3538_vm7 = vcmp.lt.s32.totalorder %v7528_v3, 4 }
 0x456   : > { %v7498_v19 = vmul.f32 30.0, %v3154_v53  ;;  %v3823_v34 = vadd.s32 1, %v4965_v13  ;;  %v3530_v30 = vshrl.u32 %v8940_v47, %v7508_v60 }
 0x458   : > { %v4126_v41 = vand.u32 2139095040, %v7498_v19  ;;  %vm3824_vm4 = vcmp.gt.s32.totalorder %v3823_v34, 0  ;;  %v7539_v50 = vor.u32 %v3530_v30, %v3529_v51 }
 0x459   : > { %v3173_v48 = vpop.f32.mrf.mxu3  ;;  %v3825_v23 = vsel %vm3824_vm4, %v3823_v34, 0  ;;  %v8874_v34 = vand.u32 2147483647, %v7498_v19 }
 0x45a   : > { %v3174_v25 = vadd.f32 %v3173_v48, %v3098_v26  ;;  %v4127_v46 = vshrl.u32 %v4126_v41, 23  ;;  %v3533_v26 = vshrl.u32 %v8941_v38, %v7508_v60  ;;  %v7534_v18 = vand.u32 31, %v3825_v23  ;;  %8989 = vst [vmem:[#allocation22_spill] sm:$0xff] %v7539_v50 }
 0x45b   : > { %v7561_v21 = vsel %vm3538_vm7, %v7539_v50, 920167782  ;;  %v7570_v28 = vshrl.u32 %v3825_v23, 5 }
 0x45c   : > { %v7487_v32 = vmul.f32 30.0, %v3174_v25  ;;  %v4971_v0 = vadd.s32 4294967169, %v4127_v46  ;;  %v3534_v25 = vor.u32 %v3533_v26, %v3532_v54  ;;  %v7551_v29 = vsub.s32 32, %v7534_v18 }
 0x45d   : > { %v7591_v30 = vshll.u32 %v8940_v47, %v7534_v18  ;;  %vm3848_vm11 = vcmp.lt.s32.totalorder %v7570_v28, 4 }
 0x45e   : > { %8983 = vst [vmem:[#allocation9_spill] sm:$0xff] %v7487_v32  ;;  %v3351_v20 = vand.u32 2139095040, %v7487_v32  ;;  %v4133_v1 = vadd.s32 1, %v4971_v0  ;;  %v3840_v41 = vshrl.u32 %v8940_v47, %v7551_v29  ;;  %v4130_v0 = vand.u32 8388607, %v8874_v34 }
 0x460   : > { %v3352_v6 = vshrl.u32 %v3351_v20, 23  ;;  %vm4134_vm5 = vcmp.gt.s32.totalorder %v4133_v1, 0 }
 0x461   : > { %v3176_v15 = vpop.f32.mrf.mxu3 }
 0x462   : > { %v3177_v4 = vadd.f32 %v3176_v15, %v3103_v17  ;;  %v4956_v63 = vadd.s32 4294967169, %v3352_v6  ;;  %v3224_v17 = vor.u32 %v3223_v39, %v3222_v12  ;;  %v7565_v6 = vsel %vm3538_vm7, %v3534_v25, 1326507024 }
 0x464   : > { %v7496_v5 = vmul.f32 30.0, %v3177_v4  ;;  %v3358_v59 = vadd.s32 1, %v4956_v63  ;;  %v7555_v22 = vsel %vm3228_vm6, %v3224_v17, 1326507024 }
 0x465   : > { %8992 = vst [vmem:[#allocation18_spill] sm:$0xff] %v7555_v22 }
 0x466   : > { %8985 = vst [vmem:[#allocation15_spill] sm:$0xff] %v7496_v5  ;;  %v3661_v27 = vand.u32 2139095040, %v7496_v5  ;;  %vm3359_vm15 = vcmp.gt.s32.totalorder %v3358_v59, 0 }
 0x468   : > { %v3662_v8 = vshrl.u32 %v3661_v27, 23 }
 0x469   : > { %v3179_v16 = vpop.f32.mrf.mxu3 }
 0x46a   : > { %v3180_v33 = vadd.f32 %v3179_v16, %v3108_v11  ;;  %v4962_v31 = vadd.s32 4294967169, %v3662_v8  ;;  %v3360_v11 = vsel %vm3359_vm15, %v3358_v59, 0  ;;  %v3839_v16 = vshll.u32 %v8939_v7, %v7534_v18 }
 0x46b   : > { %v7548_v45 = vand.u32 31, %v3360_v11  ;;  %v7568_v53 = vshrl.u32 %v3360_v11, 5  ;;  %v7582_v59 = vshrl.u32 %v8941_v38, %v7551_v29 }
 0x46c   : > { %v7520_v55 = vmul.f32 30.0, %v3180_v33  ;;  %v3668_v20 = vadd.s32 1, %v4962_v31 }
 0x46d   : > { %8991 = vst [vmem:[#allocation17_spill] sm:$0xff] %v7548_v45  ;;  %v7574_v27 = vsub.s32 32, %v7548_v45 }
 0x46e   : > { %v3971_v48 = vand.u32 2139095040, %v7520_v55  ;;  %8993 = vst [vmem:[#allocation14_spill] sm:$0xff] %v7568_v53  ;;  %vm3669_vm8 = vcmp.gt.s32.totalorder %v3668_v20, 0 }
 0x46f   : > { %8994 = vst [vmem:[#allocation13_spill] sm:$0xff] %v7574_v27  ;;  %v3670_v23 = vsel %vm3669_vm8, %v3668_v20, 0 }
 0x470   : > { %v3972_v15 = vshrl.u32 %v3971_v48, 23 }
 0x471   : > { %v3182_v52 = vpop.f32.mrf.mxu3 }
 0x472   : > { %v3183_v62 = vadd.f32 %v3182_v52, %v7479_v36  ;;  %v4135_v36 = vsel %vm4134_vm5, %v4133_v1, 0  ;;  %v4968_v40 = vadd.s32 4294967169, %v3972_v15  ;;  %v7598_v52 = vor.u32 %v3840_v41, %v3839_v16 }
 0x473   : > { %v4137_v4 = vand.u32 31, %v4135_v36  ;;  %v7593_v26 = vshrl.u32 %v4135_v36, 5 }
 0x474   : > { %v7546_v35 = vmul.f32 30.0, %v3183_v62  ;;  %v3978_v11 = vadd.s32 1, %v4968_v40  ;;  %v7602_v62 = vshrl.u32 %v3670_v23, 5 }
 0x475   : > { %v4138_v63 = vsub.s32 32, %v4137_v4  ;;  %v4149_v8 = vshll.u32 %v8939_v7, %v4137_v4  ;;  %v4152_v46 = vshll.u32 %v8940_v47, %v4137_v4  ;;  %v4140_v31 = vshll.u32 %v8942_v61, %v4137_v4 }
 0x476   : > { %v4281_v13 = vand.u32 2139095040, %v7546_v35  ;;  %v4143_v48 = vshll.u32 %v8937_v56, %v4137_v4  ;;  %8995 = vst [vmem:[#allocation6_spill] sm:$0xff] %v7602_v62  ;;  %vm4158_vm13 = vcmp.lt.s32.totalorder %v7593_v26, 4  ;;  %vm3979_vm14 = vcmp.gt.s32.totalorder %v3978_v11, 0 }
 0x477   : > { %v4150_v39 = vshrl.u32 %v8940_v47, %v4138_v63  ;;  %v4153_v33 = vshrl.u32 %v8941_v38, %v4138_v63  ;;  %v4141_v12 = vshrl.u32 %v8937_v56, %v4138_v63  ;;  %v4144_v1 = vshrl.u32 %v8938_v14, %v4138_v63 }
 0x478   : > { %v4282_v44 = vshrl.u32 %v4281_v13, 23  ;;  %v4146_v13 = vshll.u32 %v8938_v14, %v4137_v4  ;;  %v4147_v16 = vshrl.u32 %v8939_v7, %v4138_v63  ;;  %vm4155_vm0 = vcmp.lt.s32.totalorder %v7593_v26, 1 }
 0x479   : > { %v4151_v17 = vor.u32 %v4150_v39, %v4149_v8  ;;  %v4154_v51 = vor.u32 %v4153_v33, %v4152_v46  ;;  %v4142_v36 = vor.u32 %v4141_v12, %v4140_v31  ;;  %v4145_v15 = vor.u32 %v4144_v1, %v4143_v48 }
 0x47a   : > { %v4974_v54 = vadd.s32 4294967169, %v4282_v44  ;;  %v4131_v39 = vor.u32 8388608, %v4130_v0  ;;  %v4148_v8 = vor.u32 %v4147_v16, %v4146_v13  ;;  %v7615_v46 = vand.u32 31, %v3670_v23 }
 0x47b   : > { %v4164_v41 = vsel %vm4158_vm13, %v4151_v17, 920167782  ;;  %v4168_v40 = vsel %vm4158_vm13, %v4154_v51, 1326507024  ;;  %vm4157_vm1 = vcmp.lt.s32.totalorder %v7593_v26, 3  ;;  %v4163_v4 = vsel %vm4155_vm0, %v4142_v36, %v4145_v15 }
 0x47c   : > { %v4288_v20 = vadd.s32 1, %v4974_v54  ;;  %8996 = vst [vmem:[#allocation12_spill] sm:$0xff] %v7615_v46  ;;  %v4160_v12 = vsel %vm4158_vm13, %v4148_v8, 2102212464  ;;  %v4165_v0 = vsel %vm4157_vm1, %v4148_v8, %v4164_v41  ;;  %v4167_v51 = vsel %vm4155_vm0, %v4145_v15, %v4148_v8 }
 0x47d   : > { %v4169_v23 = vsel %vm4157_vm1, %v4151_v17, %v4168_v40  ;;  %v7630_v54 = vsel %vm3979_vm14, %v3978_v11, 0  ;;  %v4139_v48 = vshrl.u32 %v8942_v61, %v4138_v63  ;;  %vm4156_vm2 = vcmp.lt.s32.totalorder %v7593_v26, 2 }
 0x47e   : > { %vm4289_vm12 = vcmp.gt.s32.totalorder %v4288_v20, 0  ;;  %v4170_v13 = vsel %vm4156_vm2, %v4167_v51, %v4169_v23  ;;  %v7643_v16 = vshll.u32 %v4131_v39, 8  ;;  %v4161_v63 = vsel %vm4157_vm1, %v4145_v15, %v4160_v12 }
 0x47f   : > { %v4290_v33 = vsel %vm4289_vm12, %v4288_v20, 0  ;;  %v4166_v20 = vsel %vm4156_vm2, %v4163_v4, %v4165_v0  ;;  %v4159_v11 = vsel %vm4155_vm0, %v4139_v48, %v4142_v36  ;;  %v4174_v41 = vand.u32 65535, %v4170_v13 }
 0x480   : > { %v7617_v44 = vand.u32 31, %v4290_v33  ;;  %v7637_v1 = vshrl.u32 %v4290_v33, 5  ;;  %v4172_v33 = vand.u32 65535, %v7643_v16  ;;  %v4173_v8 = vshrl.u32 %v7643_v16, 16 }
 0x481   : > { %v4175_v4 = vshrl.u32 %v4170_v13, 16  ;;  %v7656_v39 = vsub.s32 32, %v7615_v46  ;;  %v7661_v0 = vsel %vm3848_vm11, %v7598_v52, 920167782  ;;  %v4196_v36 = vand.u32 65535, %v4166_v20 }
 0x482   : > { %v7633_v31 = vsub.s32 32, %v7617_v44  ;;  %v4197_v51 = vshrl.u32 %v4166_v20, 16  ;;  %v4304_v15 = vshll.u32 %v8939_v7, %v7617_v44  ;;  %v4307_v12 = vshll.u32 %v8940_v47, %v7617_v44 }
 0x483   : > { %8997 = vst [vmem:[#allocation10_spill] sm:$0xff] %v7656_v39  ;;  %v4177_v23 = vmul.u32 %v4175_v4, %v4172_v33  ;;  %v4178_v48 = vmul.u32 %v4174_v41, %v4173_v8  ;;  %v7668_v13 = vand.u32 31, %v7630_v54  ;;  %vm4313_vm9 = vcmp.lt.s32.totalorder %v7637_v1, 4 }
 0x484   : > { %v4305_v17 = vshrl.u32 %v8940_v47, %v7633_v31  ;;  %v4308_v40 = vshrl.u32 %v8941_v38, %v7633_v31  ;;  %v7673_v34 = vsel %vm4156_vm2, %v4159_v11, %v4161_v63  ;;  %v4199_v25 = vmul.u32 %v4197_v51, %v4172_v33 }
 0x485   : > { %v4176_v49 = vmul.u32 %v4174_v41, %v4172_v33  ;;  %v4180_v53 = vshll.u32 %v4177_v23, 16  ;;  %v4179_v10 = vmul.u32 %v4175_v4, %v4173_v8  ;;  %v4198_v22 = vmul.u32 %v4196_v36, %v4172_v33 }
 0x486   : > { %v4306_v32 = vor.u32 %v4305_v17, %v4304_v15  ;;  %v4309_v20 = vor.u32 %v4308_v40, %v4307_v12  ;;  %v4200_v43 = vmul.u32 %v4196_v36, %v4173_v8  ;;  %v4202_v2 = vshll.u32 %v4199_v25, 16 }
 0x487   : > { %v4182_v58 = vshll.u32 %v4178_v48, 16  ;;  %vm4184_vm3 = vc.u32 %v4176_v49, %v4180_v53  ;;  %v4186_v42 = vadd.s32 %v4180_v53, %v4176_v49  ;;  %v4201_v27 = vmul.u32 %v4197_v51, %v4173_v8 }
 0x488   : > { %v4185_v45 = vsel %vm4184_vm3, 1, %v8943_v9  ;;  %v4204_v5 = vshll.u32 %v4200_v43, 16  ;;  %vm4206_vm4 = vc.u32 %v4198_v22, %v4202_v2  ;;  %v8892_v26 = vand.u32 2147483647, %v7546_v35 }
 0x489   : > { %v4187_v11 = vadd.s32 %v4185_v45, %v4179_v10  ;;  %vm4188_vm15 = vc.u32 %v4186_v42, %v4182_v58  ;;  %v4207_v17 = vsel %vm4206_vm4, 1, %v8943_v9  ;;  %v4208_v63 = vadd.s32 %v4202_v2, %v4198_v22 }
 0x48a   : > { %v4319_v41 = vsel %vm4313_vm9, %v4306_v32, 920167782  ;;  %v4323_v40 = vsel %vm4313_vm9, %v4309_v20, 1326507024  ;;  %v4189_v49 = vsel %vm4188_vm15, 1, %v8943_v9  ;;  %v4209_v53 = vadd.s32 %v4207_v17, %v4201_v27 }
 0x48b   : > { %v4181_v33 = vshrl.u32 %v4177_v23, 16  ;;  %v4183_v8 = vshrl.u32 %v4178_v48, 16  ;;  %v4191_v4 = vadd.s32 %v4189_v49, %v4187_v11  ;;  %vm4210_vm5 = vc.u32 %v4208_v63, %v4204_v5 }
 0x48c   : > { %v4211_v36 = vsel %vm4210_vm5, 1, %v8943_v9  ;;  %v4285_v42 = vand.u32 8388607, %v8892_v26  ;;  %v4295_v2 = vshll.u32 %v8942_v61, %v7617_v44  ;;  %v4296_v58 = vshrl.u32 %v8937_v56, %v7633_v31 }
 0x48d   : > { %v4192_v10 = vadd.s32 %v4191_v4, %v4181_v33  ;;  %v4203_v45 = vshrl.u32 %v4199_v25, 16  ;;  %v4213_v22 = vadd.s32 %v4211_v36, %v4209_v53  ;;  %v4298_v27 = vshll.u32 %v8937_v56, %v7617_v44 }
 0x48e   : > { %v7692_v51 = vor.u32 %v4296_v58, %v4295_v2  ;;  %v4299_v15 = vshrl.u32 %v8938_v14, %v7633_v31  ;;  %v4301_v12 = vshll.u32 %v8938_v14, %v7617_v44  ;;  %v4302_v23 = vshrl.u32 %v8939_v7, %v7633_v31 }
 0x48f   : > { %v7700_v48 = vadd.s32 %v4192_v10, %v4183_v8  ;;  %v4205_v20 = vshrl.u32 %v4200_v43, 16  ;;  %v7702_v11 = vadd.s32 %v4208_v63, %v4204_v5  ;;  %v4214_v25 = vadd.s32 %v4213_v22, %v4203_v45 }
 0x490   : > { %v4286_v17 = vor.u32 8388608, %v4285_v42  ;;  %v7704_v49 = vor.u32 %v4299_v15, %v4298_v27  ;;  %v4303_v53 = vor.u32 %v4302_v23, %v4301_v12  ;;  %vm4312_vm8 = vcmp.lt.s32.totalorder %v7637_v1, 3 }
 0x491   : > { %v4215_v33 = vadd.s32 %v4214_v25, %v4205_v20  ;;  %vm4310_vm13 = vcmp.lt.s32.totalorder %v7637_v1, 1  ;;  %vm4311_vm12 = vcmp.lt.s32.totalorder %v7637_v1, 2  ;;  %v4324_v44 = vsel %vm4312_vm8, %v4306_v32, %v4323_v40 }
 0x492   : > { %vm4218_vm14 = vc.u32 %v7700_v48, %v7702_v11  ;;  %v4318_v5 = vsel %vm4310_vm13, %v7692_v51, %v7704_v49  ;;  %v4320_v43 = vsel %vm4312_vm8, %v4303_v53, %v4319_v41  ;;  %v4322_v63 = vsel %vm4310_vm13, %v7704_v49, %v4303_v53 }
 0x493   : > { %v8998_v8 = vor.u32 %v7582_v59, %v7591_v30  ;;  %v4219_v40 = vadd.s32 1, %v4215_v33  ;;  %v4321_v4 = vsel %vm4311_vm12, %v4318_v5, %v4320_v43  ;;  %v4325_v36 = vsel %vm4311_vm12, %v4322_v63, %v4324_v44 }
 0x494   : > { %v4216_v41 = vmul.u32 %v7643_v16, %v7673_v34  ;;  %v7735_v42 = vshll.u32 %v4286_v17, 8  ;;  %v4329_v2 = vand.u32 65535, %v4325_v36  ;;  %v4330_v58 = vshrl.u32 %v4325_v36, 16 }
 0x495   : > { %v7727_v32 = vsel %vm3848_vm11, %v8998_v8, 1326507024  ;;  %v7739_v59 = vshll.u32 %v8939_v7, %v7615_v46  ;;  %v7742_v30 = vsub.s32 32, %v7668_v13  ;;  %v4220_v10 = vsel %vm4218_vm14, %v4219_v40, %v4215_v33 }
 0x496   : > { %v4352_v45 = vshrl.u32 %v4321_v4, 16  ;;  %v7746_v22 = vshrl.u32 %v8940_v47, %v7656_v39  ;;  %v4221_v27 = vadd.s32 %v4220_v10, %v4216_v41  ;;  %v4327_v34 = vand.u32 65535, %v7735_v42 }
 0x497   : > { %v4328_v16 = vshrl.u32 %v7735_v42, 16  ;;  %v7752_v15 = vshrl.u32 %v8941_v38, %v7656_v39  ;;  %v7755_v12 = vshrl.u32 %v7630_v54, 5  ;;  %v4351_v23 = vand.u32 65535, %v4321_v4 }
 0x498   : > { %v7760_v25 = vshll.u32 %v8939_v7, %v7668_v13  ;;  %v4222_v17 = vadd.s32 536870912, %v4221_v27  ;;  %v4332_v33 = vmul.u32 %v4330_v58, %v4327_v34  ;;  %v7764_v5 = vshrl.u32 %v8940_v47, %v7742_v30 }
 0x499   : > { %8999 = vst [vmem:[#allocation8_spill] sm:$0xff] %v7752_v15  ;;  %v4333_v44 = vmul.u32 %v4329_v2, %v4328_v16  ;;  %v7768_v43 = vshll.u32 %v8940_v47, %v7668_v13  ;;  %v7772_v54 = vshrl.u32 %v8941_v38, %v7742_v30  ;;  %v4354_v63 = vmul.u32 %v4352_v45, %v4327_v34 }
 0x49a   : > { %v7774_v8 = vshrl.u32 %v4222_v17, 30  ;;  %v4294_v40 = vshrl.u32 %v8942_v61, %v7633_v31  ;;  %v4331_v4 = vmul.u32 %v4329_v2, %v4327_v34  ;;  %v4335_v36 = vshll.u32 %v4332_v33, 16 }
 0x49b   : > { %v4334_v41 = vmul.u32 %v4330_v58, %v4328_v16  ;;  %v4353_v10 = vmul.u32 %v4351_v23, %v4327_v34  ;;  %v4355_v26 = vmul.u32 %v4351_v23, %v4328_v16  ;;  %v4357_v20 = vshll.u32 %v4354_v63, 16 }
 0x49c   : > { %v4224_v39 = vshll.u32 %v7774_v8, 30  ;;  %v4337_v15 = vshll.u32 %v4333_v44, 16  ;;  %vm4339_vm0 = vc.u32 %v4331_v4, %v4335_v36  ;;  %v4341_v62 = vadd.s32 %v4335_v36, %v4331_v4 }
 0x49d   : > { %v4315_v38 = vsel %vm4313_vm9, %v4303_v53, 2102212464  ;;  %v4336_v47 = vshrl.u32 %v4332_v33, 16  ;;  %v4340_v17 = vsel %vm4339_vm0, 1, %v8943_v9  ;;  %vm4361_vm1 = vc.u32 %v4353_v10, %v4357_v20 }
 0x49e   : > { %v7782_v46 = vsub.s32 %v4221_v27, %v4224_v39  ;;  %v4342_v31 = vadd.s32 %v4340_v17, %v4334_v41  ;;  %vm4343_vm2 = vc.u32 %v4341_v62, %v4337_v15  ;;  %v4356_v2 = vmul.u32 %v4352_v45, %v4328_v16 }
 0x49f   : > { %v4344_v58 = vsel %vm4343_vm2, 1, %v8943_v9  ;;  %v4359_v34 = vshll.u32 %v4355_v26, 16  ;;  %v4362_v23 = vsel %vm4361_vm1, 1, %v8943_v9  ;;  %v4363_v50 = vadd.s32 %v4357_v20, %v4353_v10 }
 0x4a0   : > { %vm4226_vm3 = vcmp.lt.s32.totalorder %v7782_v46, 0  ;;  %v4227_v4 = vsub.s32 0, %v7782_v46  ;;  %v4346_v53 = vadd.s32 %v4344_v58, %v4342_v31  ;;  %v4364_v33 = vadd.s32 %v4362_v23, %v4356_v2 }
 0x4a1   : > { %v3999_v36 = vor.u32 %v7772_v54, %v7768_v43  ;;  %vm4125_vm9 = vcmp.lt.s32.totalorder %v7498_v19, 0  ;;  %v4217_v62 = vadd.s32 %v7702_v11, %v7700_v48  ;;  %v4314_v39 = vsel %vm4310_vm13, %v4294_v40, %v7692_v51 }
 0x4a2   : > { %vm4365_vm4 = vc.u32 %v4363_v50, %v4359_v34  ;;  %v4228_v45 = vsel %vm4226_vm3, %v4227_v4, %v7782_v46  ;;  %v4338_v27 = vshrl.u32 %v4333_v44, 16  ;;  %v4347_v16 = vadd.s32 %v4346_v53, %v4336_v47 }
 0x4a3   : > { %v4366_v15 = vsel %vm4365_vm4, 1, %v8943_v9  ;;  %v4229_v20 = vclz %v4228_v45  ;;  %v4316_v41 = vsel %vm4312_vm8, %v7704_v49, %v4315_v38  ;;  %v4358_v10 = vshrl.u32 %v4354_v63, 16 }
 0x4a4   : > { %v4368_v17 = vadd.s32 %v4366_v15, %v4364_v33  ;;  %v7801_v31 = vadd.s32 %v4347_v16, %v4338_v27  ;;  %v4360_v48 = vshrl.u32 %v4355_v26, 16  ;;  %v9000_v11 = vand.u32 2147483647, %v7489_v57 }
 0x4a5   : > { %v3834_v40 = vshrl.u32 %v8938_v14, %v7551_v29  ;;  %v4972_v44 = vadd.s32 4294967294, %v4229_v20  ;;  %v3831_v2 = vshrl.u32 %v8937_v56, %v7551_v29  ;;  %v3837_v58 = vshrl.u32 %v8939_v7, %v7551_v29 }
 0x4a6   : > { %v3820_v51 = vand.u32 8388607, %v9000_v11  ;;  %v4369_v47 = vadd.s32 %v4368_v17, %v4358_v10  ;;  %v4247_v38 = vsub.s32 4, %v7774_v8  ;;  %v7812_v49 = vadd.s32 %v4363_v50, %v4359_v34 }
 0x4a7   : > { %v3833_v26 = vshll.u32 %v8937_v56, %v7534_v18  ;;  %v3836_v63 = vshll.u32 %v8938_v14, %v7534_v18  ;;  %v9001_v23 = vand.u32 2147483647, %v7498_v19  ;;  %vm4973_vm5 = vcmp.lt.s32.totalorder %v4972_v44, 0 }
 0x4a8   : > { %v4317_v53 = vsel %vm4311_vm12, %v4314_v39, %v4316_v41  ;;  %v4370_v33 = vadd.s32 %v4369_v47, %v4360_v48  ;;  %v3830_v50 = vshll.u32 %v8942_v61, %v7534_v18  ;;  %v4232_v34 = vsel %vm4973_vm5, 0, %v4972_v44 }
 0x4a9   : > { %vm7820_vm15 = vcmp.le.f32.partialorder %v9001_v23, 0.7853982  ;;  %vm4373_vm8 = vc.u32 %v7801_v31, %v7812_v49  ;;  %v3835_v45 = vor.u32 %v3834_v40, %v3833_v26  ;;  %v3838_v27 = vor.u32 %v3837_v58, %v3836_v63 }
 0x4aa   : > { %v4233_v16 = vsub.s32 32, %v4232_v34  ;;  %v4237_v15 = vsub.s32 4294967266, %v4232_v34  ;;  %v4374_v20 = vadd.s32 1, %v4370_v33  ;;  %v3832_v10 = vor.u32 %v3831_v2, %v3830_v50 }
 0x4ab   : > { %v4248_v17 = vsel %vm4125_vm9, %v4247_v38, %v7774_v8  ;;  %v4371_v1 = vmul.u32 %v7735_v42, %v4317_v53  ;;  %v3821_v39 = vor.u32 8388608, %v3820_v51  ;;  %vm3845_vm13 = vcmp.lt.s32.totalorder %v7570_v28, 1 }
 0x4ac   : > { %v4234_v18 = vshll.u32 %v7782_v46, %v4232_v34  ;;  %v4235_v41 = vshrl.u32 %v4217_v62, %v4233_v16  ;;  %v4238_v48 = vadd.s32 127, %v4237_v15  ;;  %v4375_v11 = vsel %vm4373_vm8, %v4374_v20, %v4370_v33 }
 0x4ad   : > { %v4376_v40 = vadd.s32 %v4375_v11, %v4371_v1  ;;  %vm3846_vm12 = vcmp.lt.s32.totalorder %v7570_v28, 2  ;;  %vm3847_vm14 = vcmp.lt.s32.totalorder %v7570_v28, 3  ;;  %v3857_v44 = vsel %vm3845_vm13, %v3835_v45, %v3838_v27 }
 0x4ae   : > { %v4236_v47 = vor.u32 %v4235_v41, %v4234_v18  ;;  %v4239_v8 = vshll.u32 %v4238_v48, 23  ;;  %v3853_v42 = vsel %vm3845_vm13, %v3832_v10, %v3835_v45  ;;  %v3859_v46 = vsel %vm3847_vm14, %v7598_v52, %v7727_v32 }
 0x4af   : > { %v4377_v62 = vadd.s32 536870912, %v4376_v40  ;;  %v3855_v51 = vsel %vm3847_vm14, %v3838_v27, %v7661_v0  ;;  %v3860_v2 = vsel %vm3846_vm12, %v3857_v44, %v3859_v46  ;;  %v7851_v58 = vshll.u32 %v3821_v39, 8 }
 0x4b0   : > { %vm4003_vm0 = vcmp.lt.s32.totalorder %v7755_v12, 4  ;;  %v4240_v38 = vor.u32 4788187, %v4239_v8  ;;  %v3864_v26 = vand.u32 65535, %v3860_v2  ;;  %v3865_v63 = vshrl.u32 %v3860_v2, 16 }
 0x4b1   : > { %v7856_v23 = vor.u32 %v7764_v5, %v7760_v25  ;;  %v4250_v52 = vsel %vm7820_vm15, 0, %v4248_v17  ;;  %v7860_v32 = vshrl.u32 %v4377_v62, 30  ;;  %v3862_v0 = vand.u32 65535, %v7851_v58 }
 0x4b2   : > { %v4241_v53 = vand.u32 2147483647, %v4240_v38  ;;  %v4243_v33 = vcvt.s32.f32 %v4236_v47  ;;  %v3856_v50 = vsel %vm3846_vm12, %v3853_v42, %v3855_v51  ;;  %v3863_v34 = vshrl.u32 %v7851_v58, 16 }
 0x4b3   : > { %v7871_v25 = vsel %vm4003_vm0, %v3999_v36, 1326507024  ;;  %v4379_v5 = vshll.u32 %v7860_v32, 30  ;;  %v3850_v16 = vsel %vm3848_vm11, %v3838_v27, 2102212464  ;;  %v3867_v15 = vmul.u32 %v3865_v63, %v3862_v0 }
 0x4b4   : > { %v4244_v20 = vmul.f32 %v4243_v33, %v4241_v53  ;;  %v4267_v17 = vadd.s32 3, %v4250_v52  ;;  %v3829_v1 = vshrl.u32 %v8942_v61, %v7551_v29  ;;  %v7878_v39 = vmul.u32 %v3864_v26, %v3863_v34 }
 0x4b5   : > { %v7880_v18 = vsub.s32 %v4376_v40, %v4379_v5  ;;  %v3866_v43 = vmul.u32 %v3864_v26, %v3862_v0  ;;  %v3870_v54 = vshll.u32 %v3867_v15, 16  ;;  %v3887_v41 = vshrl.u32 %v3856_v50, 16 }
 0x4b6   : > { %v4245_v36 = vxor.u32 2147483648, %v4244_v20  ;;  %v3849_v48 = vsel %vm3845_vm13, %v3829_v1, %v3832_v10  ;;  %v3851_v27 = vsel %vm3847_vm14, %v3835_v45, %v3850_v16  ;;  %v3886_v11 = vand.u32 65535, %v3856_v50 }
 0x4b7   : > { %vm4381_vm11 = vcmp.lt.s32.totalorder %v7880_v18, 0  ;;  %v4382_v44 = vsub.s32 0, %v7880_v18  ;;  %v3869_v29 = vmul.u32 %v3865_v63, %v3863_v34  ;;  %vm3874_vm1 = vc.u32 %v3866_v43, %v3870_v54 }
 0x4b8   : > { %v4246_v40 = vsel %vm4125_vm9, %v4245_v36, %v4244_v20  ;;  %v3872_v47 = vshll.u32 %v7878_v39, 16  ;;  %v3875_v8 = vsel %vm3874_vm1, 1, %v8943_v9  ;;  %v3876_v42 = vadd.s32 %v3870_v54, %v3866_v43 }
 0x4b9   : > { %v7895_v10 = vsel %vm7820_vm15, %v7498_v19, %v4246_v40  ;;  %v4383_v45 = vsel %vm4381_vm11, %v4382_v44, %v7880_v18  ;;  %v3877_v46 = vadd.s32 %v3875_v8, %v3869_v29  ;;  %v3889_v62 = vmul.u32 %v3887_v41, %v3862_v0 }
 0x4ba   : > { %v4251_v51 = vmul.f32 %v7895_v10, %v7895_v10  ;;  %v7900_v2 = vand.u32 3, %v4267_v17  ;;  %v4384_v38 = vclz %v4383_v45  ;;  %vm3878_vm2 = vc.u32 %v3876_v42, %v3872_v47 }
 0x4bb   : > { %v4372_v26 = vadd.s32 %v7812_v49, %v7801_v31  ;;  %v7906_v63 = vsel %vm3846_vm12, %v3849_v48, %v3851_v27  ;;  %v3879_v4 = vsel %vm3878_vm2, 1, %v8943_v9  ;;  %v3890_v52 = vmul.u32 %v3886_v11, %v3863_v34 }
 0x4bc   : > { %v4252_v53 = vmul.f32 -0.001358992, %v4251_v51  ;;  %v4259_v33 = vmul.f32 -0.00019511016, %v4251_v51  ;;  %v4975_v50 = vadd.s32 4294967294, %v4384_v38  ;;  %v3881_v5 = vadd.s32 %v3879_v4, %v3877_v46 }
 0x4bd   : > { %v4402_v16 = vsub.s32 4, %v7860_v32  ;;  %v3871_v20 = vshrl.u32 %v3867_v15, 16  ;;  %v3888_v17 = vmul.u32 %v3886_v11, %v3862_v0  ;;  %v3892_v1 = vshll.u32 %v3889_v62, 16 }
 0x4be   : > { %v4253_v43 = vadd.f32 0.041655596, %v4252_v53  ;;  %v4260_v54 = vadd.f32 0.008332121, %v4259_v33  ;;  %vm4280_vm3 = vcmp.lt.s32.totalorder %v7546_v35, 0  ;;  %vm4976_vm9 = vcmp.lt.s32.totalorder %v4975_v50, 0 }
 0x4bf   : > { %v3891_v28 = vmul.u32 %v3887_v41, %v3863_v34  ;;  %v4387_v31 = vsel %vm4976_vm9, 0, %v4975_v50  ;;  %v3894_v49 = vshll.u32 %v3890_v52, 16  ;;  %vm3896_vm4 = vc.u32 %v3888_v17, %v3892_v1 }
 0x4c0   : > { %v3898_v36 = vadd.s32 %v3892_v1, %v3888_v17  ;;  %v4254_v48 = vmul.f32 %v4253_v43, %v4251_v51  ;;  %v4261_v27 = vmul.f32 %v4260_v54, %v4251_v51  ;;  %v4388_v44 = vsub.s32 32, %v4387_v31 }
 0x4c1   : > { %v3882_v29 = vadd.s32 %v3881_v5, %v3871_v20  ;;  %v4392_v40 = vsub.s32 4294967266, %v4387_v31  ;;  %v3873_v47 = vshrl.u32 %v7878_v39, 16  ;;  %v3897_v0 = vsel %vm3896_vm4, 1, %v8943_v9 }
 0x4c2   : > { %vm3900_vm15 = vc.u32 %v3898_v36, %v3894_v49  ;;  %v4255_v15 = vadd.f32 -0.4999988, %v4254_v48  ;;  %v4262_v11 = vadd.f32 -0.16666654, %v4261_v27  ;;  %v4390_v8 = vshrl.u32 %v4372_v26, %v4388_v44 }
 0x4c3   : > { %v3899_v42 = vadd.s32 %v3897_v0, %v3891_v28  ;;  %vm4270_vm5 = vcmp.eq.s32.totalorder %v7900_v2, 0  ;;  %v4389_v34 = vshll.u32 %v7880_v18, %v4387_v31  ;;  %v4393_v41 = vadd.s32 127, %v4392_v40 }
 0x4c4   : > { %v3893_v45 = vshrl.u32 %v3889_v62, 16  ;;  %v3901_v46 = vsel %vm3900_vm15, 1, %v8943_v9  ;;  %v4256_v38 = vmul.f32 %v4255_v15, %v4251_v51  ;;  %v4263_v4 = vmul.f32 %v4262_v11, %v4251_v51 }
 0x4c5   : > { %vm4269_vm8 = vcmp.lt.s32.totalorder %v7900_v2, 2  ;;  %v7917_v39 = vadd.s32 %v3882_v29, %v3873_v47  ;;  %v3903_v53 = vadd.s32 %v3901_v46, %v3899_v42  ;;  %vm4266_vm13 = vweird.f32 %v7498_v19 }
 0x4c6   : > { %v4391_v33 = vor.u32 %v4390_v8, %v4389_v34  ;;  %v4394_v26 = vshll.u32 %v4393_v41, 23  ;;  %v3895_v50 = vshrl.u32 %v3890_v52, 16  ;;  %v3968_v5 = vand.u32 2147483647, %v7520_v55 }
 0x4c7   : > { %v4257_v20 = vadd.f32 1.0, %v4256_v38  ;;  %v4264_v18 = vadd.f32 1.0, %v4263_v4  ;;  %v7921_v17 = vadd.s32 %v3898_v36, %v3894_v49  ;;  %v3904_v62 = vadd.s32 %v3903_v53, %v3893_v45 }
 0x4c8   : > { %vm4273_vm12 = vcmp.eq.s32.totalorder %v7900_v2, 2  ;;  %v4395_v51 = vor.u32 4788187, %v4394_v26  ;;  %v4403_v1 = vsel %vm4280_vm3, %v4402_v16, %v7860_v32  ;;  %v3906_v43 = vmul.u32 %v7851_v58, %v7906_v63 }
 0x4c9   : > { %v4265_v54 = vmul.f32 %v4264_v18, %v7895_v10  ;;  %v4274_v52 = vxor.u32 2147483648, %v4257_v20  ;;  %v3905_v28 = vadd.s32 %v3904_v62, %v3895_v50  ;;  %vm3908_vm14 = vc.u32 %v7917_v39, %v7921_v17 }
 0x4ca   : > { %v4396_v31 = vand.u32 2147483647, %v4395_v51  ;;  %v4398_v49 = vcvt.s32.f32 %v4391_v33  ;;  %v3975_v36 = vand.u32 8388607, %v3968_v5  ;;  %v3989_v48 = vshrl.u32 %v8938_v14, %v7742_v30 }
 0x4cb   : > { %v4271_v27 = vxor.u32 2147483648, %v4265_v54  ;;  %v3909_v32 = vadd.s32 1, %v3905_v28  ;;  %v3986_v58 = vshrl.u32 %v8937_v56, %v7742_v30  ;;  %v3988_v10 = vshll.u32 %v8937_v56, %v7668_v13 }
 0x4cc   : > { %v4399_v63 = vmul.f32 %v4398_v49, %v4396_v31  ;;  %v3985_v16 = vshll.u32 %v8942_v61, %v7668_v13  ;;  %v3991_v44 = vshll.u32 %v8938_v14, %v7668_v13  ;;  %v3992_v29 = vshrl.u32 %v8939_v7, %v7742_v30 }
 0x4cd   : > { %v4272_v40 = vsel %vm4270_vm5, %v4257_v20, %v4271_v27  ;;  %v4275_v47 = vsel %vm4273_vm12, %v4274_v52, %v4265_v54  ;;  %v3910_v0 = vsel %vm3908_vm14, %v3909_v32, %v3905_v28  ;;  %v7950_v15 = vor.u32 %v3989_v48, %v3988_v10 }
 0x4ce   : > { %v4276_v11 = vsel %vm4269_vm8, %v4272_v40, %v4275_v47  ;;  %v4400_v8 = vxor.u32 2147483648, %v4399_v63  ;;  %v3911_v42 = vadd.s32 %v3910_v0, %v3906_v43  ;;  %v7954_v34 = vor.u32 %v3992_v29, %v3991_v44 }
 0x4cf   : > { %v4277_v13 = vsel %vm4266_vm13, nan, %v4276_v11  ;;  %v9004_v41 = vand.u32 2147483647, %v7546_v35  ;;  %v3976_v46 = vor.u32 8388608, %v3975_v36  ;;  %v7964_v38 = vor.u32 %v3986_v58, %v3985_v16 }
 0x4d0   : > { %4456 = vmatpush.msrb.mxu0 %v4277_v13  ;;  %v4401_v2 = vsel %vm4280_vm3, %v4400_v8, %v4399_v63  ;;  %v3912_v53 = vadd.s32 536870912, %v3911_v42  ;;  %vm4000_vm1 = vcmp.lt.s32.totalorder %v7755_v12, 1  ;;  %v4009_v19 = vsel %vm4003_vm0, %v7856_v23, 920167782 }
 0x4d1   : > { %vm7960_vm11 = vcmp.le.f32.partialorder %v9004_v41, 0.7853982  ;;  %vm4002_vm2 = vcmp.lt.s32.totalorder %v7755_v12, 3  ;;  %v4012_v26 = vsel %vm4000_vm1, %v7950_v15, %v7954_v34  ;;  %vm4001_vm3 = vcmp.lt.s32.totalorder %v7755_v12, 2 }
 0x4d2   : > { %v4405_v4 = vsel %vm7960_vm11, 0, %v4403_v1  ;;  %v7977_v33 = vsel %vm7960_vm11, %v7546_v35, %v4401_v2  ;;  %v7986_v20 = vshrl.u32 %v3912_v53, 30  ;;  %v4014_v18 = vsel %vm4002_vm2, %v7856_v23, %v7871_v25 }
 0x4d3   : > { %v4406_v50 = vmul.f32 %v7977_v33, %v7977_v33  ;;  %v4422_v62 = vadd.s32 3, %v4405_v4  ;;  %v4008_v51 = vsel %vm4000_vm1, %v7964_v38, %v7950_v15  ;;  %v4015_v1 = vsel %vm4001_vm3, %v4012_v26, %v4014_v18 }
 0x4d4   : > { %v7999_v43 = vshll.u32 %v3976_v46, 8  ;;  %v3914_v28 = vshll.u32 %v7986_v20, 30  ;;  %v4010_v31 = vsel %vm4002_vm2, %v7954_v34, %v4009_v19  ;;  %v4019_v49 = vand.u32 65535, %v4015_v1 }
 0x4d5   : > { %v4407_v54 = vmul.f32 -0.001358992, %v4406_v50  ;;  %v4414_v52 = vmul.f32 -0.00019511016, %v4406_v50  ;;  %v4020_v36 = vshrl.u32 %v4015_v1, 16  ;;  %v8011_v48 = vor.u32 %v7746_v22, %v7739_v59 }
 0x4d6   : > { %v4017_v23 = vand.u32 65535, %v7999_v43  ;;  %v8007_v25 = vshrl.u32 %v7999_v43, 16  ;;  %v8013_v58 = vsub.s32 %v3911_v42, %v3914_v28  ;;  %v8015_v10 = vand.u32 3, %v4422_v62 }
 0x4d7   : > { %v4408_v27 = vadd.f32 0.041655596, %v4407_v54  ;;  %v4415_v32 = vadd.f32 0.008332121, %v4414_v52  ;;  %v4011_v63 = vsel %vm4001_vm3, %v4008_v51, %v4010_v31  ;;  %vm3815_vm9 = vcmp.lt.s32.totalorder %v7489_v57, 0 }
 0x4d8   : > { %v4022_v16 = vmul.u32 %v4020_v36, %v4017_v23  ;;  %v8020_v44 = vmul.u32 %v4019_v49, %v8007_v25  ;;  %vm3916_vm4 = vcmp.lt.s32.totalorder %v8013_v58, 0  ;;  %v3917_v59 = vsub.s32 0, %v8013_v58 }
 0x4d9   : > { %v4409_v29 = vmul.f32 %v4408_v27, %v4406_v50  ;;  %v4416_v40 = vmul.f32 %v4415_v32, %v4406_v50  ;;  %v3907_v22 = vadd.s32 %v7921_v17, %v7917_v39  ;;  %v3984_v47 = vshrl.u32 %v8942_v61, %v7742_v30 }
 0x4da   : > { %v4021_v0 = vmul.u32 %v4019_v49, %v4017_v23  ;;  %v4025_v11 = vshll.u32 %v4022_v16, 16  ;;  %v3918_v13 = vsel %vm3916_vm4, %v3917_v59, %v8013_v58  ;;  %v4042_v41 = vshrl.u32 %v4011_v63, 16 }
 0x4db   : > { %v4410_v8 = vadd.f32 -0.4999988, %v4409_v29  ;;  %v4417_v42 = vadd.f32 -0.16666654, %v4416_v40  ;;  %vm4425_vm15 = vcmp.eq.s32.totalorder %v8015_v10, 0  ;;  %vm4428_vm5 = vcmp.eq.s32.totalorder %v8015_v10, 2 }
 0x4dc   : > { %v3919_v45 = vclz %v3918_v13  ;;  %v4024_v46 = vmul.u32 %v4020_v36, %v8007_v25  ;;  %v4027_v2 = vshll.u32 %v8020_v44, 16  ;;  %vm4029_vm8 = vc.u32 %v4021_v0, %v4025_v11 }
 0x4dd   : > { %v4411_v39 = vmul.f32 %v4410_v8, %v4406_v50  ;;  %v4418_v17 = vmul.f32 %v4417_v42, %v4406_v50  ;;  %vm4424_vm13 = vcmp.lt.s32.totalorder %v8015_v10, 2  ;;  %v4030_v30 = vsel %vm4029_vm8, 1, %v8943_v9 }
 0x4de   : > { %v4031_v4 = vadd.s32 %v4025_v11, %v4021_v0  ;;  %vm4421_vm12 = vweird.f32 %v7546_v35  ;;  %v4966_v53 = vadd.s32 4294967294, %v3919_v45  ;;  %v3937_v19 = vsub.s32 4, %v7986_v20 }
 0x4df   : > { %v4005_v26 = vsel %vm4003_vm0, %v7954_v34, 2102212464  ;;  %v4041_v18 = vand.u32 65535, %v4011_v63  ;;  %v4412_v62 = vadd.f32 1.0, %v4411_v39  ;;  %v4419_v51 = vadd.f32 1.0, %v4418_v17 }
 0x4e0   : > { %v4032_v1 = vadd.s32 %v4030_v30, %v4024_v46  ;;  %vm4033_vm14 = vc.u32 %v4031_v4, %v4027_v2  ;;  %vm4967_vm11 = vcmp.lt.s32.totalorder %v4966_v53, 0  ;;  %v4004_v50 = vsel %vm4000_vm1, %v3984_v47, %v7964_v38 }
 0x4e1   : > { %v4034_v54 = vsel %vm4033_vm14, 1, %v8943_v9  ;;  %v4044_v52 = vmul.u32 %v4042_v41, %v4017_v23  ;;  %v4420_v28 = vmul.f32 %v4419_v51, %v7977_v33  ;;  %v4429_v31 = vxor.u32 2147483648, %v4412_v62 }
 0x4e2   : > { %v3922_v49 = vsel %vm4967_vm11, 0, %v4966_v53  ;;  %v4036_v36 = vadd.s32 %v4034_v54, %v4032_v1  ;;  %v8049_v32 = vsel %vm3815_vm9, %v3937_v19, %v7986_v20  ;;  %v4006_v63 = vsel %vm4002_vm2, %v7950_v15, %v4005_v26 }
 0x4e3   : > { %v3923_v27 = vsub.s32 32, %v3922_v49  ;;  %v3927_v34 = vsub.s32 4294967266, %v3922_v49  ;;  %v4426_v38 = vxor.u32 2147483648, %v4420_v28  ;;  %v4026_v29 = vshrl.u32 %v4022_v16, 16 }
 0x4e4   : > { %v4043_v40 = vmul.u32 %v4041_v18, %v4017_v23  ;;  %v4045_v59 = vmul.u32 %v4041_v18, %v8007_v25  ;;  %v3924_v33 = vshll.u32 %v8013_v58, %v3922_v49  ;;  %v4047_v11 = vshll.u32 %v4044_v52, 16 }
 0x4e5   : > { %v3925_v47 = vshrl.u32 %v3907_v22, %v3923_v27  ;;  %v3928_v0 = vadd.s32 127, %v3927_v34  ;;  %v4427_v8 = vsel %vm4425_vm15, %v4412_v62, %v4426_v38  ;;  %v4430_v20 = vsel %vm4428_vm5, %v4429_v31, %v4420_v28 }
 0x4e6   : > { %v4037_v42 = vadd.s32 %v4036_v36, %v4026_v29  ;;  %v4046_v13 = vmul.u32 %v4042_v41, %v8007_v25  ;;  %v4431_v15 = vsel %vm4424_vm13, %v4427_v8, %v4430_v20  ;;  %vm4051_vm0 = vc.u32 %v4043_v40, %v4047_v11 }
 0x4e7   : > { %v3926_v23 = vor.u32 %v3925_v47, %v3924_v33  ;;  %v3929_v16 = vshll.u32 %v3928_v0, 23  ;;  %v4432_v58 = vsel %vm4421_vm12, nan, %v4431_v15  ;;  %v4049_v22 = vshll.u32 %v4045_v59, 16  ;;  %v9010_v15 = vld [vmem:[#allocation22_spill] sm:$0xff] }
 0x4e8   : > { %v4052_v45 = vsel %vm4051_vm0, 1, %v8943_v9  ;;  %v4053_v46 = vadd.s32 %v4047_v11, %v4043_v40  ;;  %4476 = vmatpush.msrb.mxu1 %v4432_v58  ;;  %v9007_v2 = vand.u32 2147483647, %v7489_v57  ;;  %v4007_v10 = vsel %vm4001_vm3, %v4004_v50, %v4006_v63 }
 0x4e9   : > { %v3930_v25 = vor.u32 4788187, %v3929_v16  ;;  %v4054_v41 = vadd.s32 %v4052_v45, %v4046_v13  ;;  %v4028_v17 = vshrl.u32 %v8020_v44, 16  ;;  %v3503_v30 = vand.u32 2147483647, %v7484_v37 }
 0x4ea   : > { %vm8068_vm1 = vcmp.le.f32.partialorder %v9007_v2, 0.7853982  ;;  %vm4055_vm2 = vc.u32 %v4053_v46, %v4049_v22  ;;  %v3933_v53 = vcvt.s32.f32 %v3926_v23  ;;  %v4048_v19 = vshrl.u32 %v4044_v52, 16 }
 0x4eb   : > { %v3940_v35 = vsel %vm8068_vm1, 0, %v8049_v32  ;;  %v3931_v4 = vand.u32 2147483647, %v3930_v25  ;;  %v4056_v26 = vsel %vm4055_vm2, 1, %v8943_v9  ;;  %v8080_v18 = vadd.s32 %v4037_v42, %v4028_v17  ;;  %v9011_v25 = vld [vmem:[#allocation12_spill] sm:$0xff] }
 0x4ec   : > { %v4050_v62 = vshrl.u32 %v4045_v59, 16  ;;  %v4058_v12 = vadd.s32 %v4056_v26, %v4054_v41  ;;  %v3520_v51 = vshll.u32 %v8942_v61, %v7500_v24  ;;  %v3510_v50 = vand.u32 8388607, %v3503_v30 }
 0x4ed   : > { %v3934_v1 = vmul.f32 %v3933_v53, %v3931_v4  ;;  %v3521_v44 = vshrl.u32 %v8937_v56, %v7508_v60  ;;  %v3523_v54 = vshll.u32 %v8937_v56, %v7500_v24  ;;  %v3524_v28 = vshrl.u32 %v8938_v14, %v7508_v60  ;;  %v9013_v4 = vld [vmem:[#allocation6_spill] sm:$0xff] }
 0x4ee   : > { %v4059_v52 = vadd.s32 %v4058_v12, %v4048_v19  ;;  %v3526_v31 = vshll.u32 %v8938_v14, %v7500_v24  ;;  %v3527_v49 = vshrl.u32 %v8939_v7, %v7508_v60  ;;  %v8096_v27 = vadd.s32 %v4053_v46, %v4049_v22 }
 0x4ef   : > { %v3935_v36 = vxor.u32 2147483648, %v3934_v1  ;;  %v3511_v34 = vor.u32 8388608, %v3510_v50  ;;  %v8098_v32 = vor.u32 %v3521_v44, %v3520_v51  ;;  %v4061_v38 = vmul.u32 %v7999_v43, %v4007_v10  ;;  %v9014_v50 = vld [vmem:[#allocation8_spill] sm:$0xff] }
 0x4f0   : > { %v4060_v63 = vadd.s32 %v4059_v52, %v4050_v62  ;;  %v8101_v29 = vor.u32 %v3524_v28, %v3523_v54  ;;  %v3528_v40 = vor.u32 %v3527_v49, %v3526_v31  ;;  %vm4063_vm3 = vc.u32 %v8080_v18, %v8096_v27 }
 0x4f1   : > { %v3936_v59 = vsel %vm3815_vm9, %v3935_v36, %v3934_v1  ;;  %vm3535_vm4 = vcmp.lt.s32.totalorder %v7528_v3, 1  ;;  %vm3537_vm15 = vcmp.lt.s32.totalorder %v7528_v3, 3  ;;  %v8118_v47 = vshll.u32 %v3511_v34, 8 }
 0x4f2   : > { %v8112_v24 = vsel %vm8068_vm1, %v7489_v57, %v3936_v59  ;;  %v4064_v33 = vadd.s32 1, %v4060_v63  ;;  %v3543_v43 = vsel %vm3535_vm4, %v8098_v32, %v8101_v29  ;;  %vm3536_vm9 = vcmp.lt.s32.totalorder %v7528_v3, 2 }
 0x4f3   : > { %v3941_v0 = vmul.f32 %v8112_v24, %v8112_v24  ;;  %v3545_v11 = vsel %vm3537_vm15, %v3528_v40, %v7561_v21  ;;  %v3547_v8 = vsel %vm3535_vm4, %v8101_v29, %v3528_v40  ;;  %v3957_v20 = vadd.s32 3, %v3940_v35 }
 0x4f4   : > { %v4065_v42 = vsel %vm4063_vm3, %v4064_v33, %v4060_v63  ;;  %v8131_v13 = vsel %vm3536_vm9, %v3543_v43, %v3545_v11  ;;  %v3549_v23 = vsel %vm3537_vm15, %v9010_v15, %v7565_v6  ;;  %v3552_v45 = vand.u32 65535, %v8118_v47 }
 0x4f5   : > { %v3942_v16 = vmul.f32 -0.001358992, %v3941_v0  ;;  %v3949_v58 = vmul.f32 -0.00019511016, %v3941_v0  ;;  %v4066_v22 = vadd.s32 %v4065_v42, %v4061_v38  ;;  %v3550_v21 = vsel %vm3536_vm9, %v3547_v8, %v3549_v23 }
 0x4f6   : > { %v8141_v46 = vshrl.u32 %v8118_v47, 16  ;;  %v3554_v2 = vand.u32 65535, %v3550_v21  ;;  %v3555_v39 = vshrl.u32 %v3550_v21, 16  ;;  %v9012_v10 = vmov 920167782  }
 0x4f7   : > { %v8145_v41 = vshll.u32 %v9012_v10, %v9011_v25  ;;  %v3943_v35 = vadd.f32 0.041655596, %v3942_v16  ;;  %v3950_v17 = vadd.f32 0.008332121, %v3949_v58  ;;  %v4067_v6 = vadd.s32 536870912, %v4066_v22 }
 0x4f8   : > { %vm3693_vm5 = vcmp.lt.s32.totalorder %v9013_v4, 4  ;;  %v3958_v53 = vand.u32 3, %v3957_v20  ;;  %v8148_v19 = vmul.u32 %v3555_v39, %v3552_v45  ;;  %v8151_v26 = vmul.u32 %v3554_v2, %v8141_v46 }
 0x4f9   : > { %v3944_v62 = vmul.f32 %v3943_v35, %v3941_v0  ;;  %v3951_v12 = vmul.f32 %v3950_v17, %v3941_v0  ;;  %v8153_v51 = vshrl.u32 %v4067_v6, 30  ;;  %v3577_v1 = vshrl.u32 %v8131_v13, 16 }
 0x4fa   : > { %v3689_v44 = vor.u32 %v9014_v50, %v8145_v41  ;;  %v8161_v54 = vsel %vm3693_vm5, %v8011_v48, 920167782  ;;  %v3556_v52 = vmul.u32 %v3554_v2, %v3552_v45  ;;  %v3560_v28 = vshll.u32 %v8148_v19, 16  ;;  %v9018_v41 = vld [vmem:[#allocation10_spill] sm:$0xff] }
 0x4fb   : > { %v3945_v31 = vadd.f32 -0.4999988, %v3944_v62  ;;  %v3952_v49 = vadd.f32 -0.16666654, %v3951_v12  ;;  %v4069_v36 = vshll.u32 %v8153_v51, 30  ;;  %v3519_v34 = vshrl.u32 %v8942_v61, %v7508_v60 }
 0x4fc   : > { %vm3960_vm8 = vcmp.eq.s32.totalorder %v3958_v53, 0  ;;  %v3540_v63 = vsel %vm3538_vm7, %v3528_v40, 2102212464  ;;  %v3562_v38 = vshll.u32 %v8151_v26, 16  ;;  %vm3564_vm13 = vc.u32 %v3556_v52, %v3560_v28 }
 0x4fd   : > { %v3566_v59 = vadd.s32 %v3560_v28, %v3556_v52  ;;  %v3946_v33 = vmul.f32 %v3945_v31, %v3941_v0  ;;  %v3953_v43 = vmul.f32 %v3952_v49, %v3941_v0  ;;  %vm3959_vm12 = vcmp.lt.s32.totalorder %v3958_v53, 2 }
 0x4fe   : > { %v8170_v11 = vsub.s32 %v4066_v22, %v4069_v36  ;;  %v8172_v8 = vmul.u32 %v3577_v1, %v3552_v45  ;;  %vm3956_vm14 = vweird.f32 %v7489_v57  ;;  %v3559_v20 = vmul.u32 %v3555_v39, %v8141_v46 }
 0x4ff   : > { %v3565_v60 = vsel %vm3564_vm13, 1, %v8943_v9  ;;  %vm3568_vm11 = vc.u32 %v3566_v59, %v3562_v38  ;;  %v3576_v40 = vand.u32 65535, %v8131_v13  ;;  %v3947_v42 = vadd.f32 1.0, %v3946_v33 }
 0x500   : > { %v3954_v15 = vadd.f32 1.0, %v3953_v43  ;;  %vm3970_vm7 = vcmp.lt.s32.totalorder %v7520_v55, 0  ;;  %vm4071_vm0 = vcmp.lt.s32.totalorder %v8170_v11, 0  ;;  %v4072_v0 = vsub.s32 0, %v8170_v11 }
 0x501   : > { %v3539_v23 = vsel %vm3535_vm4, %v3519_v34, %v8098_v32  ;;  %v3541_v16 = vsel %vm3537_vm15, %v8101_v29, %v3540_v63  ;;  %v3567_v58 = vadd.s32 %v3565_v60, %v3559_v20  ;;  %v3569_v22 = vsel %vm3568_vm11, 1, %v8943_v9  ;;  %v9017_v20 = vld [vmem:[#allocation15_spill] sm:$0xff] }
 0x502   : > { %v3955_v13 = vmul.f32 %v3954_v15, %v8112_v24  ;;  %v3964_v21 = vxor.u32 2147483648, %v3947_v42  ;;  %v4073_v2 = vsel %vm4071_vm0, %v4072_v0, %v8170_v11  ;;  %v3582_v39 = vshll.u32 %v8172_v8, 16 }
 0x503   : > { %vm3963_vm1 = vcmp.eq.s32.totalorder %v3958_v53, 2  ;;  %vm8193_vm2 = vcmp.le.f32.partialorder %v3968_v5, 0.7853982  ;;  %v4062_v32 = vadd.s32 %v8096_v27, %v8080_v18  ;;  %v4074_v29 = vclz %v4073_v2 }
 0x504   : > { %v3580_v17 = vmul.u32 %v3576_v40, %v8141_v46  ;;  %v3961_v6 = vxor.u32 2147483648, %v3955_v13  ;;  %v8202_v24 = vsel %vm3536_vm9, %v3539_v23, %v3541_v16  ;;  %v3571_v62 = vadd.s32 %v3569_v22, %v3567_v58 }
 0x505   : > { %v3578_v12 = vmul.u32 %v3576_v40, %v3552_v45  ;;  %v4969_v52 = vadd.s32 4294967294, %v4074_v29  ;;  %v4092_v28 = vsub.s32 4, %v8153_v51  ;;  %v3561_v5 = vshrl.u32 %v8148_v19, 16 }
 0x506   : > { %v3581_v31 = vmul.u32 %v3577_v1, %v8141_v46  ;;  %v3962_v49 = vsel %vm3960_vm8, %v3947_v42, %v3961_v6  ;;  %v3965_v18 = vsel %vm3963_vm1, %v3964_v21, %v3955_v13  ;;  %v3584_v3 = vshll.u32 %v3580_v17, 16 }
 0x507   : > { %vm3586_vm3 = vc.u32 %v3578_v12, %v3582_v39  ;;  %v3588_v27 = vadd.s32 %v3582_v39, %v3578_v12  ;;  %v3966_v36 = vsel %vm3959_vm12, %v3962_v49, %v3965_v18  ;;  %vm4970_vm4 = vcmp.lt.s32.totalorder %v4969_v52, 0  ;;  %v9019_v18 = vld [vmem:[#allocation17_spill] sm:$0xff] }
 0x508   : > { %v3587_v34 = vsel %vm3586_vm3, 1, %v8943_v9  ;;  %v3967_v45 = vsel %vm3956_vm14, nan, %v3966_v36  ;;  %v4077_v63 = vsel %vm4970_vm4, 0, %v4969_v52  ;;  %v3572_v38 = vadd.s32 %v3571_v62, %v3561_v5 }
 0x509   : > { %v3589_v59 = vadd.s32 %v3587_v34, %v3581_v31  ;;  %4457 = vmatpush.msrb.mxu0 %v3967_v45  ;;  %v4078_v19 = vsub.s32 32, %v4077_v63  ;;  %v4082_v46 = vsub.s32 4294967266, %v4077_v63  ;;  %v4093_v1 = vsel %vm3970_vm7, %v4092_v28, %v8153_v51  ;;  %v9020_v34 = vld [vmem:[#allocation13_spill] sm:$0xff] }
 0x50a   : > { %vm3590_vm15 = vc.u32 %v3588_v27, %v3584_v3  ;;  %v3563_v53 = vshrl.u32 %v8151_v26, 16  ;;  %v3583_v33 = vshrl.u32 %v8172_v8, 16  ;;  %v3658_v57 = vand.u32 2147483647, %v9017_v20 }
 0x50b   : > { %v3591_v43 = vsel %vm3590_vm15, 1, %v8943_v9  ;;  %v4079_v60 = vshll.u32 %v8170_v11, %v4077_v63  ;;  %v4080_v40 = vshrl.u32 %v4062_v32, %v4078_v19  ;;  %v4083_v42 = vadd.s32 127, %v4082_v46 }
 0x50c   : > { %v3593_v15 = vadd.s32 %v3591_v43, %v3589_v59  ;;  %v3703_v51 = vsel %vm3693_vm5, %v3689_v44, 1326507024  ;;  %v4095_v26 = vsel %vm8193_vm2, 0, %v4093_v1  ;;  %v3573_v0 = vadd.s32 %v3572_v38, %v3563_v53 }
 0x50d   : > { %v3665_v8 = vand.u32 8388607, %v3658_v57  ;;  %v4081_v23 = vor.u32 %v4080_v40, %v4079_v60  ;;  %v4084_v16 = vshll.u32 %v4083_v42, 23  ;;  %v3585_v58 = vshrl.u32 %v3580_v17, 16 }
 0x50e   : > { %v3594_v11 = vadd.s32 %v3593_v15, %v3583_v33  ;;  %v3592_v22 = vadd.s32 %v3588_v27, %v3584_v3  ;;  %v3596_v13 = vmul.u32 %v8118_v47, %v8202_v24  ;;  %v3676_v50 = vshrl.u32 %v8937_v56, %v9018_v41 }
 0x50f   : > { %v3666_v21 = vor.u32 8388608, %v3665_v8  ;;  %v4085_v44 = vor.u32 4788187, %v4084_v16  ;;  %v3678_v39 = vshll.u32 %v8937_v56, %v9011_v25  ;;  %v3679_v32 = vshrl.u32 %v8938_v14, %v9018_v41 }
 0x510   : > { %v3595_v2 = vadd.s32 %v3594_v11, %v3585_v58  ;;  %vm3598_vm9 = vc.u32 %v3573_v0, %v3592_v22  ;;  %v3675_v29 = vshll.u32 %v8942_v61, %v9011_v25  ;;  %v3681_v17 = vshll.u32 %v8938_v14, %v9011_v25 }
 0x511   : > { %v3682_v47 = vshrl.u32 %v8939_v7, %v9018_v41  ;;  %v4086_v6 = vand.u32 2147483647, %v4085_v44  ;;  %v4088_v24 = vcvt.s32.f32 %v4081_v23  ;;  %v8243_v12 = vor.u32 %v3679_v32, %v3678_v39 }
 0x512   : > { %v3599_v62 = vadd.s32 1, %v3595_v2  ;;  %v8245_v52 = vor.u32 %v3676_v50, %v3675_v29  ;;  %vm3690_vm8 = vcmp.lt.s32.totalorder %v9013_v4, 1  ;;  %vm3692_vm13 = vcmp.lt.s32.totalorder %v9013_v4, 3 }
 0x513   : > { %v3683_v28 = vor.u32 %v3682_v47, %v3681_v17  ;;  %v4089_v5 = vmul.f32 %v4088_v24, %v4086_v6  ;;  %v3704_v25 = vsel %vm3692_vm13, %v8011_v48, %v3703_v51  ;;  %v8252_v49 = vshll.u32 %v3666_v21, 8 }
 0x514   : > { %v3600_v31 = vsel %vm3598_vm9, %v3599_v62, %v3595_v2  ;;  %v3374_v27 = vshll.u32 %v8939_v7, %v9019_v18  ;;  %vm3691_vm12 = vcmp.lt.s32.totalorder %v9013_v4, 2  ;;  %v3375_v45 = vshrl.u32 %v9012_v10, %v9020_v34 }
 0x515   : > { %v3601_v36 = vadd.s32 %v3600_v31, %v3596_v13  ;;  %v3702_v3 = vsel %vm3690_vm8, %v8243_v12, %v3683_v28  ;;  %v8264_v63 = vshll.u32 %v9012_v10, %v9019_v18  ;;  %v4090_v48 = vxor.u32 2147483648, %v4089_v5 }
 0x516   : > { %v3705_v38 = vsel %vm3691_vm12, %v3702_v3, %v3704_v25  ;;  %v4112_v59 = vadd.s32 3, %v4095_v26  ;;  %v3698_v46 = vsel %vm3690_vm8, %v8245_v52, %v8243_v12  ;;  %v3700_v1 = vsel %vm3692_vm13, %v3683_v28, %v8161_v54 }
 0x517   : > { %v3602_v19 = vadd.s32 536870912, %v3601_v36  ;;  %v4091_v53 = vsel %vm3970_vm7, %v4090_v48, %v4089_v5  ;;  %v3707_v33 = vand.u32 65535, %v8252_v49  ;;  %v3709_v43 = vand.u32 65535, %v3705_v38 }
 0x518   : > { %v3710_v60 = vshrl.u32 %v3705_v38, 16  ;;  %v9021_v40 = vmov 1326507024   ;;  %v8285_v15 = vsel %vm8193_vm2, %v7520_v55, %v4091_v53  ;;  %v8290_v54 = vshrl.u32 %v8252_v49, 16 }
 0x519   : > { %v8280_v42 = vshrl.u32 %v9021_v40, %v9020_v34  ;;  %v8287_v51 = vshrl.u32 %v3602_v19, 30  ;;  %v8292_v26 = vor.u32 %v3375_v45, %v3374_v27  ;;  %v4096_v8 = vmul.f32 %v8285_v15, %v8285_v15 }
 0x51a   : > { %v3701_v23 = vsel %vm3691_vm12, %v3698_v46, %v3700_v1  ;;  %v3712_v16 = vmul.u32 %v3710_v60, %v3707_v33  ;;  %v8298_v58 = vand.u32 3, %v4112_v59  ;;  %v8300_v11 = vadd.s32 %v3592_v22, %v3573_v0 }
 0x51b   : > { %v3604_v35 = vshll.u32 %v8287_v51, 30  ;;  %v8304_v13 = vmul.u32 %v3709_v43, %v8290_v54  ;;  %v4097_v21 = vmul.f32 -0.001358992, %v4096_v8  ;;  %v4104_v50 = vmul.f32 -0.00019511016, %v4096_v8 }
 0x51c   : > { %v3711_v44 = vmul.u32 %v3709_v43, %v3707_v33  ;;  %v3715_v2 = vshll.u32 %v3712_v16, 16  ;;  %v3695_v32 = vsel %vm3693_vm5, %v3683_v28, 2102212464  ;;  %v3731_v29 = vand.u32 65535, %v3701_v23 }
 0x51d   : > { %v8306_v39 = vsub.s32 %v3601_v36, %v3604_v35  ;;  %v3732_v17 = vshrl.u32 %v3701_v23, 16  ;;  %v4098_v47 = vadd.f32 0.041655596, %v4097_v21  ;;  %v4105_v6 = vadd.f32 0.008332121, %v4104_v50 }
 0x51e   : > { %v3714_v0 = vmul.u32 %v3710_v60, %v8290_v54  ;;  %vm3719_vm14 = vc.u32 %v3711_v44, %v3715_v2  ;;  %v3717_v24 = vshll.u32 %v8304_v13, 16  ;;  %v3721_v25 = vadd.s32 %v3715_v2, %v3711_v44 }
 0x51f   : > { %vm3606_vm11 = vcmp.lt.s32.totalorder %v8306_v39, 0  ;;  %v3607_v22 = vsub.s32 0, %v8306_v39  ;;  %v3720_v62 = vsel %vm3719_vm14, 1, %v8943_v9  ;;  %v4099_v5 = vmul.f32 %v4098_v47, %v4096_v8 }
 0x520   : > { %v4106_v31 = vmul.f32 %v4105_v6, %v4096_v8  ;;  %v3722_v27 = vadd.s32 %v3720_v62, %v3714_v0  ;;  %v3674_v36 = vshrl.u32 %v8942_v61, %v9018_v41  ;;  %v3734_v3 = vmul.u32 %v3732_v17, %v3707_v33 }
 0x521   : > { %v3608_v28 = vsel %vm3606_vm11, %v3607_v22, %v8306_v39  ;;  %v8319_v45 = vmul.u32 %v3731_v29, %v8290_v54  ;;  %v4100_v48 = vadd.f32 -0.4999988, %v4099_v5  ;;  %vm4118_vm5 = vcmp.eq.s32.totalorder %v8298_v58, 2 }
 0x522   : > { %v4107_v38 = vadd.f32 -0.16666654, %v4106_v31  ;;  %v3609_v59 = vclz %v3608_v28  ;;  %vm3723_vm7 = vc.u32 %v3721_v25, %v3717_v24  ;;  %vm4115_vm0 = vcmp.eq.s32.totalorder %v8298_v58, 0 }
 0x523   : > { %v3627_v19 = vsub.s32 4, %v8287_v51  ;;  %v3694_v46 = vsel %vm3690_vm8, %v3674_v36, %v8245_v52  ;;  %v3696_v41 = vsel %vm3692_vm13, %v8243_v12, %v3695_v32  ;;  %v3724_v1 = vsel %vm3723_vm7, 1, %v8943_v9 }
 0x524   : > { %v4101_v53 = vmul.f32 %v4100_v48, %v4096_v8  ;;  %v4108_v43 = vmul.f32 %v4107_v38, %v4096_v8  ;;  %vm4114_vm1 = vcmp.lt.s32.totalorder %v8298_v58, 2  ;;  %v4960_v60 = vadd.s32 4294967294, %v3609_v59 }
 0x525   : > { %v3726_v23 = vadd.s32 %v3724_v1, %v3722_v27  ;;  %vm4111_vm2 = vweird.f32 %v7520_v55  ;;  %v3716_v35 = vshrl.u32 %v3712_v16, 16  ;;  %v3718_v21 = vshrl.u32 %v8304_v13, 16 }
 0x526   : > { %v3733_v50 = vmul.u32 %v3731_v29, %v3707_v33  ;;  %v3737_v44 = vshll.u32 %v3734_v3, 16  ;;  %v4102_v52 = vadd.f32 1.0, %v4101_v53  ;;  %v4109_v2 = vadd.f32 1.0, %v4108_v43 }
 0x527   : > { %vm4961_vm3 = vcmp.lt.s32.totalorder %v4960_v60, 0  ;;  %v3739_v12 = vshll.u32 %v8319_v45, 16  ;;  %v3727_v47 = vadd.s32 %v3726_v23, %v3716_v35  ;;  %v3736_v24 = vmul.u32 %v3732_v17, %v8290_v54 }
 0x528   : > { %v3612_v32 = vsel %vm4961_vm3, 0, %v4960_v60  ;;  %vm3741_vm4 = vc.u32 %v3733_v50, %v3737_v44  ;;  %v3743_v8 = vadd.s32 %v3737_v44, %v3733_v50  ;;  %v4110_v6 = vmul.f32 %v4109_v2, %v8285_v15  ;;  %v9026_v44 = vld [vmem:[#allocation11_spill] sm:$0xff] }
 0x529   : > { %v4119_v0 = vxor.u32 2147483648, %v4102_v52  ;;  %v3613_v22 = vsub.s32 32, %v3612_v32  ;;  %v3617_v16 = vsub.s32 4294967266, %v3612_v32  ;;  %v3738_v62 = vshrl.u32 %v3734_v3, 16  ;;  %v9022_v3 = vld [vmem:[#allocation19_spill] sm:$0xff] }
 0x52a   : > { %v3742_v33 = vsel %vm3741_vm4, 1, %v8943_v9  ;;  %vm3745_vm15 = vc.u32 %v3743_v8, %v3739_v12  ;;  %v4116_v13 = vxor.u32 2147483648, %v4110_v6  ;;  %v3614_v29 = vshll.u32 %v8306_v39, %v3612_v32 }
 0x52b   : > { %v3615_v5 = vshrl.u32 %v8300_v11, %v3613_v22  ;;  %v3744_v31 = vadd.s32 %v3742_v33, %v3736_v24  ;;  %v4120_v25 = vsel %vm4118_vm5, %v4119_v0, %v4110_v6  ;;  %v3618_v27 = vadd.s32 127, %v3617_v16  ;;  %v9027_v24 = vld [vmem:[#allocation16_spill] sm:$0xff]  ;;  %v9028_v33 = vld [vmem:[#allocation18_spill] sm:$0xff] }
 0x52c   : > { %v8342_v15 = vadd.s32 %v3727_v47, %v3718_v21  ;;  %v3746_v28 = vsel %vm3745_vm15, 1, %v8943_v9  ;;  %v4117_v54 = vsel %vm4115_vm0, %v4102_v52, %v4116_v13  ;;  %v3193_v48 = vand.u32 2147483647, %v9022_v3  ;;  %v9029_v13 = vld [vmem:[#allocation20_spill] sm:$0xff] }
 0x52d   : > { %v3616_v17 = vor.u32 %v3615_v5, %v3614_v29  ;;  %v3748_v36 = vadd.s32 %v3746_v28, %v3744_v31  ;;  %v4121_v39 = vsel %vm4114_vm1, %v4117_v54, %v4120_v25  ;;  %vm8352_vm9 = vcmp.le.f32.partialorder %v3503_v30, 0.7853982  ;;  %v9030_v31 = vld [vmem:[#allocation14_spill] sm:$0xff] }
 0x52e   : > { %vm3505_vm8 = vcmp.lt.s32.totalorder %v7484_v37, 0  ;;  %v3619_v38 = vshll.u32 %v3618_v27, 23  ;;  %v4122_v59 = vsel %vm4111_vm2, nan, %v4121_v39  ;;  %v3740_v1 = vshrl.u32 %v8319_v45, 16  ;;  %v9025_v45 = vld [vmem:[#allocation21_spill] sm:$0xff] }
 0x52f   : > { %v8360_v53 = vadd.s32 %v3743_v8, %v3739_v12  ;;  %v3749_v43 = vadd.s32 %v3748_v36, %v3738_v62  ;;  %4477 = vmatpush.msrb.mxu1 %v4122_v59  ;;  %v3628_v30 = vsel %vm3505_vm8, %v3627_v19, %v8287_v51  ;;  %v3697_v60 = vsel %vm3691_vm12, %v3694_v46, %v3696_v41 }
 0x530   : > { %v3620_v58 = vor.u32 4788187, %v3619_v38  ;;  %v3200_v23 = vand.u32 8388607, %v3193_v48  ;;  %v3623_v35 = vcvt.s32.f32 %v3616_v17  ;;  %v3211_v21 = vshrl.u32 %v8937_v56, %v9025_v45 }
 0x531   : > { %v3750_v55 = vadd.s32 %v3749_v43, %v3740_v1  ;;  %vm3753_vm13 = vc.u32 %v8342_v15, %v8360_v53  ;;  %v3210_v52 = vshll.u32 %v8942_v61, %v9026_v44  ;;  %v3213_v51 = vshll.u32 %v8937_v56, %v9026_v44 }
 0x532   : > { %v3621_v50 = vand.u32 2147483647, %v3620_v58  ;;  %v3214_v4 = vshrl.u32 %v8938_v14, %v9025_v45  ;;  %v3201_v46 = vor.u32 8388608, %v3200_v23  ;;  %v3216_v41 = vshll.u32 %v8938_v14, %v9026_v44 }
 0x533   : > { %v3754_v19 = vadd.s32 1, %v3750_v55  ;;  %v3217_v2 = vshrl.u32 %v8939_v7, %v9025_v45  ;;  %v3630_v32 = vsel %vm8352_vm9, 0, %v3628_v30  ;;  %v3751_v47 = vmul.u32 %v8252_v49, %v3697_v60 }
 0x534   : > { %v3624_v12 = vmul.f32 %v3623_v35, %v3621_v50  ;;  %v3215_v8 = vor.u32 %v3214_v4, %v3213_v51  ;;  %v3212_v0 = vor.u32 %v3211_v21, %v3210_v52  ;;  %vm3227_vm12 = vcmp.lt.s32.totalorder %v9027_v24, 3 }
 0x535   : > { %v3755_v6 = vsel %vm3753_vm13, %v3754_v19, %v3750_v55  ;;  %v3218_v22 = vor.u32 %v3217_v2, %v3216_v41  ;;  %vm3225_vm14 = vcmp.lt.s32.totalorder %v9027_v24, 1  ;;  %v3239_v29 = vsel %vm3227_vm12, %v9029_v13, %v9028_v33 }
 0x536   : > { %v3625_v16 = vxor.u32 2147483648, %v3624_v12  ;;  %v3756_v62 = vadd.s32 %v3755_v6, %v3751_v47  ;;  %v3379_v5 = vor.u32 %v8280_v42, %v8264_v63  ;;  %vm3383_vm11 = vcmp.lt.s32.totalorder %v9030_v31, 4  ;;  %v9031_v42 = vld [vmem:[#allocation7_spill] sm:$0xff] }
 0x537   : > { %v3237_v49 = vsel %vm3225_vm14, %v3215_v8, %v3218_v22  ;;  %v8397_v25 = vshll.u32 %v3201_v46, 8  ;;  %v3647_v28 = vadd.s32 3, %v3630_v32  ;;  %vm3226_vm5 = vcmp.lt.s32.totalorder %v9027_v24, 2 }
 0x538   : > { %v3626_v27 = vsel %vm3505_vm8, %v3625_v16, %v3624_v12  ;;  %v3757_v54 = vadd.s32 536870912, %v3756_v62  ;;  %v3233_v63 = vsel %vm3225_vm14, %v3212_v0, %v3215_v8  ;;  %v3235_v36 = vsel %vm3227_vm12, %v3218_v22, %v9031_v42 }
 0x539   : > { %v3629_v17 = vsel %vm8352_vm9, %v7484_v37, %v3626_v27  ;;  %v3240_v39 = vsel %vm3226_vm5, %v3237_v49, %v3239_v29  ;;  %v8415_v38 = vsel %vm3383_vm11, %v8292_v26, 920167782  ;;  %v3209_v43 = vshrl.u32 %v8942_v61, %v9025_v45 }
 0x53a   : > { %v3631_v59 = vmul.f32 %v3629_v17, %v3629_v17  ;;  %v8417_v1 = vshrl.u32 %v3757_v54, 30  ;;  %v3244_v11 = vand.u32 65535, %v3240_v39  ;;  %v3242_v58 = vand.u32 65535, %v8397_v25 }
 0x53b   : > { %v3243_v30 = vshrl.u32 %v8397_v25, 16  ;;  %v3245_v60 = vshrl.u32 %v3240_v39, 16  ;;  %v3236_v21 = vsel %vm3226_vm5, %v3233_v63, %v3235_v36  ;;  %v8428_v50 = vsel %vm3383_vm11, %v3379_v5, 1326507024 }
 0x53c   : > { %v3632_v23 = vmul.f32 -0.001358992, %v3631_v59  ;;  %v3639_v35 = vmul.f32 -0.00019511016, %v3631_v59  ;;  %v3759_v55 = vshll.u32 %v8417_v1, 30  ;;  %v8430_v44 = vand.u32 3, %v3647_v28 }
 0x53d   : > { %v3247_v52 = vmul.u32 %v3245_v60, %v3242_v58  ;;  %v8432_v45 = vmul.u32 %v3244_v11, %v3243_v30  ;;  %v3229_v46 = vsel %vm3225_vm14, %v3209_v43, %v3212_v0  ;;  %v3230_v41 = vsel %vm3228_vm6, %v3218_v22, 2102212464 }
 0x53e   : > { %v3633_v51 = vadd.f32 0.041655596, %v3632_v23  ;;  %v3640_v4 = vadd.f32 0.008332121, %v3639_v35  ;;  %v8434_v19 = vsub.s32 %v3756_v62, %v3759_v55  ;;  %v3246_v2 = vmul.u32 %v3244_v11, %v3242_v58 }
 0x53f   : > { %v3250_v12 = vshll.u32 %v3247_v52, 16  ;;  %v3267_v32 = vshrl.u32 %v3236_v21, 16  ;;  %v3249_v33 = vmul.u32 %v3245_v60, %v3243_v30  ;;  %v3252_v13 = vshll.u32 %v8432_v45, 16 }
 0x540   : > { %v3634_v47 = vmul.f32 %v3633_v51, %v3631_v59  ;;  %v3641_v6 = vmul.f32 %v3640_v4, %v3631_v59  ;;  %vm3761_vm7 = vcmp.lt.s32.totalorder %v8434_v19, 0  ;;  %v3762_v16 = vsub.s32 0, %v8434_v19 }
 0x541   : > { %vm3254_vm0 = vc.u32 %v3246_v2, %v3250_v12  ;;  %v3256_v62 = vadd.s32 %v3250_v12, %v3246_v2  ;;  %v3231_v27 = vsel %vm3227_vm12, %v3215_v8, %v3230_v41  ;;  %vm3649_vm1 = vcmp.lt.s32.totalorder %v8430_v44, 2 }
 0x542   : > { %v3635_v29 = vadd.f32 -0.4999988, %v3634_v47  ;;  %v3642_v5 = vadd.f32 -0.16666654, %v3641_v6  ;;  %v3763_v0 = vsel %vm3761_vm7, %v3762_v16, %v8434_v19  ;;  %v3255_v22 = vsel %vm3254_vm0, 1, %v8943_v9 }
 0x543   : > { %v3764_v49 = vclz %v3763_v0  ;;  %v3257_v28 = vadd.s32 %v3255_v22, %v3249_v33  ;;  %vm3258_vm6 = vc.u32 %v3256_v62, %v3252_v13  ;;  %v3266_v36 = vand.u32 65535, %v3236_v21  ;;  %v9032_v33 = vld [vmem:[#allocation9_spill] sm:$0xff] }
 0x544   : > { %v3636_v54 = vmul.f32 %v3635_v29, %v3631_v59  ;;  %v3643_v63 = vmul.f32 %v3642_v5, %v3631_v59  ;;  %v3259_v42 = vsel %vm3258_vm6, 1, %v8943_v9  ;;  %vm3646_vm2 = vweird.f32 %v7484_v37 }
 0x545   : > { %vm3650_vm3 = vcmp.eq.s32.totalorder %v8430_v44, 0  ;;  %vm3653_vm4 = vcmp.eq.s32.totalorder %v8430_v44, 2  ;;  %v3752_v39 = vadd.s32 %v8360_v53, %v8342_v15  ;;  %v4963_v11 = vadd.s32 4294967294, %v3764_v49 }
 0x546   : > { %v3637_v8 = vadd.f32 1.0, %v3636_v54  ;;  %v3644_v43 = vadd.f32 1.0, %v3643_v63  ;;  %v3261_v60 = vadd.s32 %v3259_v42, %v3257_v28  ;;  %v3269_v23 = vmul.u32 %v3267_v32, %v3242_v58 }
 0x547   : > { %vm4964_vm15 = vcmp.lt.s32.totalorder %v4963_v11, 0  ;;  %v8456_v59 = vsel %vm3226_vm5, %v3229_v46, %v3231_v27  ;;  %v3251_v35 = vshrl.u32 %v3247_v52, 16  ;;  %v3253_v55 = vshrl.u32 %v8432_v45, 16 }
 0x548   : > { %v3645_v21 = vmul.f32 %v3644_v43, %v3629_v17  ;;  %v3654_v51 = vxor.u32 2147483648, %v3637_v8  ;;  %v3767_v4 = vsel %vm4964_vm15, 0, %v4963_v11  ;;  %v3270_v41 = vmul.u32 %v3266_v36, %v3243_v30 }
 0x549   : > { %v3768_v2 = vsub.s32 32, %v3767_v4  ;;  %v3772_v12 = vsub.s32 4294967266, %v3767_v4  ;;  %v3268_v15 = vmul.u32 %v3266_v36, %v3242_v58  ;;  %v3272_v53 = vshll.u32 %v3269_v23, 16 }
 0x54a   : > { %v3651_v47 = vxor.u32 2147483648, %v3645_v21  ;;  %v3262_v6 = vadd.s32 %v3261_v60, %v3251_v35  ;;  %v3271_v16 = vmul.u32 %v3267_v32, %v3243_v30  ;;  %v3348_v13 = vand.u32 2147483647, %v9032_v33 }
 0x54b   : > { %v3655_v24 = vsel %vm3653_vm4, %v3654_v51, %v3645_v21  ;;  %vm3660_vm9 = vcmp.lt.s32.totalorder %v9017_v20, 0  ;;  %v3769_v52 = vshll.u32 %v8434_v19, %v3767_v4  ;;  %v3770_v17 = vshrl.u32 %v3752_v39, %v3768_v2 }
 0x54c   : > { %v3773_v45 = vadd.s32 127, %v3772_v12  ;;  %v3652_v46 = vsel %vm3650_vm3, %v3637_v8, %v3651_v47  ;;  %v3274_v62 = vshll.u32 %v3270_v41, 16  ;;  %vm3276_vm8 = vc.u32 %v3268_v15, %v3272_v53 }
 0x54d   : > { %v3278_v58 = vadd.s32 %v3272_v53, %v3268_v15  ;;  %v3656_v30 = vsel %vm3649_vm1, %v3652_v46, %v3655_v24  ;;  %v3771_v32 = vor.u32 %v3770_v17, %v3769_v52  ;;  %v3277_v5 = vsel %vm3276_vm8, 1, %v8943_v9 }
 0x54e   : > { %v3774_v29 = vshll.u32 %v3773_v45, 23  ;;  %v3657_v0 = vsel %vm3646_vm2, nan, %v3656_v30  ;;  %v3782_v19 = vsub.s32 4, %v8417_v1  ;;  %v3279_v22 = vadd.s32 %v3277_v5, %v3271_v16 }
 0x54f   : > { %vm3280_vm13 = vc.u32 %v3278_v58, %v3274_v62  ;;  %4458 = vmatpush.msrb.mxu0 %v3657_v0  ;;  %vm8474_vm12 = vcmp.le.f32.partialorder %v3658_v57, 0.7853982  ;;  %v8478_v27 = vadd.s32 %v3262_v6, %v3253_v55  ;;  %v3273_v28 = vshrl.u32 %v3269_v23, 16 }
 0x550   : > { %v3775_v44 = vor.u32 4788187, %v3774_v29  ;;  %v3281_v54 = vsel %vm3280_vm13, 1, %v8943_v9  ;;  %v3275_v63 = vshrl.u32 %v3270_v41, 16  ;;  %v8481_v37 = vadd.s32 %v3278_v58, %v3274_v62 }
 0x551   : > { %v3283_v42 = vadd.s32 %v3281_v54, %v3279_v22  ;;  %v3355_v36 = vand.u32 8388607, %v3348_v13  ;;  %v3778_v11 = vcvt.s32.f32 %v3771_v32  ;;  %v3365_v57 = vshll.u32 %v8942_v61, %v9019_v18 }
 0x552   : > { %v3776_v39 = vand.u32 2147483647, %v3775_v44  ;;  %v3366_v8 = vshrl.u32 %v8937_v56, %v9020_v34  ;;  %v3368_v23 = vshll.u32 %v8937_v56, %v9019_v18  ;;  %v3369_v35 = vshrl.u32 %v8938_v14, %v9020_v34 }
 0x553   : > { %v3284_v43 = vadd.s32 %v3283_v42, %v3273_v28  ;;  %v3356_v60 = vor.u32 8388608, %v3355_v36  ;;  %v3371_v51 = vshll.u32 %v8938_v14, %v9019_v18  ;;  %v3372_v4 = vshrl.u32 %v8939_v7, %v9020_v34 }
 0x554   : > { %v3779_v55 = vmul.f32 %v3778_v11, %v3776_v39  ;;  %v8493_v21 = vor.u32 %v3366_v8, %v3365_v57  ;;  %v3783_v41 = vsel %vm3660_vm9, %v3782_v19, %v8417_v1  ;;  %vm3288_vm14 = vc.u32 %v8478_v27, %v8481_v37 }
 0x555   : > { %v3285_v2 = vadd.s32 %v3284_v43, %v3275_v63  ;;  %v8504_v12 = vor.u32 %v3369_v35, %v3368_v23  ;;  %v8506_v53 = vor.u32 %v3372_v4, %v3371_v51  ;;  %vm3380_vm5 = vcmp.lt.s32.totalorder %v9030_v31, 1 }
 0x556   : > { %v3780_v15 = vxor.u32 2147483648, %v3779_v55  ;;  %vm3382_vm7 = vcmp.lt.s32.totalorder %v9030_v31, 3  ;;  %v8518_v6 = vshll.u32 %v3356_v60, 8  ;;  %v3286_v24 = vmul.u32 %v8397_v25, %v8456_v59 }
 0x557   : > { %v3289_v18 = vadd.s32 1, %v3285_v2  ;;  %v3388_v47 = vsel %vm3380_vm5, %v8493_v21, %v8504_v12  ;;  %v3394_v1 = vsel %vm3382_vm7, %v8292_v26, %v8428_v50  ;;  %v3390_v52 = vsel %vm3382_vm7, %v8506_v53, %v8415_v38 }
 0x558   : > { %v3781_v16 = vsel %vm3660_vm9, %v3780_v15, %v3779_v55  ;;  %v3392_v17 = vsel %vm3380_vm5, %v8504_v12, %v8506_v53  ;;  %v3785_v50 = vsel %vm8474_vm12, 0, %v3783_v41  ;;  %vm3381_vm0 = vcmp.lt.s32.totalorder %v9030_v31, 2 }
 0x559   : > { %v3784_v26 = vsel %vm8474_vm12, %v9017_v20, %v3781_v16  ;;  %v3290_v25 = vsel %vm3288_vm14, %v3289_v18, %v3285_v2  ;;  %v3391_v45 = vsel %vm3381_vm0, %v3388_v47, %v3390_v52  ;;  %v3395_v46 = vsel %vm3381_vm0, %v3392_v17, %v3394_v1 }
 0x55a   : > { %v3786_v59 = vmul.f32 %v3784_v26, %v3784_v26  ;;  %v3291_v38 = vadd.s32 %v3290_v25, %v3286_v24  ;;  %v3397_v62 = vand.u32 65535, %v8518_v6  ;;  %v3398_v58 = vshrl.u32 %v8518_v6, 16 }
 0x55b   : > { %v3399_v30 = vand.u32 65535, %v3395_v46  ;;  %v3400_v32 = vshrl.u32 %v3395_v46, 16  ;;  %v3802_v19 = vadd.s32 3, %v3785_v50  ;;  %v3422_v63 = vshrl.u32 %v3391_v45, 16 }
 0x55c   : > { %v3787_v29 = vmul.f32 -0.001358992, %v3786_v59  ;;  %v3794_v5 = vmul.f32 -0.00019511016, %v3786_v59  ;;  %v3292_v0 = vadd.s32 536870912, %v3291_v38  ;;  %v3421_v2 = vand.u32 65535, %v3391_v45 }
 0x55d   : > { %v3402_v22 = vmul.u32 %v3400_v32, %v3397_v62  ;;  %v8547_v49 = vmul.u32 %v3399_v30, %v3398_v58  ;;  %v3401_v42 = vmul.u32 %v3399_v30, %v3397_v62  ;;  %v3803_v8 = vand.u32 3, %v3802_v19 }
 0x55e   : > { %v3788_v44 = vadd.f32 0.041655596, %v3787_v29  ;;  %v3795_v28 = vadd.f32 0.008332121, %v3794_v5  ;;  %v8549_v54 = vshrl.u32 %v3292_v0, 30  ;;  %v3424_v51 = vmul.u32 %v3422_v63, %v3397_v62 }
 0x55f   : > { %v3405_v36 = vshll.u32 %v3402_v22, 16  ;;  %v3407_v43 = vshll.u32 %v8547_v49, 16  ;;  %v3404_v4 = vmul.u32 %v3400_v32, %v3398_v58  ;;  %vm3801_vm3 = vweird.f32 %v9017_v20 }
 0x560   : > { %v3789_v39 = vmul.f32 %v3788_v44, %v3786_v59  ;;  %v3796_v11 = vmul.f32 %v3795_v28, %v3786_v59  ;;  %v3294_v57 = vshll.u32 %v8549_v54, 30  ;;  %v3427_v50 = vshll.u32 %v3424_v51, 16 }
 0x561   : > { %vm3409_vm6 = vc.u32 %v3401_v42, %v3405_v36  ;;  %v3411_v60 = vadd.s32 %v3405_v36, %v3401_v42  ;;  %vm3804_vm4 = vcmp.lt.s32.totalorder %v3803_v8, 2  ;;  %vm3805_vm15 = vcmp.eq.s32.totalorder %v3803_v8, 0 }
 0x562   : > { %v3790_v23 = vadd.f32 -0.4999988, %v3789_v39  ;;  %v3797_v35 = vadd.f32 -0.16666654, %v3796_v11  ;;  %v3295_v55 = vsub.s32 %v3291_v38, %v3294_v57  ;;  %v3410_v41 = vsel %vm3409_vm6, 1, %v8943_v9 }
 0x563   : > { %vm3413_vm1 = vc.u32 %v3411_v60, %v3407_v43  ;;  %v3412_v1 = vadd.s32 %v3410_v41, %v3404_v4  ;;  %v3425_v38 = vmul.u32 %v3421_v2, %v3398_v58  ;;  %vm3808_vm9 = vcmp.eq.s32.totalorder %v3803_v8, 2 }
 0x564   : > { %v3791_v15 = vmul.f32 %v3790_v23, %v3786_v59  ;;  %v3798_v18 = vmul.f32 %v3797_v35, %v3786_v59  ;;  %vm3296_vm2 = vcmp.lt.s32.totalorder %v3295_v55, 0  ;;  %v3297_v47 = vsub.s32 0, %v3295_v55 }
 0x565   : > { %v3414_v16 = vsel %vm3413_vm1, 1, %v8943_v9  ;;  %v3423_v30 = vmul.u32 %v3421_v2, %v3397_v62  ;;  %v3287_v59 = vadd.s32 %v8481_v37, %v8478_v27  ;;  %v3364_v29 = vshrl.u32 %v8942_v61, %v9020_v34 }
 0x566   : > { %v3792_v24 = vadd.f32 1.0, %v3791_v15  ;;  %v3799_v52 = vadd.f32 1.0, %v3798_v18  ;;  %v3298_v17 = vsel %vm3296_vm2, %v3297_v47, %v3295_v55  ;;  %v3416_v5 = vadd.s32 %v3414_v16, %v3412_v1 }
 0x567   : > { %v3299_v25 = vclz %v3298_v17  ;;  %v3406_v19 = vshrl.u32 %v3402_v22, 16  ;;  %v3426_v44 = vmul.u32 %v3422_v63, %v3398_v58  ;;  %vm3431_vm8 = vc.u32 %v3423_v30, %v3427_v50 }
 0x568   : > { %v3800_v46 = vmul.f32 %v3799_v52, %v3784_v26  ;;  %v3809_v45 = vxor.u32 2147483648, %v3792_v24  ;;  %v3429_v28 = vshll.u32 %v3425_v38, 16  ;;  %v3432_v42 = vsel %vm3431_vm8, 1, %v8943_v9 }
 0x569   : > { %v4954_v32 = vadd.s32 4294967294, %v3299_v25  ;;  %v3433_v26 = vadd.s32 %v3427_v50, %v3423_v30  ;;  %v3434_v27 = vadd.s32 %v3432_v42, %v3426_v44  ;;  %v3417_v57 = vadd.s32 %v3416_v5, %v3406_v19 }
 0x56a   : > { %v3806_v0 = vxor.u32 2147483648, %v3800_v46  ;;  %v3810_v62 = vsel %vm3808_vm9, %v3809_v45, %v3800_v46  ;;  %v3385_v22 = vsel %vm3383_vm11, %v8506_v53, 2102212464  ;;  %v3408_v63 = vshrl.u32 %v8547_v49, 16 }
 0x56b   : > { %vm4955_vm13 = vcmp.lt.s32.totalorder %v4954_v32, 0  ;;  %vm3435_vm12 = vc.u32 %v3433_v26, %v3429_v28  ;;  %v3384_v35 = vsel %vm3380_vm5, %v3364_v29, %v8493_v21  ;;  %v3428_v4 = vshrl.u32 %v3424_v51, 16 }
 0x56c   : > { %v3807_v36 = vsel %vm3805_vm15, %v3792_v24, %v3806_v0  ;;  %v3302_v39 = vsel %vm4955_vm13, 0, %v4954_v32  ;;  %v3436_v8 = vsel %vm3435_vm12, 1, %v8943_v9  ;;  %v3386_v53 = vsel %vm3382_vm7, %v8504_v12, %v3385_v22 }
 0x56d   : > { %v3811_v37 = vsel %vm3804_vm4, %v3807_v36, %v3810_v62  ;;  %v3303_v11 = vsub.s32 32, %v3302_v39  ;;  %v3307_v34 = vsub.s32 4294967266, %v3302_v39  ;;  %v3304_v43 = vshll.u32 %v3295_v55, %v3302_v39 }
 0x56e   : > { %v3812_v58 = vsel %vm3801_vm3, nan, %v3811_v37  ;;  %v3438_v20 = vadd.s32 %v3436_v8, %v3434_v27  ;;  %v3418_v49 = vadd.s32 %v3417_v57, %v3408_v63  ;;  %v3430_v15 = vshrl.u32 %v3425_v38, 16 }
 0x56f   : > { %4478 = vmatpush.msrb.mxu1 %v3812_v58  ;;  %v3305_v60 = vshrl.u32 %v3287_v59, %v3303_v11  ;;  %v3308_v23 = vadd.s32 127, %v3307_v34  ;;  %v3437_v47 = vadd.s32 %v3433_v26, %v3429_v28  ;;  %v3387_v1 = vsel %vm3381_vm0, %v3384_v35, %v3386_v53 }
 0x570   : > { %v3439_v18 = vadd.s32 %v3438_v20, %v3428_v4  ;;  %v3441_v17 = vmul.u32 %v8518_v6, %v3387_v1  ;;  %vm3195_vm14 = vcmp.lt.s32.totalorder %v9022_v3, 0  ;;  %vm8583_vm5 = vcmp.le.f32.partialorder %v3193_v48, 0.7853982 }
 0x571   : > { %v3306_v41 = vor.u32 %v3305_v60, %v3304_v43  ;;  %v3309_v2 = vshll.u32 %v3308_v23, 23  ;;  %vm3443_vm11 = vc.u32 %v3418_v49, %v3437_v47  ;;  %v3317_v38 = vsub.s32 4, %v8549_v54 }
 0x572   : > { %v3440_v16 = vadd.s32 %v3439_v18, %v3430_v15  ;;  %v3442_v8 = vadd.s32 %v3437_v47, %v3418_v49  ;;  %vm3336_vm3 = vweird.f32 %v9022_v3  ;;  %v4433_v49 = vld [vmem:[%s8832_s7] sm:$0x1]  ;;  %vm3350_vm4 = vcmp.lt.s32.totalorder %v9032_v33, 0 }
 0x573   : > { %v3310_v55 = vor.u32 4788187, %v3309_v2  ;;  %v3313_v52 = vcvt.s32.f32 %v3306_v41  ;;  %v3318_v32 = vsel %vm3195_vm14, %v3317_v38, %v8549_v54  ;;  %vm3349_vm15 = vcmp.le.f32.partialorder %v3348_v13, 0.7853982 }
 0x574   : > { %v3444_v21 = vadd.s32 1, %v3440_v16  ;;  %v3320_v28 = vsel %vm8583_vm5, 0, %v3318_v32  ;;  %vm3491_vm12 = vweird.f32 %v9032_v33 }
 0x575   : > { %v3311_v24 = vand.u32 2147483647, %v3310_v55  ;;  %v3337_v27 = vadd.s32 3, %v3320_v28 }
 0x576   : > { %v3445_v50 = vsel %vm3443_vm11, %v3444_v21, %v3440_v16 }
 0x577   : > { %v3314_v51 = vmul.f32 %v3313_v52, %v3311_v24  ;;  %v3446_v46 = vadd.s32 %v3445_v50, %v3441_v17  ;;  %v3338_v63 = vand.u32 3, %v3337_v27 }
 0x579   : > { %v3315_v25 = vxor.u32 2147483648, %v3314_v51  ;;  %v3447_v45 = vadd.s32 536870912, %v3446_v46  ;;  %vm3340_vm6 = vcmp.eq.s32.totalorder %v3338_v63, 0  ;;  %vm3343_vm1 = vcmp.eq.s32.totalorder %v3338_v63, 2 }
 0x57a   : > { %vm3339_vm2 = vcmp.lt.s32.totalorder %v3338_v63, 2 }
 0x57b   : > { %v3316_v31 = vsel %vm3195_vm14, %v3315_v25, %v3314_v51  ;;  %v3448_v59 = vshrl.u32 %v3447_v45, 30 }
 0x57c   : > { %v3319_v30 = vsel %vm8583_vm5, %v9022_v3, %v3316_v31 }
 0x57d   : > { %v3321_v6 = vmul.f32 %v3319_v30, %v3319_v30  ;;  %v3449_v0 = vshll.u32 %v3448_v59, 30  ;;  %v3472_v50 = vsub.s32 4, %v3448_v59 }
 0x57f   : > { %v3322_v29 = vmul.f32 -0.001358992, %v3321_v6  ;;  %v3329_v5 = vmul.f32 -0.00019511016, %v3321_v6  ;;  %v3450_v44 = vsub.s32 %v3446_v46, %v3449_v0  ;;  %v3473_v38 = vsel %vm3350_vm4, %v3472_v50, %v3448_v59 }
 0x581   : > { %v3323_v19 = vadd.f32 0.041655596, %v3322_v29  ;;  %v3330_v48 = vadd.f32 0.008332121, %v3329_v5  ;;  %vm3451_vm7 = vcmp.lt.s32.totalorder %v3450_v44, 0  ;;  %v3452_v36 = vsub.s32 0, %v3450_v44 }
 0x583   : > { %v3324_v42 = vmul.f32 %v3323_v19, %v3321_v6  ;;  %v3331_v26 = vmul.f32 %v3330_v48, %v3321_v6  ;;  %v3453_v37 = vsel %vm3451_vm7, %v3452_v36, %v3450_v44 }
 0x584   : > { %v3454_v11 = vclz %v3453_v37 }
 0x585   : > { %v3325_v62 = vadd.f32 -0.4999988, %v3324_v42  ;;  %v3332_v39 = vadd.f32 -0.16666654, %v3331_v26 }
 0x586   : > { %v4957_v57 = vadd.s32 4294967294, %v3454_v11  ;;  %v8605_v11 = vpop.permute.xlu2 %4437 }
 0x587   : > { %v3326_v34 = vmul.f32 %v3325_v62, %v3321_v6  ;;  %v3333_v54 = vmul.f32 %v3332_v39, %v3321_v6  ;;  %v3475_v6 = vsel %vm3349_vm15, 0, %v3473_v38 }
 0x588   : > { %vm4958_vm0 = vcmp.lt.s32.totalorder %v4957_v57, 0  ;;  %v3492_v19 = vadd.s32 3, %v3475_v6 }
 0x589   : > { %v3327_v58 = vadd.f32 1.0, %v3326_v34  ;;  %v3334_v22 = vadd.f32 1.0, %v3333_v54  ;;  %v3457_v23 = vsel %vm4958_vm0, 0, %v4957_v57  ;;  %v4440_v34 = vperm.slane %v8605_v11, 0 }
 0x58a   : > { %v3458_v35 = vsub.s32 32, %v3457_v23  ;;  %v3462_v4 = vsub.s32 4294967266, %v3457_v23  ;;  %v3459_v41 = vshll.u32 %v3450_v44, %v3457_v23  ;;  %v3493_v42 = vand.u32 3, %v3492_v19 }
 0x58b   : > { %v3335_v43 = vmul.f32 %v3334_v22, %v3319_v30  ;;  %v3344_v60 = vxor.u32 2147483648, %v3327_v58 }
 0x58c   : > { %v3460_v2 = vshrl.u32 %v3442_v8, %v3458_v35  ;;  %v3463_v53 = vadd.s32 127, %v3462_v4  ;;  %vm3495_vm9 = vcmp.eq.s32.totalorder %v3493_v42, 0  ;;  %vm3498_vm8 = vcmp.eq.s32.totalorder %v3493_v42, 2 }
 0x58d   : > { %v3341_v20 = vxor.u32 2147483648, %v3335_v43  ;;  %v3345_v18 = vsel %vm3343_vm1, %v3344_v60, %v3335_v43  ;;  %vm3494_vm13 = vcmp.lt.s32.totalorder %v3493_v42, 2 }
 0x58e   : > { %v3461_v1 = vor.u32 %v3460_v2, %v3459_v41  ;;  %v3464_v16 = vshll.u32 %v3463_v53, 23 }
 0x58f   : > { %v3342_v15 = vsel %vm3340_vm6, %v3327_v58, %v3341_v20 }
 0x590   : > { %v3346_v55 = vsel %vm3339_vm2, %v3342_v15, %v3345_v18  ;;  %v3465_v47 = vor.u32 4788187, %v3464_v16  ;;  %v3468_v21 = vcvt.s32.f32 %v3461_v1 }
 0x591   : > { %v3347_v24 = vsel %vm3336_vm3, nan, %v3346_v55 }
 0x592   : > { %4459 = vmatpush.msrb.mxu0 %v3347_v24  ;;  %v3466_v52 = vand.u32 2147483647, %v3465_v47 }
 0x593   : > { %4977 = vmatmul.msk.f32.vlgmr.msrb.gmra.mxu0 %vm1768_vm10, %v4433_v49 }
 0x594   : > { %v3469_v51 = vmul.f32 %v3468_v21, %v3466_v52 }
 0x596   : > { %v3470_v17 = vxor.u32 2147483648, %v3469_v51 }
 0x598   : > { %v3471_v3 = vsel %vm3350_vm4, %v3470_v17, %v3469_v51 }
 0x599   : > { %v3474_v25 = vsel %vm3349_vm15, %v9032_v33, %v3471_v3 }
 0x59a   : > { %v3476_v46 = vmul.f32 %v3474_v25, %v3474_v25 }
 0x59c   : > { %v3477_v12 = vmul.f32 -0.001358992, %v3476_v46  ;;  %v3484_v31 = vmul.f32 -0.00019511016, %v3476_v46 }
 0x59e   : > { %v3478_v45 = vadd.f32 0.041655596, %v3477_v12  ;;  %v3485_v30 = vadd.f32 0.008332121, %v3484_v31 }
 0x5a0   : > { %v3479_v32 = vmul.f32 %v3478_v45, %v3476_v46  ;;  %v3486_v29 = vmul.f32 %v3485_v30, %v3476_v46 }
 0x5a2   : > { %v3480_v5 = vadd.f32 -0.4999988, %v3479_v32  ;;  %v3487_v0 = vadd.f32 -0.16666654, %v3486_v29 }
 0x5a4   : > { %v3481_v48 = vmul.f32 %v3480_v5, %v3476_v46  ;;  %v3488_v44 = vmul.f32 %v3487_v0, %v3476_v46 }
 0x5a6   : > { %v3482_v28 = vadd.f32 1.0, %v3481_v48  ;;  %v3489_v13 = vadd.f32 1.0, %v3488_v44 }
 0x5a8   : > { %v3490_v26 = vmul.f32 %v3489_v13, %v3474_v25  ;;  %v3499_v36 = vxor.u32 2147483648, %v3482_v28 }
 0x5aa   : > { %v3496_v62 = vxor.u32 2147483648, %v3490_v26  ;;  %v3500_v39 = vsel %vm3498_vm8, %v3499_v36, %v3490_v26 }
 0x5ac   : > { %v3497_v59 = vsel %vm3495_vm9, %v3482_v28, %v3496_v62 }
 0x5ad   : > { %v3501_v27 = vsel %vm3494_vm13, %v3497_v59, %v3500_v39 }
 0x5ae   : > { %v3502_v37 = vsel %vm3491_vm12, nan, %v3501_v27 }
 0x5af   : > { %4479 = vmatpush.msrb.mxu1 %v3502_v37 }
 0x5b0   : > { %4978 = vmatmul.msk.f32.vlgmr.msrb.gmra.mxu1 %vm1768_vm10, %v4433_v49 }
 0x610   : > { %v4461_v54 = vpop.f32.mrf.mxu0 }
 0x611   : > { %v4462_v57 = vadd.f32 %v4461_v54, %v4440_v34 }
 0x613   : > { %v8610_v58 = vmul.f32 30.0, %v4462_v57 }
 0x615   : > { %v4489_v22 = vand.u32 2139095040, %v8610_v58  ;;  %v4486_v33 = vand.u32 2147483647, %v8610_v58 }
 0x617   : > { %v4490_v63 = vshrl.u32 %v4489_v22, 23  ;;  %v4493_v23 = vand.u32 8388607, %v4486_v33 }
 0x619   : > { %v4979_v43 = vadd.s32 4294967169, %v4490_v63  ;;  %v4494_v20 = vor.u32 8388608, %v4493_v23 }
 0x61b   : > { %v4496_v60 = vadd.s32 1, %v4979_v43  ;;  %v8629_v50 = vshll.u32 %v4494_v20, 8 }
 0x61d   : > { %vm4497_vm11 = vcmp.gt.s32.totalorder %v4496_v60, 0  ;;  %v4535_v32 = vand.u32 65535, %v8629_v50  ;;  %v4536_v29 = vshrl.u32 %v8629_v50, 16 }
 0x61e   : > { %v4498_v8 = vsel %vm4497_vm11, %v4496_v60, 0 }
 0x61f   : > { %v4500_v35 = vand.u32 31, %v4498_v8  ;;  %v8616_v41 = vshrl.u32 %v4498_v8, 5 }
 0x621   : > { %v4501_v4 = vsub.s32 32, %v4500_v35  ;;  %v4503_v2 = vshll.u32 %v8942_v61, %v4500_v35  ;;  %v4506_v53 = vshll.u32 %v8937_v56, %v4500_v35  ;;  %v4509_v55 = vshll.u32 %v8938_v14, %v4500_v35 }
 0x622   : > { %v4512_v16 = vshll.u32 %v8939_v7, %v4500_v35  ;;  %v4515_v49 = vshll.u32 %v9012_v10, %v4500_v35  ;;  %vm4518_vm10 = vcmp.lt.s32.totalorder %v8616_v41, 1  ;;  %vm4521_vm14 = vcmp.lt.s32.totalorder %v8616_v41, 4 }
 0x623   : > { %v4504_v15 = vshrl.u32 %v8937_v56, %v4501_v4  ;;  %v4507_v18 = vshrl.u32 %v8938_v14, %v4501_v4  ;;  %v4510_v1 = vshrl.u32 %v8939_v7, %v4501_v4  ;;  %v4513_v24 = vshrl.u32 %v9012_v10, %v4501_v4 }
 0x624   : > { %v4516_v47 = vshrl.u32 %v9021_v40, %v4501_v4  ;;  %vm4520_vm5 = vcmp.lt.s32.totalorder %v8616_v41, 3  ;;  %vm4519_vm7 = vcmp.lt.s32.totalorder %v8616_v41, 2  ;;  %v4502_v20 = vshrl.u32 %v8942_v61, %v4501_v4 }
 0x625   : > { %v4505_v52 = vor.u32 %v4504_v15, %v4503_v2  ;;  %v4508_v21 = vor.u32 %v4507_v18, %v4506_v53  ;;  %v4511_v51 = vor.u32 %v4510_v1, %v4509_v55  ;;  %v4514_v17 = vor.u32 %v4513_v24, %v4512_v16 }
 0x626   : > { %v4517_v3 = vor.u32 %v4516_v47, %v4515_v49 }
 0x627   : > { %v4526_v25 = vsel %vm4518_vm10, %v4505_v52, %v4508_v21  ;;  %v4530_v46 = vsel %vm4518_vm10, %v4508_v21, %v4511_v51  ;;  %v4527_v12 = vsel %vm4521_vm14, %v4514_v17, 920167782  ;;  %v4523_v23 = vsel %vm4521_vm14, %v4511_v51, 2102212464 }
 0x628   : > { %v4531_v31 = vsel %vm4521_vm14, %v4517_v3, 1326507024  ;;  %v4528_v38 = vsel %vm4520_vm5, %v4511_v51, %v4527_v12  ;;  %v4522_v1 = vsel %vm4518_vm10, %v4502_v20, %v4505_v52  ;;  %v4524_v16 = vsel %vm4520_vm5, %v4508_v21, %v4523_v23 }
 0x629   : > { %v4532_v45 = vsel %vm4520_vm5, %v4514_v17, %v4531_v31  ;;  %v4529_v30 = vsel %vm4519_vm7, %v4526_v25, %v4528_v38  ;;  %v4525_v4 = vsel %vm4519_vm7, %v4522_v1, %v4524_v16 }
 0x62a   : > { %v4533_v6 = vsel %vm4519_vm7, %v4530_v46, %v4532_v45  ;;  %v4559_v19 = vand.u32 65535, %v4529_v30  ;;  %v4560_v48 = vshrl.u32 %v4529_v30, 16  ;;  %v4579_v52 = vmul.u32 %v8629_v50, %v4525_v4 }
 0x62b   : > { %v4537_v5 = vand.u32 65535, %v4533_v6  ;;  %v4538_v0 = vshrl.u32 %v4533_v6, 16 }
 0x62c   : > { %v4562_v13 = vmul.u32 %v4560_v48, %v4535_v32  ;;  %v4563_v42 = vmul.u32 %v4559_v19, %v4536_v29  ;;  %v4561_v59 = vmul.u32 %v4559_v19, %v4535_v32  ;;  %v4564_v54 = vmul.u32 %v4560_v48, %v4536_v29 }
 0x62d   : > { %v4540_v44 = vmul.u32 %v4538_v0, %v4535_v32  ;;  %v4541_v28 = vmul.u32 %v4537_v5, %v4536_v29  ;;  %v4539_v26 = vmul.u32 %v4537_v5, %v4535_v32  ;;  %v4542_v62 = vmul.u32 %v4538_v0, %v4536_v29  ;;  %v4481_v6 = vpop.f32.mrf.mxu1 }
 0x62e   : > { %v4565_v39 = vshll.u32 %v4562_v13, 16  ;;  %v4567_v22 = vshll.u32 %v4563_v42, 16  ;;  %v4566_v18 = vshrl.u32 %v4562_v13, 16  ;;  %v4568_v47 = vshrl.u32 %v4563_v42, 16 }
 0x62f   : > { %v4543_v36 = vshll.u32 %v4540_v44, 16  ;;  %v4545_v27 = vshll.u32 %v4541_v28, 16  ;;  %v4544_v2 = vshrl.u32 %v4540_v44, 16  ;;  %v4546_v24 = vshrl.u32 %v4541_v28, 16 }
 0x630   : > { %vm4569_vm6 = vc.u32 %v4561_v59, %v4565_v39  ;;  %v4571_v63 = vadd.s32 %v4565_v39, %v4561_v59  ;;  %v4482_v41 = vadd.f32 %v4481_v6, %v4440_v34 }
 0x631   : > { %vm4547_vm0 = vc.u32 %v4539_v26, %v4543_v36  ;;  %v4549_v37 = vadd.s32 %v4543_v36, %v4539_v26  ;;  %v4570_v60 = vsel %vm4569_vm6, 1, %v8943_v9  ;;  %vm4488_vm6 = vcmp.lt.s32.totalorder %v8610_v58, 0 }
 0x632   : > { %v4548_v57 = vsel %vm4547_vm0, 1, %v8943_v9  ;;  %v4572_v35 = vadd.s32 %v4570_v60, %v4564_v54  ;;  %vm4573_vm2 = vc.u32 %v4571_v63, %v4567_v22  ;;  %v8665_v3 = vadd.s32 %v4571_v63, %v4567_v22 }
 0x633   : > { %v4550_v43 = vadd.s32 %v4548_v57, %v4542_v62  ;;  %vm4551_vm1 = vc.u32 %v4549_v37, %v4545_v27  ;;  %v4574_v15 = vsel %vm4573_vm2, 1, %v8943_v9  ;;  %v8681_v29 = vmul.f32 30.0, %v4482_v41 }
 0x634   : > { %v4552_v8 = vsel %vm4551_vm1, 1, %v8943_v9  ;;  %v4576_v55 = vadd.s32 %v4574_v15, %v4572_v35  ;;  %vm8759_vm2 = vcmp.le.f32.partialorder %v4486_v33, 0.7853982 }
 0x635   : > { %v4554_v53 = vadd.s32 %v4552_v8, %v4550_v43  ;;  %v4644_v50 = vand.u32 2139095040, %v8681_v29  ;;  %v4641_v44 = vand.u32 2147483647, %v8681_v29 }
 0x636   : > { %v4577_v51 = vadd.s32 %v4576_v55, %v4566_v18 }
 0x637   : > { %v4555_v49 = vadd.s32 %v4554_v53, %v4544_v2  ;;  %v4645_v0 = vshrl.u32 %v4644_v50, 23  ;;  %v4648_v11 = vand.u32 8388607, %v4641_v44 }
 0x638   : > { %v4578_v25 = vadd.s32 %v4577_v51, %v4568_v47 }
 0x639   : > { %v8663_v17 = vadd.s32 %v4555_v49, %v4546_v24  ;;  %v4982_v48 = vadd.s32 4294967169, %v4645_v0  ;;  %v4649_v36 = vor.u32 8388608, %v4648_v11 }
 0x63a   : > { %v4582_v46 = vadd.s32 1, %v4578_v25 }
 0x63b   : > { %vm4581_vm3 = vc.u32 %v8663_v17, %v8665_v3  ;;  %v4651_v28 = vadd.s32 1, %v4982_v48  ;;  %v8710_v2 = vshll.u32 %v4649_v36, 8 }
 0x63c   : > { %v4583_v12 = vsel %vm4581_vm3, %v4582_v46, %v4578_v25 }
 0x63d   : > { %v4584_v21 = vadd.s32 %v4583_v12, %v4579_v52  ;;  %vm4652_vm15 = vcmp.gt.s32.totalorder %v4651_v28, 0  ;;  %v4690_v16 = vand.u32 65535, %v8710_v2  ;;  %v4691_v49 = vshrl.u32 %v8710_v2, 16 }
 0x63e   : > { %v4653_v34 = vsel %vm4652_vm15, %v4651_v28, 0  ;;  %vm8770_vm15 = vcmp.le.f32.partialorder %v4641_v44, 0.7853982 }
 0x63f   : > { %v4585_v31 = vadd.s32 536870912, %v4584_v21  ;;  %v4655_v42 = vand.u32 31, %v4653_v34  ;;  %v8690_v62 = vshrl.u32 %v4653_v34, 5 }
 0x641   : > { %v8672_v38 = vshrl.u32 %v4585_v31, 30  ;;  %v8688_v26 = vsub.s32 32, %v4655_v42  ;;  %v4658_v59 = vshll.u32 %v8942_v61, %v4655_v42  ;;  %v4661_v39 = vshll.u32 %v8937_v56, %v4655_v42 }
 0x642   : > { %v4664_v54 = vshll.u32 %v8938_v14, %v4655_v42  ;;  %v4667_v22 = vshll.u32 %v8939_v7, %v4655_v42  ;;  %v4670_v43 = vshll.u32 %v9012_v10, %v4655_v42  ;;  %vm4673_vm8 = vcmp.lt.s32.totalorder %v8690_v62, 1 }
 0x643   : > { %v4587_v45 = vshll.u32 %v8672_v38, 30  ;;  %v4659_v27 = vshrl.u32 %v8937_v56, %v8688_v26  ;;  %v4662_v37 = vshrl.u32 %v8938_v14, %v8688_v26  ;;  %v4665_v57 = vshrl.u32 %v8939_v7, %v8688_v26 }
 0x644   : > { %v4668_v63 = vshrl.u32 %v9012_v10, %v8688_v26  ;;  %v4671_v60 = vshrl.u32 %v9021_v40, %v8688_v26  ;;  %vm4676_vm13 = vcmp.lt.s32.totalorder %v8690_v62, 4  ;;  %vm4675_vm12 = vcmp.lt.s32.totalorder %v8690_v62, 3 }
 0x645   : > { %v8675_v30 = vsub.s32 %v4584_v21, %v4587_v45  ;;  %v4660_v56 = vor.u32 %v4659_v27, %v4658_v59  ;;  %v4663_v8 = vor.u32 %v4662_v37, %v4661_v39  ;;  %v4666_v35 = vor.u32 %v4665_v57, %v4664_v54 }
 0x646   : > { %v4669_v20 = vor.u32 %v4668_v63, %v4667_v22  ;;  %v4672_v14 = vor.u32 %v4671_v60, %v4670_v43  ;;  %vm4674_vm11 = vcmp.lt.s32.totalorder %v8690_v62, 2  ;;  %v4580_v45 = vadd.s32 %v8665_v3, %v8663_v17 }
 0x647   : > { %v4590_v32 = vsub.s32 0, %v8675_v30  ;;  %vm4589_vm4 = vcmp.lt.s32.totalorder %v8675_v30, 0  ;;  %v4681_v7 = vsel %vm4673_vm8, %v4660_v56, %v4663_v8  ;;  %v4685_v53 = vsel %vm4673_vm8, %v4663_v8, %v4666_v35 }
 0x648   : > { %v4682_v40 = vsel %vm4676_vm13, %v4669_v20, 920167782  ;;  %v4686_v18 = vsel %vm4676_vm13, %v4672_v14, 1326507024  ;;  %v4678_v17 = vsel %vm4676_vm13, %v4666_v35, 2102212464  ;;  %v4657_v59 = vshrl.u32 %v8942_v61, %v8688_v26 }
 0x649   : > { %v4591_v5 = vsel %vm4589_vm4, %v4590_v32, %v8675_v30  ;;  %v4683_v15 = vsel %vm4675_vm12, %v4666_v35, %v4682_v40  ;;  %v4687_v1 = vsel %vm4675_vm12, %v4669_v20, %v4686_v18  ;;  %v4679_v43 = vsel %vm4675_vm12, %v4663_v8, %v4678_v17 }
 0x64a   : > { %v4592_v19 = vclz %v4591_v5  ;;  %v4684_v55 = vsel %vm4674_vm11, %v4681_v7, %v4683_v15  ;;  %v4688_v24 = vsel %vm4674_vm11, %v4685_v53, %v4687_v1  ;;  %v4677_v63 = vsel %vm4673_vm8, %v4657_v59, %v4660_v56 }
 0x64b   : > { %v4714_v47 = vand.u32 65535, %v4684_v55  ;;  %v4715_v51 = vshrl.u32 %v4684_v55, 16  ;;  %v4692_v25 = vand.u32 65535, %v4688_v24  ;;  %v4693_v46 = vshrl.u32 %v4688_v24, 16 }
 0x64c   : > { %v4980_v13 = vadd.s32 4294967294, %v4592_v19  ;;  %vm4643_vm4 = vcmp.lt.s32.totalorder %v8681_v29, 0 }
 0x64d   : > { %v4717_v52 = vmul.u32 %v4715_v51, %v4690_v16  ;;  %v4718_v12 = vmul.u32 %v4714_v47, %v4691_v49  ;;  %v4695_v21 = vmul.u32 %v4693_v46, %v4690_v16  ;;  %v4696_v31 = vmul.u32 %v4692_v25, %v4691_v49 }
 0x64e   : > { %vm4981_vm9 = vcmp.lt.s32.totalorder %v4980_v13, 0  ;;  %v4716_v41 = vmul.u32 %v4714_v47, %v4690_v16  ;;  %v4694_v5 = vmul.u32 %v4692_v25, %v4690_v16  ;;  %v4719_v19 = vmul.u32 %v4715_v51, %v4691_v49 }
 0x64f   : > { %v8707_v23 = vsel %vm4981_vm9, 0, %v4980_v13  ;;  %v4720_v32 = vshll.u32 %v4717_v52, 16  ;;  %v4698_v0 = vshll.u32 %v4695_v21, 16  ;;  %v4697_v48 = vmul.u32 %v4693_v46, %v4691_v49 }
 0x650   : > { %v4600_v10 = vsub.s32 4294967266, %v8707_v23  ;;  %v4596_v6 = vsub.s32 32, %v8707_v23  ;;  %v4722_v28 = vshll.u32 %v4718_v12, 16  ;;  %v4700_v11 = vshll.u32 %v4696_v31, 16 }
 0x651   : > { %vm4724_vm10 = vc.u32 %v4716_v41, %v4720_v32  ;;  %v4726_v13 = vadd.s32 %v4720_v32, %v4716_v41  ;;  %vm4702_vm14 = vc.u32 %v4694_v5, %v4698_v0  ;;  %v4704_v34 = vadd.s32 %v4698_v0, %v4694_v5 }
 0x652   : > { %v4601_v4 = vadd.s32 127, %v4600_v10  ;;  %v4725_v42 = vsel %vm4724_vm10, 1, %v8943_v9  ;;  %v4703_v3 = vsel %vm4702_vm14, 1, %v8943_v9  ;;  %v4598_v37 = vshrl.u32 %v4580_v45, %v4596_v6 }
 0x653   : > { %v4727_v36 = vadd.s32 %v4725_v42, %v4719_v19  ;;  %vm4728_vm5 = vc.u32 %v4726_v13, %v4722_v28  ;;  %v4705_v39 = vadd.s32 %v4703_v3, %v4697_v48  ;;  %vm4706_vm7 = vc.u32 %v4704_v34, %v4700_v11 }
 0x654   : > { %v4602_v50 = vshll.u32 %v4601_v4, 23  ;;  %v4729_v27 = vsel %vm4728_vm5, 1, %v8943_v9  ;;  %v4707_v54 = vsel %vm4706_vm7, 1, %v8943_v9  ;;  %v4721_v57 = vshrl.u32 %v4717_v52, 16 }
 0x655   : > { %v4731_v22 = vadd.s32 %v4729_v27, %v4727_v36  ;;  %v4699_v60 = vshrl.u32 %v4695_v21, 16  ;;  %v4709_v35 = vadd.s32 %v4707_v54, %v4705_v39  ;;  %v4597_v61 = vshll.u32 %v8675_v30, %v8707_v23 }
 0x656   : > { %v4603_v26 = vor.u32 4788187, %v4602_v50  ;;  %v4723_v20 = vshrl.u32 %v4718_v12, 16  ;;  %v4701_v7 = vshrl.u32 %v4696_v31, 16  ;;  %v4680_v9 = vsel %vm4674_vm11, %v4677_v63, %v4679_v43 }
 0x657   : > { %v4732_v14 = vadd.s32 %v4731_v22, %v4721_v57  ;;  %v4710_v10 = vadd.s32 %v4709_v35, %v4699_v60  ;;  %v4599_v40 = vor.u32 %v4598_v37, %v4597_v61  ;;  %v4730_v56 = vadd.s32 %v4726_v13, %v4722_v28 }
 0x658   : > { %v4604_v18 = vand.u32 2147483647, %v4603_v26  ;;  %v4734_v8 = vmul.u32 %v8710_v2, %v4680_v9  ;;  %v4610_v27 = vsub.s32 4, %v8672_v38  ;;  %vm4784_vm14 = vweird.f32 %v8681_v29 }
 0x659   : > { %v4733_v53 = vadd.s32 %v4732_v14, %v4723_v20  ;;  %v4711_v15 = vadd.s32 %v4710_v10, %v4701_v7  ;;  %v4606_v1 = vcvt.s32.f32 %v4599_v40  ;;  %vm4799_vm5 = vcmask 1040384  }
 0x65a   : > { %v4611_v35 = vsel %vm4488_vm6, %v4610_v27, %v8672_v38  ;;  %vm4629_vm7 = vweird.f32 %v8610_v58 }
 0x65b   : > { %v4737_v55 = vadd.s32 1, %v4733_v53  ;;  %vm4736_vm0 = vc.u32 %v4711_v15, %v4730_v56  ;;  %v4607_v23 = vmul.f32 %v4606_v1, %v4604_v18  ;;  %v4735_v41 = vadd.s32 %v4730_v56, %v4711_v15 }
 0x65c   : > { %v4613_v10 = vsel %vm8759_vm2, 0, %v4611_v35 }
 0x65d   : > { %v4738_v16 = vsel %vm4736_vm0, %v4737_v55, %v4733_v53  ;;  %v4608_v47 = vxor.u32 2147483648, %v4607_v23  ;;  %v4630_v18 = vadd.s32 3, %v4613_v10 }
 0x65e   : > { %v4739_v30 = vadd.s32 %v4738_v16, %v4734_v8 }
 0x65f   : > { %v4609_v4 = vsel %vm4488_vm6, %v4608_v47, %v4607_v23 }
 0x660   : > { %v4740_v24 = vadd.s32 536870912, %v4739_v30  ;;  %v4612_v46 = vsel %vm8759_vm2, %v8610_v58, %v4609_v4 }
 0x661   : > { %v4614_v21 = vmul.f32 %v4612_v46, %v4612_v46 }
 0x662   : > { %v4741_v49 = vshrl.u32 %v4740_v24, 30  ;;  %v4631_v24 = vand.u32 3, %v4630_v18 }
 0x663   : > { %v4622_v6 = vmul.f32 -0.00019511016, %v4614_v21  ;;  %v4615_v11 = vmul.f32 -0.001358992, %v4614_v21 }
 0x664   : > { %v4742_v51 = vshll.u32 %v4741_v49, 30  ;;  %v4765_v22 = vsub.s32 4, %v4741_v49  ;;  %vm4633_vm9 = vcmp.eq.s32.totalorder %v4631_v24, 0  ;;  %vm4632_vm8 = vcmp.lt.s32.totalorder %v4631_v24, 2 }
 0x665   : > { %v4623_v19 = vadd.f32 0.008332121, %v4622_v6  ;;  %v4616_v36 = vadd.f32 0.041655596, %v4615_v11  ;;  %vm4636_vm13 = vcmp.eq.s32.totalorder %v4631_v24, 2 }
 0x666   : > { %v4743_v62 = vsub.s32 %v4739_v30, %v4742_v51  ;;  %v4766_v44 = vsel %vm4643_vm4, %v4765_v22, %v4741_v49 }
 0x667   : > { %v4624_v34 = vmul.f32 %v4623_v19, %v4614_v21  ;;  %v4617_v57 = vmul.f32 %v4616_v36, %v4614_v21  ;;  %v4768_v9 = vsel %vm8770_vm15, 0, %v4766_v44 }
 0x668   : > { %vm4744_vm1 = vcmp.lt.s32.totalorder %v4743_v62, 0  ;;  %v4745_v25 = vsub.s32 0, %v4743_v62  ;;  %v4785_v1 = vadd.s32 3, %v4768_v9 }
 0x669   : > { %v4625_v59 = vadd.f32 -0.16666654, %v4624_v34  ;;  %v4618_v26 = vadd.f32 -0.4999988, %v4617_v57 }
 0x66a   : > { %v4746_v52 = vsel %vm4744_vm1, %v4745_v25, %v4743_v62 }
 0x66b   : > { %v4747_v12 = vclz %v4746_v52  ;;  %v4626_v43 = vmul.f32 %v4625_v59, %v4614_v21  ;;  %v4619_v15 = vmul.f32 %v4618_v26, %v4614_v21 }
 0x66d   : > { %v4983_v31 = vadd.s32 4294967294, %v4747_v12  ;;  %v4627_v14 = vadd.f32 1.0, %v4626_v43  ;;  %v4620_v30 = vadd.f32 1.0, %v4619_v15  ;;  %v4802_v12 = vlaneseq }
 0x66f   : > { %vm4984_vm3 = vcmp.lt.s32.totalorder %v4983_v31, 0  ;;  %v4628_v38 = vmul.f32 %v4627_v14, %v4612_v46  ;;  %v4637_v25 = vxor.u32 2147483648, %v4620_v30  ;;  %vm4804_vm0 = vcmp.lt.s32.totalorder %v4802_v12, 256 }
 0x670   : > { %v4750_v45 = vsel %vm4984_vm3, 0, %v4983_v31 }
 0x671   : > { %v4751_v32 = vsub.s32 32, %v4750_v45  ;;  %v4755_v50 = vsub.s32 4294967266, %v4750_v45  ;;  %v4752_v5 = vshll.u32 %v4743_v62, %v4750_v45  ;;  %v4634_v47 = vxor.u32 2147483648, %v4628_v38 }
 0x672   : > { %v4786_v62 = vand.u32 3, %v4785_v1  ;;  %v4638_v21 = vsel %vm4636_vm13, %v4637_v25, %v4628_v38 }
 0x673   : > { %v4753_v0 = vshrl.u32 %v4735_v41, %v4751_v32  ;;  %v4756_v33 = vadd.s32 127, %v4755_v50  ;;  %v4635_v52 = vsel %vm4633_vm9, %v4620_v30, %v4634_v47 }
 0x674   : > { %vm4788_vm12 = vcmp.eq.s32.totalorder %v4786_v62, 0  ;;  %vm4791_vm11 = vcmp.eq.s32.totalorder %v4786_v62, 2  ;;  %vm4787_vm10 = vcmp.lt.s32.totalorder %v4786_v62, 2  ;;  %v4639_v6 = vsel %vm4632_vm8, %v4635_v52, %v4638_v21 }
 0x675   : > { %v4754_v48 = vor.u32 %v4753_v0, %v4752_v5  ;;  %v4757_v28 = vshll.u32 %v4756_v33, 23  ;;  %v4640_v5 = vsel %vm4629_vm7, nan, %v4639_v6 }
 0x677   : > { %v4758_v13 = vor.u32 4788187, %v4757_v28  ;;  %v4761_v17 = vcvt.s32.f32 %v4754_v48 }
 0x679   : > { %v4759_v42 = vand.u32 2147483647, %v4758_v13 }
 0x67b   : > { %v4762_v3 = vmul.f32 %v4761_v17, %v4759_v42 }
 0x67d   : > { %v4763_v39 = vxor.u32 2147483648, %v4762_v3 }
 0x67f   : > { %v4764_v54 = vsel %vm4643_vm4, %v4763_v39, %v4762_v3 }
 0x680   : > { %v4767_v63 = vsel %vm8770_vm15, %v8681_v29, %v4764_v54 }
 0x681   : > { %v4769_v60 = vmul.f32 %v4767_v63, %v4767_v63 }
 0x683   : > { %v4777_v61 = vmul.f32 -0.00019511016, %v4769_v60  ;;  %v4770_v20 = vmul.f32 -0.001358992, %v4769_v60 }
 0x685   : > { %v4778_v7 = vadd.f32 0.008332121, %v4777_v61  ;;  %v4771_v40 = vadd.f32 0.041655596, %v4770_v20 }
 0x687   : > { %v4779_v53 = vmul.f32 %v4778_v7, %v4769_v60  ;;  %v4772_v56 = vmul.f32 %v4771_v40, %v4769_v60 }
 0x689   : > { %v4780_v55 = vadd.f32 -0.16666654, %v4779_v53  ;;  %v4773_v8 = vadd.f32 -0.4999988, %v4772_v56 }
 0x68b   : > { %v4781_v16 = vmul.f32 %v4780_v55, %v4769_v60  ;;  %v4774_v23 = vmul.f32 %v4773_v8, %v4769_v60 }
 0x68d   : > { %v4782_v49 = vadd.f32 1.0, %v4781_v16  ;;  %v4775_v51 = vadd.f32 1.0, %v4774_v23 }
 0x68f   : > { %v4783_v4 = vmul.f32 %v4782_v49, %v4767_v63  ;;  %v4792_v2 = vxor.u32 2147483648, %v4775_v51 }
 0x691   : > { %v4789_v46 = vxor.u32 2147483648, %v4783_v4  ;;  %v4793_v45 = vsel %vm4791_vm11, %v4792_v2, %v4783_v4 }
 0x693   : > { %v4790_v31 = vsel %vm4788_vm12, %v4775_v51, %v4789_v46 }
 0x694   : > { %v4794_v41 = vsel %vm4787_vm10, %v4790_v31, %v4793_v45 }
 0x695   : > { %v4795_v32 = vsel %vm4784_vm14, nan, %v4794_v41 }
 0x696   : > { %v4798_v50 = vrot.slane %v4795_v32, 7 }
 0x698   : > { %v4800_v0 = vsel %vm4799_vm5, %v4640_v5, %v4798_v50 }
 0x699   : > { %4806 = vst.msk [vmem:[%s328_s10] sm:$0x3] %vm4804_vm0, %v4800_v0 }
 0x69a   : > { %5073 = shalt.err (!%p5070_p3)
}
 0x69b   : > { %4989 = dma.vmem_to_hbm [thread:$0]  (%p5209_p5), %s4821_s15, 32, %s4823_s17, %s4808_s28  }
 0x69c PF: > { %p4995_p4 = scmp.ge.s32.totalorder %s5108_s14, 2  ;;  %s4834_s25 = sand.u32 1, %s5096_s11  }
 0x69d   : > { %s4835_s29 = scalar_lea.sflag [#allocation4], %s4834_s25 }
 0x69e   : > { %p4992_p7 = pnand %p4995_p4, %p5213_p6 }
 0x6a0   : > { %p4993_p8 = pneg %p4992_p7 }
 0x6a2   : > { %5091 = dma.done.wait (%p4993_p8), %s4835_s29, 32  }
 0x6a3   : > { %5093 = vsyncadd (%p4993_p8), %s4835_s29, 4294967264  ;;  %p21_p9 = scmp.ge.s32.totalorder %s5195_s16, 6   ;;  %s9041_s11 = smov %s5100_s12 }
 0x6a4   : > { %s9042_s12 = smov %s5104_s13  ;;  %s9043_s13 = smov %s5207_s19 }
 0x6a5   : > { %s9044_s14 = smov %s5195_s16  ;;  %23 = sbr.rel (!%p21_p9) target bundleno = 6 (0x6), region = 91 }
 0x6aa   :  { %4841 = vsyncpa [#allocation4], 1 }
 0x6ab   :  { %4843 = vsyncpa [#allocation4 + $0x1], 1 }

</bundles_post_ra>
